<compile_context>
chip_gen: v7x
topology: tpu7x:2x2x1
jax: 0.10.0
libtpu: 0.0.40
codegen_flags: <defaults>
</compile_context>

<pallas_src>
import math

import jax
import jax.numpy as jnp
from jax import lax
from jax.experimental import pallas as pl
from jax.experimental.pallas import tpu as pltpu


def _conv_block_kernel(x_ref, w1_ref, w2_ref, b_ref, out_ref, h1p_ref):
    """One (batch, H-tile) step: conv1 + lrelu over Ht+2 rows, conv2 + lrelu over Ht rows.

    x_ref   : (1, Ht+4, W+2, Cin_p)   bf16   input tile with 2-row halo, W pre-padded by 1
    w1_ref  : (9*Cin_p, Cout_p)       bf16   im2col-reshaped EqualConv2d #1 weight
    w2_ref  : (9*Cout_p, Cout_p)      bf16   im2col-reshaped EqualConv2d #2 weight
    b_ref   : (2, Cout_p)             f32    packed biases [b1; b2]
    out_ref : (1, Ht, W, Cout_p)      f32
    h1p_ref : (Ht+2, W+2, Cout_p)     bf16   VMEM scratch: W-padded conv1 output tile
    """
    _, Ht, W, Cout_p = out_ref.shape
    Cin_p = x_ref.shape[-1]
    t = pl.program_id(1)
    n_t = pl.num_programs(1)

    def im2col(src, rows, cols, c):
        # src: (rows+2, cols+2, c) value; returns (rows*cols, 9*c)
        taps = [src[dy:dy + rows, dx:dx + cols, :]
                for dy in range(3) for dx in range(3)]
        return jnp.concatenate(taps, axis=-1).reshape(rows * cols, 9 * c)

    def leaky(h):
        return jnp.maximum(h, 0.2 * h)

    b = b_ref[...]                                  # (2, Cout_p) f32

    # ---- conv1 + LeakyReLU over Ht+2 rows (1-row halo needed by conv2) -------
    x = x_ref[0]                                    # (Ht+4, W+2, Cin_p) bf16
    a1 = im2col(x, Ht + 2, W, Cin_p)                # ((Ht+2)*W, 9*Cin_p) bf16
    h1 = jnp.dot(a1, w1_ref[...], preferred_element_type=jnp.float32)
    h1 = leaky(h1 + b[0:1, :])
    h1 = h1.reshape(Ht + 2, W, Cout_p).astype(h1p_ref.dtype)

    # ---- stage conv1 tile into the W-padded scratch (no full zeroing) --------
    h1p_ref[:, pl.ds(1, W), :] = h1
    zero_col = jnp.zeros((Ht + 2, 1, Cout_p), h1p_ref.dtype)
    h1p_ref[:, pl.ds(0, 1), :] = zero_col
    h1p_ref[:, pl.ds(W + 1, 1), :] = zero_col

    @pl.when(t == 0)
    def _():  # image top border: conv2 must see zeros above row 0
        h1p_ref[pl.ds(0, 1), :, :] = jnp.zeros((1, W + 2, Cout_p), h1p_ref.dtype)

    @pl.when(t == n_t - 1)
    def _():  # image bottom border
        h1p_ref[pl.ds(Ht + 1, 1), :, :] = jnp.zeros((1, W + 2, Cout_p), h1p_ref.dtype)

    # ---- conv2 + LeakyReLU ---------------------------------------------------
    h1p = h1p_ref[...]                              # (Ht+2, W+2, Cout_p) bf16
    a2 = im2col(h1p, Ht, W, Cout_p)                 # (Ht*W, 9*Cout_p) bf16
    h2 = jnp.dot(a2, w2_ref[...], preferred_element_type=jnp.float32)
    h2 = leaky(h2 + b[1:2, :])
    out_ref[0] = h2.reshape(Ht, W, Cout_p).astype(out_ref.dtype)


def conv_block(x_nchw, w1_oihw, b1, w2_oihw, b2, *, h_tile=None):
    """Pallas forward of ConvBlock (downsample=False). NCHW in / NCHW out.

    Takes raw (un-scaled) PyTorch-shaped parameters; EqualLR scaling is applied here.
    """
    N, Cin, H, W = x_nchw.shape
    Cout = w1_oihw.shape[0]
    assert w1_oihw.shape == (Cout, Cin, 3, 3)
    assert w2_oihw.shape == (Cout, Cout, 3, 3)

    LANES = 128
    Cin_p = ((Cin + LANES - 1) // LANES) * LANES
    Cout_p = ((Cout + LANES - 1) // LANES) * LANES

    if h_tile is None:
        h_tile = next((c for c in (64, 32, 16, 8) if H % c == 0), H)
    assert H % h_tile == 0, "h_tile must divide H"
    Ht = h_tile
    nT = H // Ht

    # ---- parameters: EqualLR scale, pad channels, im2col layout, bf16 --------
    def prep_w(w_oihw, cin, cin_p):
        fan_in = cin * 9
        w = jnp.transpose(w_oihw, (2, 3, 1, 0)) * math.sqrt(2.0 / fan_in)  # (3,3,cin,Cout)
        w = jnp.pad(w, ((0, 0), (0, 0), (0, cin_p - cin), (0, Cout_p - Cout)))
        return w.reshape(9 * cin_p, Cout_p).astype(jnp.bfloat16)

    w1m = prep_w(w1_oihw, Cin, Cin_p)      # (9*Cin_p,  Cout_p)
    w2m = prep_w(w2_oihw, Cout, Cout_p)    # (9*Cout_p, Cout_p)
    bias = jnp.stack([jnp.pad(b1, (0, Cout_p - Cout)),
                      jnp.pad(b2, (0, Cout_p - Cout))]).astype(jnp.float32)  # (2, Cout_p)

    # ---- input: NHWC, pad H by 2 / W by 1 / channels to Cin_p, bf16, H tiles with halo
    x = jnp.transpose(x_nchw, (0, 2, 3, 1))
    x = jnp.pad(x, ((0, 0), (2, 2), (1, 1), (0, Cin_p - Cin))).astype(jnp.bfloat16)
    x_tiles = jnp.stack([x[:, t * Ht: t * Ht + Ht + 4] for t in range(nT)], axis=1)
    x_tiles = x_tiles.reshape(N * nT, Ht + 4, W + 2, Cin_p)

    out = pl.pallas_call(
        _conv_block_kernel,
        out_shape=jax.ShapeDtypeStruct((N, H, W, Cout_p), jnp.float32),
        grid=(N, nT),
        in_specs=[
            pl.BlockSpec((1, Ht + 4, W + 2, Cin_p), lambda n, t: (n * nT + t, 0, 0, 0)),
            pl.BlockSpec((9 * Cin_p, Cout_p), lambda n, t: (0, 0)),
            pl.BlockSpec((9 * Cout_p, Cout_p), lambda n, t: (0, 0)),
            pl.BlockSpec((2, Cout_p), lambda n, t: (0, 0)),
        ],
        out_specs=pl.BlockSpec((1, Ht, W, Cout_p), lambda n, t: (n, t, 0, 0)),
        scratch_shapes=[pltpu.VMEM((Ht + 2, W + 2, Cout_p), jnp.bfloat16)],
        compiler_params=pltpu.CompilerParams(
            dimension_semantics=("parallel", "parallel")),
    )(x_tiles, w1m, w2m, bias)

    return jnp.transpose(out[..., :Cout], (0, 3, 1, 2))   # strip pad, back to NCHW


# ------------------------------------------------------------------------------
# Pure-JAX reference (mirrors the PyTorch ConvBlock math, f32, NCHW).
# ------------------------------------------------------------------------------
def reference_forward(x, w1, b1, w2, b2):
    Cin = x.shape[1]
    Cout = w1.shape[0]

    def econv(h, w, b, fan_in):
        y = lax.conv_general_dilated(
            h, w * math.sqrt(2.0 / fan_in), (1, 1), ((1, 1), (1, 1)),
            dimension_numbers=("NCHW", "OIHW", "NCHW"))
        return y + b[None, :, None, None]

    h = econv(x, w1, b1, Cin * 9)
    h = jnp.where(h >= 0, h, 0.2 * h)
    h = econv(h, w2, b2, Cout * 9)
    h = jnp.where(h >= 0, h, 0.2 * h)
    return h


if __name__ == "__main__":
    N, in_ch, out_ch, H, W = 2, 4, 8, 16, 16

    key = jax.random.PRNGKey(0)
    k = jax.random.split(key, 8)

    # Raw PyTorch-shaped parameters (EqualConv2d: normal weight; bias is a free
    # parameter — small nonzero values here to exercise the bias path).
    w1 = jax.random.normal(k[0], (out_ch, in_ch, 3, 3), jnp.float32)
    b1 = 0.1 * jax.random.normal(k[1], (out_ch,), jnp.float32)
    w2 = jax.random.normal(k[2], (out_ch, out_ch, 3, 3), jnp.float32)
    b2 = 0.1 * jax.random.normal(k[3], (out_ch,), jnp.float32)
    x = jax.random.normal(k[4], (N, in_ch, H, W), jnp.float32)

    # h_tile=8 -> 2 H tiles per image: exercises the halo / boundary-tile logic.
    out = conv_block(x, w1, b1, w2, b2, h_tile=8)
    out = jax.block_until_ready(out)

    ref = reference_forward(x, w1, b1, w2, b2)
    assert out.shape == (N, out_ch, H, W)
    # bf16 matmul operands with f32 accumulation -> loose-but-safe tolerance.
    assert bool(jnp.allclose(out, ref, rtol=5e-2, atol=5e-2)), "mismatch vs reference"
    print("KERNEL_OK")
</pallas_src>

<mosaic_0001>
module attributes {stable_mosaic.version = 11 : i64} {
  func.func @_conv_block_kernel(%arg0: i32, %arg1: i32, %arg2: memref<1x12x18x128xbf16, #tpu.memory_space<vmem>>, %arg3: memref<1152x128xbf16, #tpu.memory_space<vmem>>, %arg4: memref<1152x128xbf16, #tpu.memory_space<vmem>>, %arg5: memref<2x128xf32, #tpu.memory_space<vmem>>, %arg6: memref<1x8x16x128xf32, #tpu.memory_space<vmem>>, %arg7: memref<10x18x128xbf16, #tpu.memory_space<vmem>>) attributes {dimension_semantics = [#tpu.dimension_semantics<parallel>, #tpu.dimension_semantics<parallel>], iteration_bounds = array<i64: 2, 2>, scalar_prefetch = 0 : i64, scratch_operands = 1 : i64, tpu.core_type = #tpu.core_type<tc>, window_params = [{transform_indices = @transform_0, window_bounds = array<i64: 1, 12, 18, 128>}, {pipeline_mode = #tpu.pipeline_mode<synchronous>, transform_indices = @transform_1, window_bounds = array<i64: 1152, 128>}, {pipeline_mode = #tpu.pipeline_mode<synchronous>, transform_indices = @transform_2, window_bounds = array<i64: 1152, 128>}, {pipeline_mode = #tpu.pipeline_mode<synchronous>, transform_indices = @transform_3, window_bounds = array<i64: 2, 128>}, {transform_indices = @transform_4, window_bounds = array<i64: 1, 8, 16, 128>}]} {
    %c0 = arith.constant 0 : index
    %c0_0 = arith.constant 0 : index
    %0 = vector.load %arg5[%c0, %c0_0] : memref<2x128xf32, #tpu.memory_space<vmem>>, vector<2x128xf32>
    %c0_1 = arith.constant 0 : index
    %c0_2 = arith.constant 0 : index
    %c0_3 = arith.constant 0 : index
    %c0_4 = arith.constant 0 : index
    %1 = vector.load %arg2[%c0_1, %c0_2, %c0_3, %c0_4] : memref<1x12x18x128xbf16, #tpu.memory_space<vmem>>, vector<1x12x18x128xbf16>
    %2 = vector.shape_cast %1 : vector<1x12x18x128xbf16> to vector<12x18x128xbf16>
    %3 = vector.extract_strided_slice %2 {offsets = [0, 0, 0], sizes = [10, 16, 128], strides = [1, 1, 1]} : vector<12x18x128xbf16> to vector<10x16x128xbf16>
    %4 = vector.extract_strided_slice %2 {offsets = [0, 1, 0], sizes = [10, 16, 128], strides = [1, 1, 1]} : vector<12x18x128xbf16> to vector<10x16x128xbf16>
    %5 = vector.extract_strided_slice %2 {offsets = [0, 2, 0], sizes = [10, 16, 128], strides = [1, 1, 1]} : vector<12x18x128xbf16> to vector<10x16x128xbf16>
    %6 = vector.extract_strided_slice %2 {offsets = [1, 0, 0], sizes = [10, 16, 128], strides = [1, 1, 1]} : vector<12x18x128xbf16> to vector<10x16x128xbf16>
    %7 = vector.extract_strided_slice %2 {offsets = [1, 1, 0], sizes = [10, 16, 128], strides = [1, 1, 1]} : vector<12x18x128xbf16> to vector<10x16x128xbf16>
    %8 = vector.extract_strided_slice %2 {offsets = [1, 2, 0], sizes = [10, 16, 128], strides = [1, 1, 1]} : vector<12x18x128xbf16> to vector<10x16x128xbf16>
    %9 = vector.extract_strided_slice %2 {offsets = [2, 0, 0], sizes = [10, 16, 128], strides = [1, 1, 1]} : vector<12x18x128xbf16> to vector<10x16x128xbf16>
    %10 = vector.extract_strided_slice %2 {offsets = [2, 1, 0], sizes = [10, 16, 128], strides = [1, 1, 1]} : vector<12x18x128xbf16> to vector<10x16x128xbf16>
    %11 = vector.extract_strided_slice %2 {offsets = [2, 2, 0], sizes = [10, 16, 128], strides = [1, 1, 1]} : vector<12x18x128xbf16> to vector<10x16x128xbf16>
    %12 = tpu.concatenate %3, %4, %5, %6, %7, %8, %9, %10, %11 in 2 : vector<10x16x128xbf16>, vector<10x16x128xbf16>, vector<10x16x128xbf16>, vector<10x16x128xbf16>, vector<10x16x128xbf16>, vector<10x16x128xbf16>, vector<10x16x128xbf16>, vector<10x16x128xbf16>, vector<10x16x128xbf16> -> vector<10x16x1152xbf16>
    %13 = vector.shape_cast %12 : vector<10x16x1152xbf16> to vector<160x1152xbf16>
    %c0_5 = arith.constant 0 : index
    %c0_6 = arith.constant 0 : index
    %14 = vector.load %arg3[%c0_5, %c0_6] : memref<1152x128xbf16, #tpu.memory_space<vmem>>, vector<1152x128xbf16>
    %cst = arith.constant dense<0.000000e+00> : vector<160x128xf32>
    %15 = tpu.matmul %13, %14, %cst {dimension_numbers = #tpu.dot_dimension_numbers<[1], [0], [0], [1], [0, 0, 1, 1], [], []>} : vector<160x1152xbf16>, vector<1152x128xbf16>, vector<160x128xf32> -> vector<160x128xf32>
    %16 = vector.extract_strided_slice %0 {offsets = [0, 0], sizes = [1, 128], strides = [1, 1]} : vector<2x128xf32> to vector<1x128xf32>
    %17 = vector.broadcast %16 : vector<1x128xf32> to vector<160x128xf32>
    %18 = arith.addf %15, %17 : vector<160x128xf32>
    %cst_7 = arith.constant 2.000000e-01 : f32
    %19 = vector.broadcast %cst_7 : f32 to vector<160x128xf32>
    %20 = arith.mulf %19, %18 : vector<160x128xf32>
    %21 = arith.maximumf %18, %20 : vector<160x128xf32>
    %22 = vector.shape_cast %21 : vector<160x128xf32> to vector<10x16x128xf32>
    %23 = arith.truncf %22 : vector<10x16x128xf32> to vector<10x16x128xbf16>
    %c0_8 = arith.constant 0 : index
    %c1 = arith.constant 1 : index
    %c0_9 = arith.constant 0 : index
    %24 = vector.load %arg7[%c0_8, %c1, %c0_9] : memref<10x18x128xbf16, #tpu.memory_space<vmem>>, vector<10x16x128xbf16>
    tpu.vector_store %arg7[%c0_8, %c1, %c0_9], %23 {strides = array<i32>} : memref<10x18x128xbf16, #tpu.memory_space<vmem>>, vector<10x16x128xbf16>,
    %cst_10 = arith.constant 0.000000e+00 : bf16
    %25 = vector.broadcast %cst_10 : bf16 to vector<10x1x128xbf16>
    %c0_11 = arith.constant 0 : index
    %c0_12 = arith.constant 0 : index
    %c0_13 = arith.constant 0 : index
    %26 = vector.load %arg7[%c0_11, %c0_12, %c0_13] : memref<10x18x128xbf16, #tpu.memory_space<vmem>>, vector<10x1x128xbf16>
    tpu.vector_store %arg7[%c0_11, %c0_12, %c0_13], %25 {strides = array<i32>} : memref<10x18x128xbf16, #tpu.memory_space<vmem>>, vector<10x1x128xbf16>,
    %c0_14 = arith.constant 0 : index
    %c17 = arith.constant 17 : index
    %c0_15 = arith.constant 0 : index
    %27 = vector.load %arg7[%c0_14, %c17, %c0_15] : memref<10x18x128xbf16, #tpu.memory_space<vmem>>, vector<10x1x128xbf16>
    tpu.vector_store %arg7[%c0_14, %c17, %c0_15], %25 {strides = array<i32>} : memref<10x18x128xbf16, #tpu.memory_space<vmem>>, vector<10x1x128xbf16>,
    %c0_i32 = arith.constant 0 : i32
    %28 = arith.cmpi eq, %arg1, %c0_i32 : i32
    %29 = arith.extui %28 : i1 to i32
    %c0_i32_16 = arith.constant 0 : i32
    %30 = arith.cmpi ne, %29, %c0_i32_16 : i32
    scf.if %30 {
      %cst_29 = arith.constant 0.000000e+00 : bf16
      %58 = vector.broadcast %cst_29 : bf16 to vector<1x18x128xbf16>
      %c0_30 = arith.constant 0 : index
      %c0_31 = arith.constant 0 : index
      %c0_32 = arith.constant 0 : index
      %59 = vector.load %arg7[%c0_30, %c0_31, %c0_32] : memref<10x18x128xbf16, #tpu.memory_space<vmem>>, vector<1x18x128xbf16>
      tpu.vector_store %arg7[%c0_30, %c0_31, %c0_32], %58 {strides = array<i32>} : memref<10x18x128xbf16, #tpu.memory_space<vmem>>, vector<1x18x128xbf16>,
    } else {
    }
    %c1_i32 = arith.constant 1 : i32
    %31 = arith.cmpi eq, %arg1, %c1_i32 : i32
    %32 = arith.extui %31 : i1 to i32
    %c0_i32_17 = arith.constant 0 : i32
    %33 = arith.cmpi ne, %32, %c0_i32_17 : i32
    scf.if %33 {
      %cst_29 = arith.constant 0.000000e+00 : bf16
      %58 = vector.broadcast %cst_29 : bf16 to vector<1x18x128xbf16>
      %c9 = arith.constant 9 : index
      %c0_30 = arith.constant 0 : index
      %c0_31 = arith.constant 0 : index
      %59 = vector.load %arg7[%c9, %c0_30, %c0_31] : memref<10x18x128xbf16, #tpu.memory_space<vmem>>, vector<1x18x128xbf16>
      tpu.vector_store %arg7[%c9, %c0_30, %c0_31], %58 {strides = array<i32>} : memref<10x18x128xbf16, #tpu.memory_space<vmem>>, vector<1x18x128xbf16>,
    } else {
    }
    %c0_18 = arith.constant 0 : index
    %c0_19 = arith.constant 0 : index
    %c0_20 = arith.constant 0 : index
    %34 = vector.load %arg7[%c0_18, %c0_19, %c0_20] : memref<10x18x128xbf16, #tpu.memory_space<vmem>>, vector<10x18x128xbf16>
    %35 = vector.extract_strided_slice %34 {offsets = [0, 0, 0], sizes = [8, 16, 128], strides = [1, 1, 1]} : vector<10x18x128xbf16> to vector<8x16x128xbf16>
    %36 = vector.extract_strided_slice %34 {offsets = [0, 1, 0], sizes = [8, 16, 128], strides = [1, 1, 1]} : vector<10x18x128xbf16> to vector<8x16x128xbf16>
    %37 = vector.extract_strided_slice %34 {offsets = [0, 2, 0], sizes = [8, 16, 128], strides = [1, 1, 1]} : vector<10x18x128xbf16> to vector<8x16x128xbf16>
    %38 = vector.extract_strided_slice %34 {offsets = [1, 0, 0], sizes = [8, 16, 128], strides = [1, 1, 1]} : vector<10x18x128xbf16> to vector<8x16x128xbf16>
    %39 = vector.extract_strided_slice %34 {offsets = [1, 1, 0], sizes = [8, 16, 128], strides = [1, 1, 1]} : vector<10x18x128xbf16> to vector<8x16x128xbf16>
    %40 = vector.extract_strided_slice %34 {offsets = [1, 2, 0], sizes = [8, 16, 128], strides = [1, 1, 1]} : vector<10x18x128xbf16> to vector<8x16x128xbf16>
    %41 = vector.extract_strided_slice %34 {offsets = [2, 0, 0], sizes = [8, 16, 128], strides = [1, 1, 1]} : vector<10x18x128xbf16> to vector<8x16x128xbf16>
    %42 = vector.extract_strided_slice %34 {offsets = [2, 1, 0], sizes = [8, 16, 128], strides = [1, 1, 1]} : vector<10x18x128xbf16> to vector<8x16x128xbf16>
    %43 = vector.extract_strided_slice %34 {offsets = [2, 2, 0], sizes = [8, 16, 128], strides = [1, 1, 1]} : vector<10x18x128xbf16> to vector<8x16x128xbf16>
    %44 = tpu.concatenate %35, %36, %37, %38, %39, %40, %41, %42, %43 in 2 : vector<8x16x128xbf16>, vector<8x16x128xbf16>, vector<8x16x128xbf16>, vector<8x16x128xbf16>, vector<8x16x128xbf16>, vector<8x16x128xbf16>, vector<8x16x128xbf16>, vector<8x16x128xbf16>, vector<8x16x128xbf16> -> vector<8x16x1152xbf16>
    %45 = vector.shape_cast %44 : vector<8x16x1152xbf16> to vector<128x1152xbf16>
    %c0_21 = arith.constant 0 : index
    %c0_22 = arith.constant 0 : index
    %46 = vector.load %arg4[%c0_21, %c0_22] : memref<1152x128xbf16, #tpu.memory_space<vmem>>, vector<1152x128xbf16>
    %cst_23 = arith.constant dense<0.000000e+00> : vector<128x128xf32>
    %47 = tpu.matmul %45, %46, %cst_23 {dimension_numbers = #tpu.dot_dimension_numbers<[1], [0], [0], [1], [0, 0, 1, 1], [], []>} : vector<128x1152xbf16>, vector<1152x128xbf16>, vector<128x128xf32> -> vector<128x128xf32>
    %48 = vector.extract_strided_slice %0 {offsets = [1, 0], sizes = [1, 128], strides = [1, 1]} : vector<2x128xf32> to vector<1x128xf32>
    %49 = vector.broadcast %48 : vector<1x128xf32> to vector<128x128xf32>
    %50 = arith.addf %47, %49 : vector<128x128xf32>
    %cst_24 = arith.constant 2.000000e-01 : f32
    %51 = vector.broadcast %cst_24 : f32 to vector<128x128xf32>
    %52 = arith.mulf %51, %50 : vector<128x128xf32>
    %53 = arith.maximumf %50, %52 : vector<128x128xf32>
    %54 = vector.shape_cast %53 : vector<128x128xf32> to vector<8x16x128xf32>
    %c0_25 = arith.constant 0 : index
    %c0_26 = arith.constant 0 : index
    %c0_27 = arith.constant 0 : index
    %c0_28 = arith.constant 0 : index
    %55 = vector.load %arg6[%c0_25, %c0_26, %c0_27, %c0_28] : memref<1x8x16x128xf32, #tpu.memory_space<vmem>>, vector<1x8x16x128xf32>
    %56 = vector.shape_cast %55 : vector<1x8x16x128xf32> to vector<8x16x128xf32>
    %57 = vector.shape_cast %54 : vector<8x16x128xf32> to vector<1x8x16x128xf32>
    tpu.vector_store %arg6[%c0_25, %c0_26, %c0_27, %c0_28], %57 {strides = array<i32>} : memref<1x8x16x128xf32, #tpu.memory_space<vmem>>, vector<1x8x16x128xf32>,
    return
  }
  func.func @transform_0(%arg0: i32, %arg1: i32) -> (i32, i32, i32, i32) {
    %c2_i32 = arith.constant 2 : i32
    %0 = arith.muli %arg0, %c2_i32 : i32
    %1 = arith.addi %0, %arg1 : i32
    %c0_i32 = arith.constant 0 : i32
    %c0_i32_0 = arith.constant 0 : i32
    %c0_i32_1 = arith.constant 0 : i32
    %c0_i32_2 = arith.constant 0 : i32
    return %1, %c0_i32, %c0_i32_0, %c0_i32_1 : i32, i32, i32, i32
  }
  func.func @transform_1(%arg0: i32, %arg1: i32) -> (i32, i32) {
    %c0_i32 = arith.constant 0 : i32
    %c0_i32_0 = arith.constant 0 : i32
    %c0_i32_1 = arith.constant 0 : i32
    return %c0_i32, %c0_i32_0 : i32, i32
  }
  func.func @transform_2(%arg0: i32, %arg1: i32) -> (i32, i32) {
    %c0_i32 = arith.constant 0 : i32
    %c0_i32_0 = arith.constant 0 : i32
    %c0_i32_1 = arith.constant 0 : i32
    return %c0_i32, %c0_i32_0 : i32, i32
  }
  func.func @transform_3(%arg0: i32, %arg1: i32) -> (i32, i32) {
    %c0_i32 = arith.constant 0 : i32
    %c0_i32_0 = arith.constant 0 : i32
    %c0_i32_1 = arith.constant 0 : i32
    return %c0_i32, %c0_i32_0 : i32, i32
  }
  func.func @transform_4(%arg0: i32, %arg1: i32) -> (i32, i32, i32, i32) {
    %c0_i32 = arith.constant 0 : i32
    %c0_i32_0 = arith.constant 0 : i32
    %c0_i32_1 = arith.constant 0 : i32
    return %arg0, %arg1, %c0_i32, %c0_i32_0 : i32, i32, i32, i32
  }
}

</mosaic_0001>

<bundles_post_ra>
// kernel: tpu_custom_call.1
= control target key start
LH: loop header
LB: loop body
LE: loop exit
PB: predicated region body
PF: predicated region fallthrough
CT: control target
= control target key end

     0   :  { %9 = vsyncpa [#allocation4], 0  ;;  %s6253_s0 = inlined_call_operand.vmem [shape: bf16[4,12,18,128], index: 0, kind: input, shape index: {}]   ;;  %s6254_s1 = inlined_call_operand.vmem [shape: bf16[1152,128], index: 1, kind: input, shape index: {}]   ;;  %s6255_s2 = inlined_call_operand.hbm [shape: bf16[1152,128], index: 2, kind: input, shape index: {}]   ;;  %s6256_s3 = inlined_call_operand.vmem [shape: f32[2,128], index: 3, kind: input, shape index: {}]   ;;  %s6257_s4 = inlined_call_operand.hbm [shape: f32[2,16,16,128], index: 4, kind: output, shape index: {}]  }
   0x1   :  { %10 = vsyncpa [#allocation5], 0 }
   0x2   :  { %12 = vsyncpa [#allocation5 + $0x1], 0  ;;  %s5049_s15 = smov 0   ;;  %s5051_s16 = smov 0  }
   0x3   :  { %s5053_s17 = smov 0   ;;  %s5055_s18 = smov 0  }
   0x4   :  { %s5057_s19 = smov 0   ;;  %s5059_s20 = smov 0  }
   0x5   :  { %s5061_s21 = smov 0   ;;  %s5063_s22 = smov 0  }
   0x6 LB: > { %s3699_s23 = sadd.s32 4294967295, %s5014_s22   ;;  %s3700_s24 = sadd.s32 4294967294, %s5014_s22   ;;  %s5014_s22 = sphi %s5063_s22, %s18_s22   ;;  %s5010_s21 = sphi %s5061_s21, %s6285_s21   ;;  %s5006_s20 = sphi %s5059_s20, %s6284_s20   ;;  %s5002_s19 = sphi %s5057_s19, %s6283_s19   ;;  %s4998_s18 = sphi %s5055_s18, %s6282_s18   ;;  %s4994_s17 = sphi %s5053_s17, %s6281_s17   ;;  %s4990_s16 = sphi %s5051_s16, %s6280_s16   ;;  %s4986_s15 = sphi %s5049_s15, %s6279_s15  }
   0x7   : > { %s27_s25 = sadd.s32 1, %s5006_s20  ;;  %s30_s26 = sadd.s32 1, %s5010_s21 }
   0x8   : > { %p28_p0 = scmp.ge.s32.totalorder %s27_s25, 2  ;;  %s132_s27 = sadd.s32 1, %s4994_s17 }
   0x9   : > { %p142_p1 = scmp.ne.s32.totalorder %s4994_s17, %s4990_s16  ;;  %p143_p2 = scmp.eq.s32.totalorder %s3699_s23, 3 }
   0xa   : > { %s6287_s25 = smov (%p28_p0, %s27_s25), 0  ;;  %s6289_s26 = smov (!%p28_p0, %s30_s26), %s5010_s21 }
   0xb   : > { %s128_s28 = ssub.s32 %s5006_s20, %s6287_s25  ;;  %p5101_p3 = por %p143_p2, %p142_p1 }
   0xc   : > { %p32_p4 = scmp.ge.s32.totalorder %s6289_s26, 2  ;;  %p148_p5 = scmp.ne.s32.totalorder %s4990_s16, %s4986_s15 }
   0xd   : > { %s6262_s29 = scalar_select %p5101_p3, 1, 0 }
   0xe   : > { %p149_p6 = scmp.eq.s32.totalorder %s3700_s24, 3  ;;  %p3703_p7 = scmp.ge.s32.totalorder %s5014_s22, 1 }
   0xf   : > { %s6291_s26 = smov (%p32_p4, %s6289_s26), 0  ;;  %p156_p9 = scmp.lt.s32.totalorder %s5014_s22, 5 }
  0x10   : > { %p5110_p8 = por %p149_p6, %p148_p5  ;;  %s127_s5 = ssub.s32 %s5010_s21, %s6291_s26 }
  0x11   : > { %s129_s6 = sor.u32 %s128_s28, %s127_s5  ;;  %p5117_p10 = pnand %p3703_p7, %p156_p9 }
  0x12   : > { %s6263_s30 = scalar_select %p5110_p8, 1, 0 }
  0x13   : > { %s6264_s7 = scalar_select %p5117_p10, 1, 0 }
  0x14   : > { %p130_p11 = scmp.eq.s32.totalorder %s129_s6, 0  ;;  %p5121_p12 = scmp.eq.s32.totalorder %s3699_s23, 0 }
  0x15   : > { %p4618_p13 = pneg %p5117_p10  ;;  %s5016_s10 = smov [#allocation3]  }
  0x16   : > { %s6265_s8 = scalar_select %p5121_p12, 1, 0 }
  0x17   : > { %s5128_s9 = scalar_select %p130_p11, %s4994_s17, %s132_s27  }
  0x18   : > { %s171_s11 = sshll.u32 %s5016_s10, 4  ;;  %p5132_p0 = pnand %p5121_p12, %p4618_p13  ;;  %s172_s11 = int_to_ptr.vmem [resolvable:$true] %s171_s11 }
  0x19   : > { %s4888_s23 = scalar_lea.hbm %s6255_s2, 9216 }
  0x1a   : > { %p4889_p1 = scmp.ne.s32.totalorder %s6255_s2, %s4888_s23  ;;  %p4890_p2 = pneg %p5132_p0 }
  0x1b   : > { %p4895_p6 = scmp.lt.u32.totalorder %s4888_s23, %s6255_s2 }
  0x1c   : > { %p4891_p4 = pnand %p4890_p2, %p4889_p1 }
  0x1e   : > { %p4892_p5 = pneg %p4891_p4 }
  0x20   : > { %p4897_p7 = pnand %p4895_p6, %p4892_p5 }
  0x22   : > { %4900 = shalt.err (!%p4897_p7)
}
  0x23   : > { %s4901_s6 = scalar_lea.vmem %s172_s11, 9216  ;;  %p4909_p8 = scmp.lt.s32.totalorder %s172_s11, %s172_s11 }
  0x24   : > { %p4902_p9 = scmp.ne.s32.totalorder %s172_s11, %s4901_s6  ;;  %p4910_p3 = scmp.lt.s32.totalorder %s4901_s6, %s4901_s6 }
  0x26   : > { %p4904_p11 = pnand %p4902_p9, %p4890_p2  ;;  %p4911_p12 = por %p4910_p3, %p4909_p8 }
  0x28   : > { %p4905_p13 = pneg %p4904_p11 }
  0x2a   : > { %p4912_p10 = pnand %p4911_p12, %p4905_p13 }
  0x2c   : > { %4915 = shalt.err (!%p4912_p10)
}
  0x2d   : > { %s5017_s10 = smov 64   ;;  %s5018_s13 = smov 4  }
  0x2e   : > { %4621 = dma.hbm_to_vmem [thread:$0]  (!%p5132_p0), %s6255_s2, 9216, %s172_s11, [#allocation4], %s5017_s10, %s5017_s10, %s5018_s13  }
  0x2f   : > { %p6267_p1 = scmp.ne.s32.totalorder %s6264_s7, 0 }
  0x30   : > { %p6268_p4 = scmp.ne.s32.totalorder (!%p6267_p1), %s6265_s8, 0 }
  0x31   : > { %202 = sbr.rel (%p6267_p1) target bundleno = 972 (0x3cc), region = 36 }
  0x38   : > { %4977 = dma.done.wait (%p6268_p4), [#allocation4], 9216  }
  0x39   : > { %4979 = vsyncadd (%p6268_p4), [#allocation4], 4294958080  ;;  %s227_s23 = sand.u32 1, %s4990_s16   ;;  %v4700_v0 = vld [vmem:[%s6254_s1 + $0x40] sm:$0xff]   ;;  %v4704_v4 = vld [vmem:[%s6254_s1 + $0x48] sm:$0xff]   ;;  %s3709_s11 = sshll.u32 %s5002_s19, 1 }
  0x3a   : > { %s5161_s28 = sshll.u32 %s227_s23, 7  ;;  %v4701_v1 = vld [vmem:[%s6254_s1] sm:$0xff]   ;;  %3949 = vmatprep.subr.bf16.mxu0 %v4700_v0  ;;  %v4705_v5 = vld [vmem:[%s6254_s1 + $0x8] sm:$0xff]   ;;  %v4708_v8 = vld [vmem:[%s6254_s1 + $0x50] sm:$0xff]   ;;  %s231_s14 = sadd.s32 %s4998_s18, %s3709_s11  ;;  %vm368_vm0 = vsmask.f32 7424 }
  0x3b   : > { %v4702_v2 = vld [vmem:[%s6254_s1 + $0xc0] sm:$0xff]   ;;  %3950 = vmatpush3.bf16.msra.mxu0 %v4701_v1  ;;  %v4706_v6 = vld [vmem:[%s6254_s1 + $0xc8] sm:$0xff]   ;;  %v4709_v9 = vld [vmem:[%s6254_s1 + $0x10] sm:$0xff]   ;;  %p232_p3 = scmp.lt.s32.totalorder %s231_s14, 3  ;;  %vm499_vm1 = vcmask 1046528   ;;  %vm2040_vm3 = vcmask 1043456  }
  0x3c   : > { %v4703_v3 = vld [vmem:[%s6254_s1 + $0x80] sm:$0xff]   ;;  %4025 = vmatprep.subr.bf16.mxu1 %v4702_v2  ;;  %3951 = vmatprep.subr.bf16.mxu0 %v4704_v4  ;;  %v4707_v7 = vld [vmem:[%s6254_s1 + $0x88] sm:$0xff]   ;;  %v4710_v10 = vld [vmem:[%s6254_s1 + $0xd0] sm:$0xff]   ;;  %vm1837_vm2 = vsmask.f32 256  ;;  %vm2047_vm5 = vcmask 1040384  }
  0x3d   : > { %4026 = vmatpush3.bf16.msra.mxu1 %v4703_v3  ;;  %v4711_v11 = vld [vmem:[%s6254_s1 + $0x90] sm:$0xff]   ;;  %v4712_v12 = vld [vmem:[%s6254_s1 + $0x58] sm:$0xff]   ;;  %v4716_v16 = vld [vmem:[%s6254_s1 + $0x60] sm:$0xff]   ;;  %s6293_s14 = smov (!%p232_p3, %s231_s14), 3  ;;  %vm2041_vm4 = vsmask.f32 7938 }
  0x3e   : > { %4027 = vmatprep.subr.bf16.mxu1 %v4706_v6  ;;  %v4713_v13 = vld [vmem:[%s6254_s1 + $0x18] sm:$0xff]   ;;  %v4717_v17 = vld [vmem:[%s6254_s1 + $0x20] sm:$0xff]   ;;  %v4720_v20 = vld [vmem:[%s6254_s1 + $0x68] sm:$0xff]   ;;  %s4611_s27 = smul.u32 144, %s6293_s14  ;;  %vm1838_vm6 = vsmask.f32 4368 }
  0x3f   : > { %3952 = vmatpush3.bf16.msra.mxu0 %v4705_v5  ;;  %v4714_v14 = vld [vmem:[%s6254_s1 + $0xd8] sm:$0xff]   ;;  %v4718_v18 = vld [vmem:[%s6254_s1 + $0xe0] sm:$0xff]   ;;  %v4721_v21 = vld [vmem:[%s6254_s1 + $0x28] sm:$0xff]   ;;  %s5906_s11 = scalar_lea.vmem [#allocation6], %s5161_s28  ;;  %p3827_p8 = scmp.ne.s32.totalorder %s4998_s18, 0 }
  0x40   : > { %3953 = vmatprep.subr.bf16.mxu0 %v4708_v8  ;;  %v4715_v15 = vld [vmem:[%s6254_s1 + $0x98] sm:$0xff]   ;;  %v4719_v19 = vld [vmem:[%s6254_s1 + $0xa0] sm:$0xff]   ;;  %v4722_v22 = vld [vmem:[%s6254_s1 + $0xe8] sm:$0xff]   ;;  %s5258_s5 = scalar_lea.vmem %s6253_s0, %s4611_s27 }
  0x41   : > { %4028 = vmatpush3.bf16.msra.mxu1 %v4707_v7  ;;  %v4723_v23 = vld [vmem:[%s6254_s1 + $0xa8] sm:$0xff]   ;;  %v4724_v24 = vld [vmem:[%s6254_s1 + $0x70] sm:$0xff]   ;;  %v4728_v28 = vld [vmem:[%s6254_s1 + $0x78] sm:$0xff]  }
  0x42   : > { %4029 = vmatprep.subr.bf16.mxu1 %v4710_v10  ;;  %v4725_v25 = vld [vmem:[%s6254_s1 + $0x30] sm:$0xff]   ;;  %v4729_v29 = vld [vmem:[%s6254_s1 + $0x38] sm:$0xff]   ;;  %v4731_v31 = vld [vmem:[%s5258_s5] sm:$0xff]  }
  0x43   : > { %3954 = vmatpush3.bf16.msra.mxu0 %v4709_v9  ;;  %v4726_v26 = vld [vmem:[%s6254_s1 + $0xf0] sm:$0xff]   ;;  %v4730_v30 = vld [vmem:[%s6254_s1 + $0xf8] sm:$0xff]   ;;  %v4732_v32 = vld [vmem:[%s5258_s5 + $0x8] ss:$0 sps:$4 sm:$0x11]   ;;  %v370_v34 = vshrl.u32 %v4731_v31, 16 }
  0x44   : > { %3955 = vmatprep.subr.bf16.mxu0 %v4712_v12  ;;  %v4727_v27 = vld [vmem:[%s6254_s1 + $0xb0] sm:$0xff]   ;;  %v4733_v33 = vld [vmem:[%s6254_s1 + $0xb8] sm:$0xff]   ;;  %v372_v35 = vshll.u32 %v4731_v31, 16  ;;  %v377_v36 = vshll.u32 %v4732_v32, 16  ;;  %v4734_v37 = vld [vmem:[%s6254_s1 + $0x140] sm:$0xff]   ;;  %v500_v39 = vrot.slane %v4731_v31, 1 }
  0x45   : > { %4030 = vmatpush3.bf16.msra.mxu1 %v4711_v11  ;;  %v4735_v38 = vld [vmem:[%s5258_s5 + $0xc] sm:$0xff]   ;;  %v501_v42 = vrot.slane %v4732_v32, 1  ;;  %v4737_v46 = vld [vmem:[%s5258_s5 + $0x14] ss:$0 sps:$4 sm:$0x11]   ;;  %v5274_v47 = vld [vmem:[%s5258_s5 + $0x18] sm:$0xff]  }
  0x46   : > { %4031 = vmatprep.subr.bf16.mxu1 %v4714_v14  ;;  %v374_v40 = vrot.slane %v372_v35, 1  ;;  %v379_v41 = vrot.slane %v377_v36, 1  ;;  %1317 = vmatprep.mubr.bf16.mxu1 %v4735_v38  ;;  %v382_v43 = vshrl.u32 %v4735_v38, 16  ;;  %v384_v44 = vshll.u32 %v4735_v38, 16  ;;  %v4736_v48 = vld [vmem:[%s6254_s1 + $0x100] sm:$0xff]   ;;  %v4739_v55 = vld [vmem:[%s6254_s1 + $0x148] sm:$0xff]   ;;  %vm5740_vm7 = vmand %vm2040_vm3, %vm2041_vm4 }
  0x47   : > { %3956 = vmatpush3.bf16.msra.mxu0 %v4713_v13  ;;  %v502_v49 = vsel %vm499_vm1, %v500_v39, %v501_v42  ;;  %v389_v52 = vshll.u32 %v4737_v46, 16  ;;  %v503_v53 = vrot.slane %v4735_v38, 1  ;;  %v504_v54 = vrot.slane %v4737_v46, 1  ;;  %v4740_v57 = vld [vmem:[%s6254_s1 + $0x108] sm:$0xff]   ;;  %v4743_v2 = vld [vmem:[%s6254_s1 + $0x150] sm:$0xff]   ;;  %v4747_v12 = vld [vmem:[%s6254_s1 + $0x158] sm:$0xff]  }
  0x48   : > { %3957 = vmatprep.subr.bf16.mxu0 %v4716_v16  ;;  %v375_v45 = vor.u32 %v374_v40, %v370_v34  ;;  %v386_v50 = vrot.slane %v384_v44, 1  ;;  %v4741_v59 = vld [vmem:[%s5258_s5 + $0x20] ss:$0 sps:$4 sm:$0x11]   ;;  %v394_v60 = vshrl.u32 %v5274_v47, 16  ;;  %v396_v61 = vshll.u32 %v5274_v47, 16  ;;  %vm5746_vm8 = vmand %vm2047_vm5, %vm1837_vm2 }
  0x49   : > { %4032 = vmatpush3.bf16.msra.mxu1 %v4715_v15  ;;  %v391_v58 = vrot.slane %v389_v52, 1  ;;  %v5292_v62 = vld [vmem:[%s5258_s5 + $0x24] sm:$0xff]   ;;  %v401_v1 = vshll.u32 %v4741_v59, 16  ;;  %v5302_v3 = vsel %vm499_vm1, %v503_v53, %v504_v54  ;;  %v4744_v6 = vld [vmem:[%s6254_s1 + $0x110] sm:$0xff]   ;;  %v506_v13 = vrot.slane %v5274_v47, 1  ;;  %vm5752_vm9 = vmor %vm1837_vm2, %vm1838_vm6 }
  0x4a   : > { %4033 = vmatprep.subr.bf16.mxu1 %v4718_v18  ;;  %v380_v51 = vsel %vm368_vm0, %v375_v45, %v379_v41  ;;  %v387_v56 = vor.u32 %v386_v50, %v382_v43  ;;  %v398_v0 = vrot.slane %v396_v61, 1  ;;  %v5308_v7 = vld [vmem:[%s5258_s5 + $0x30] sm:$0xff]   ;;  %v4745_v8 = vld [vmem:[%s5258_s5 + $0x2c] ss:$0 sps:$4 sm:$0x11]   ;;  %v408_v9 = vshll.u32 %v5292_v62, 16  ;;  %vm5784_vm10 = vmand %vm2047_vm5, %vm2041_vm4 }
  0x4b   : > { %3958 = vmatpush3.bf16.msra.mxu0 %v4717_v17  ;;  %1204 = vmatprep.mubr.bf16.mxu0 %v380_v51  ;;  %v403_v5 = vrot.slane %v401_v1, 1  ;;  %v406_v11 = vshrl.u32 %v5292_v62, 16  ;;  %v507_v14 = vrot.slane %v4741_v59, 1  ;;  %v413_v16 = vshll.u32 %v4745_v8, 16  ;;  %v4749_v18 = vld [vmem:[%s6254_s1 + $0x118] sm:$0xff]   ;;  %v4756_v34 = vld [vmem:[%s6254_s1 + $0x120] sm:$0xff]  }
  0x4c   : > { %3959 = vmatprep.subr.bf16.mxu0 %v4720_v20  ;;  %v5295_v63 = vsel %vm368_vm0, %v387_v56, %v391_v58  ;;  %v399_v4 = vor.u32 %v398_v0, %v394_v60  ;;  %v410_v15 = vrot.slane %v408_v9, 1  ;;  %v4748_v17 = vld [vmem:[%s5258_s5 + $0x38] ss:$0 sps:$4 sm:$0x11]   ;;  %v510_v32 = vrot.slane %v4745_v8, 1  ;;  %v5364_v40 = vld [vmem:[%s5258_s5 + $0x48] sm:$0xff]  }
  0x4d   : > { %4034 = vmatpush3.bf16.msra.mxu1 %v4719_v19  ;;  %v415_v20 = vrot.slane %v413_v16, 1  ;;  %v4759_v41 = vld [vmem:[%s6254_s1 + $0x188] sm:$0xff]   ;;  %v512_v42 = vrot.slane %v5308_v7, 1  ;;  %v5384_v51 = vld [vmem:[%s5258_s5 + $0x50] ss:$0 sps:$4 sm:$0x11]  }
  0x4e   : > { %4035 = vmatprep.subr.bf16.mxu1 %v4722_v22  ;;  %v5314_v10 = vsel %vm368_vm0, %v399_v4, %v403_v5  ;;  %v411_v19 = vor.u32 %v410_v15, %v406_v11  ;;  %v5329_v22 = vsel %vm499_vm1, %v506_v13, %v507_v14  ;;  %v4762_v50 = vld [vmem:[%s6254_s1 + $0x128] sm:$0xff]   ;;  %v444_v52 = vshll.u32 %v5364_v40, 16  ;;  %v4764_v53 = vld [vmem:[%s6254_s1 + $0x1d0] sm:$0xff]   ;;  %v5419_v8 = vld [vmem:[%s5258_s5 + $0x5c] ss:$0 sps:$4 sm:$0x11]  }
  0x4f   : > { %3960 = vmatpush3.bf16.msra.mxu0 %v4721_v21  ;;  %v420_v21 = vshll.u32 %v5308_v7, 16  ;;  %v442_v58 = vshrl.u32 %v5364_v40, 16  ;;  %v5399_v60 = vld [vmem:[%s5258_s5 + $0x54] sm:$0xff]   ;;  %v449_v1 = vshll.u32 %v5384_v51, 16  ;;  %v4773_v14 = vld [vmem:[%s6254_s1 + $0x1e0] sm:$0xff]   ;;  %v518_v16 = vrot.slane %v5364_v40, 1 }
  0x50   : > { %3961 = vmatprep.subr.bf16.mxu0 %v4724_v24  ;;  %v4752_v24 = vld [vmem:[%s6254_s1 + $0x180] sm:$0xff]   ;;  %v446_v59 = vrot.slane %v444_v52, 1  ;;  %v4767_v61 = vld [vmem:[%s6254_s1 + $0x170] sm:$0xff]   ;;  %v4771_v9 = vld [vmem:[%s6254_s1 + $0x198] sm:$0xff]   ;;  %v456_v13 = vshll.u32 %v5399_v60, 16 }
  0x51   : > { %4036 = vmatpush3.bf16.msra.mxu1 %v4723_v23  ;;  %v4751_v23 = vld [vmem:[%s6254_s1 + $0x1c0] sm:$0xff]   ;;  %v4777_v52 = vld [vmem:[%s5258_s5 + $0x74] ss:$0 sps:$4 sm:$0x11]  }
  0x52   : > { %4037 = vmatprep.subr.bf16.mxu1 %v4726_v26  ;;  %v5342_v26 = vsel %vm368_vm0, %v411_v19, %v415_v20  ;;  %v447_v11 = vor.u32 %v446_v59, %v442_v58  ;;  %v4775_v19 = vld [vmem:[%s6254_s1 + $0x178] sm:$0xff]  }
  0x53   : > { %3962 = vmatpush3.bf16.msra.mxu0 %v4725_v25  ;;  %v5338_v25 = vld [vmem:[%s5258_s5 + $0x3c] sm:$0xff]  }
  0x54   : > { %3963 = vmatprep.subr.bf16.mxu0 %v4728_v28  ;;  %v422_v28 = vrot.slane %v420_v21, 1  ;;  %v432_v35 = vshll.u32 %v5338_v25, 16  ;;  %v430_v43 = vshrl.u32 %v5338_v25, 16  ;;  %v515_v4 = vrot.slane %v5338_v25, 1 }
  0x55   : > { %4038 = vmatpush3.bf16.msra.mxu1 %v4727_v27  ;;  %v418_v27 = vshrl.u32 %v5308_v7, 16  ;;  %v458_v21 = vrot.slane %v456_v13, 1  ;;  %v528_v13 = vrot.slane %v4777_v52, 1 }
  0x56   : > { %4039 = vmatprep.subr.bf16.mxu1 %v4730_v30  ;;  %v4754_v30 = vld [vmem:[%s6254_s1 + $0x160] sm:$0xff]   ;;  %v434_v44 = vrot.slane %v432_v35, 1 }
  0x57   : > { %3964 = vmatpush3.bf16.msra.mxu0 %v4729_v29  ;;  %v425_v29 = vshll.u32 %v4748_v17, 16  ;;  %v423_v36 = vor.u32 %v422_v28, %v418_v27  ;;  %v4776_v27 = vld [vmem:[%s6254_s1 + $0x1e8] sm:$0xff]   ;;  %v519_v28 = vrot.slane %v5384_v51, 1  ;;  %v4785_v51 = vld [vmem:[%s6254_s1 + $0x200] sm:$0xff]  }
  0x58   : > { %4101 = vmatprep.subr.bf16.mxu0 %v4734_v37  ;;  %v435_v54 = vor.u32 %v434_v44, %v430_v43  ;;  %v4783_v44 = vld [vmem:[%s6254_s1 + $0x1f8] sm:$0xff]  }
  0x59   : > { %4040 = vmatpush3.bf16.msra.mxu1 %v4733_v33  ;;  %v4753_v33 = vld [vmem:[%s5258_s5 + $0x44] ss:$0 sps:$4 sm:$0x11]   ;;  %v427_v37 = vrot.slane %v425_v29, 1 }
  0x5a   : > { %1205 = vmatmul.mubr.bf16.vlgmr.msra.gmra.mrb[0].mxu0 %v4731_v31  ;;  %4177 = vmatprep.subr.bf16.mxu1 %v4751_v23  ;;  %v509_v31 = vrot.slane %v5292_v62, 1  ;;  %v437_v46 = vshll.u32 %v4753_v33, 16  ;;  %v516_v5 = vrot.slane %v4753_v33, 1  ;;  %v461_v23 = vshll.u32 %v5419_v8, 16 }
  0x5b   : > { %4102 = vmatpush3.bf16.msra.mxu0 %v4736_v48  ;;  %1212 = vmatprep.mubr.bf16.mxu0 %v5295_v63  ;;  %v5373_v45 = vsel %vm368_vm0, %v423_v36, %v427_v37  ;;  %v4761_v48 = vld [vmem:[%s6254_s1 + $0x168] sm:$0xff]   ;;  %v4781_v36 = vld [vmem:[%s6254_s1 + $0x1f0] sm:$0xff]   ;;  %v5468_v37 = vsel %vm499_vm1, %v518_v16, %v519_v28 }
  0x5c   : > { %1318 = vmatmul.mubr.bf16.vlgmr.msra.gmra.mrb[0].mxu1 %v502_v49  ;;  %4103 = vmatprep.subr.bf16.mxu0 %v4739_v55  ;;  %v5361_v39 = vsel %vm499_vm1, %v509_v31, %v510_v32  ;;  %v513_v49 = vrot.slane %v4748_v17, 1  ;;  %v439_v55 = vrot.slane %v437_v46, 1  ;;  %v5430_v15 = vsel %vm499_vm1, %v515_v4, %v516_v5  ;;  %v4774_v17 = vld [vmem:[%s6254_s1 + $0x1a0] sm:$0xff]   ;;  %v4770_v29 = vld [vmem:[%s5258_s5 + $0x68] ss:$0 sps:$4 sm:$0x11]  }
  0x5d   : > { %1325 = vmatprep.mubr.bf16.mxu1 %v5274_v47  ;;  %4178 = vmatpush3.bf16.msra.mxu1 %v4752_v24  ;;  %v5446_v24 = vld [vmem:[%s5258_s5 + $0x60] sm:$0xff]   ;;  %v4779_v31 = vld [vmem:[%s6254_s1 + $0x1a8] sm:$0xff]   ;;  %v463_v33 = vrot.slane %v461_v23, 1  ;;  %v473_v43 = vshll.u32 %v4770_v29, 16  ;;  %v525_v4 = vrot.slane %v4770_v29, 1 }
  0x5e   : > { %v5392_v56 = vsel %vm499_vm1, %v512_v42, %v513_v49  ;;  %v5406_v0 = vsel %vm368_vm0, %v435_v54, %v439_v55  ;;  %v468_v35 = vshll.u32 %v5446_v24, 16  ;;  %v4782_v42 = vld [vmem:[%s6254_s1 + $0x1b0] sm:$0xff]   ;;  %v4784_v49 = vld [vmem:[%s6254_s1 + $0x1b8] sm:$0xff]   ;;  %v4786_v16 = vld [vmem:[%s6254_s1 + $0x208] sm:$0xff]  }
  0x5f   : > { %4104 = vmatpush3.bf16.msra.mxu0 %v4740_v57  ;;  %v4766_v57 = vld [vmem:[%s6254_s1 + $0x190] sm:$0xff]   ;;  %v475_v54 = vrot.slane %v473_v43, 1 }
  0x60   : > { %4105 = vmatprep.subr.bf16.mxu0 %v4743_v2  ;;  %v4768_v2 = vld [vmem:[%s6254_s1 + $0x130] sm:$0xff]  }
  0x62   : > { %1213 = vmatmul.mubr.bf16.gmra.mrb[4].mxu0 %v4735_v38  ;;  %v4757_v38 = vld [vmem:[%s6254_s1 + $0x1c8] sm:$0xff]  }
  0x63   : > { %1220 = vmatprep.mubr.bf16.mxu0 %v5314_v10  ;;  %4106 = vmatpush3.bf16.msra.mxu0 %v4744_v6  ;;  %v4769_v6 = vld [vmem:[%s6254_s1 + $0x1d8] sm:$0xff]  }
  0x64   : > { %1326 = vmatmul.mubr.bf16.gmra.mrb[4].mxu1 %v5302_v3  ;;  %4107 = vmatprep.subr.bf16.mxu0 %v4747_v12  ;;  %v451_v12 = vrot.slane %v449_v1, 1  ;;  %v485_v1 = vshll.u32 %v4777_v52, 16 }
  0x65   : > { %1333 = vmatprep.mubr.bf16.mxu1 %v5292_v62  ;;  %4179 = vmatprep.subr.bf16.mxu1 %v4757_v38  ;;  %v466_v38 = vshrl.u32 %v5446_v24, 16 }
  0x66   : > { %4180 = vmatpush3.bf16.msra.mxu1 %v4759_v41  ;;  %v5442_v20 = vsel %vm368_vm0, %v447_v11, %v451_v12  ;;  %v5472_v41 = vld [vmem:[%s5258_s5 + $0x6c] sm:$0xff]  }
  0x67   : > { %4108 = vmatpush3.bf16.msra.mxu0 %v4749_v18  ;;  %4181 = vmatprep.subr.bf16.mxu1 %v4764_v53  ;;  %v454_v18 = vshrl.u32 %v5399_v60, 16  ;;  %v480_v55 = vshll.u32 %v5472_v41, 16  ;;  %v478_v58 = vshrl.u32 %v5472_v41, 16  ;;  %v527_v12 = vrot.slane %v5472_v41, 1 }
  0x68   : > { %4109 = vmatprep.subr.bf16.mxu0 %v4754_v30  ;;  %v4778_v30 = vld [vmem:[%s6254_s1 + $0x138] sm:$0xff]  }
  0x69   : > { %v459_v32 = vor.u32 %v458_v21, %v454_v18  ;;  %v4794_v18 = vld [vmem:[%s5258_s5 + $0x84] sm:$0xff]  }
  0x6a   : > { %1221 = vmatmul.mubr.bf16.gmra.mrb[8].mxu0 %v5274_v47  ;;  %4182 = vmatpush3.bf16.msra.mxu1 %v4766_v57  ;;  %v576_v23 = vshrl.u32 %v4794_v18, 16 }
  0x6b   : > { %1228 = vmatprep.mubr.bf16.mxu0 %v5342_v26  ;;  %4110 = vmatpush3.bf16.msra.mxu0 %v4756_v34  ;;  %v521_v34 = vrot.slane %v5399_v60, 1  ;;  %v5482_v46 = vsel %vm368_vm0, %v459_v32, %v463_v33 }
  0x6c   : > { %1334 = vmatmul.mubr.bf16.gmra.mrb[8].mxu1 %v5329_v22  ;;  %4111 = vmatprep.subr.bf16.mxu0 %v4761_v48  ;;  %v470_v48 = vrot.slane %v468_v35, 1 }
  0x6d   : > { %1341 = vmatprep.mubr.bf16.mxu1 %v5308_v7  ;;  %4183 = vmatprep.subr.bf16.mxu1 %v4769_v6  ;;  %v487_v6 = vrot.slane %v485_v1, 1 }
  0x6e   : > { %4184 = vmatpush3.bf16.msra.mxu1 %v4771_v9  ;;  %v471_v53 = vor.u32 %v470_v48, %v466_v38  ;;  %v5512_v9 = vld [vmem:[%s5258_s5 + $0x78] sm:$0xff]  }
  0x6f   : > { %4112 = vmatpush3.bf16.msra.mxu0 %v4762_v50  ;;  %4185 = vmatprep.subr.bf16.mxu1 %v4773_v14  ;;  %v522_v50 = vrot.slane %v5419_v8, 1  ;;  %v5523_v14 = vsel %vm499_vm1, %v527_v12, %v528_v13 }
  0x70   : > { %4113 = vmatprep.subr.bf16.mxu0 %v4767_v61  ;;  %v5502_v59 = vsel %vm368_vm0, %v471_v53, %v475_v54  ;;  %v482_v61 = vrot.slane %v480_v55, 1 }
  0x71   : > { %v5497_v57 = vsel %vm499_vm1, %v521_v34, %v522_v50  ;;  %v588_v34 = vrot.slane %v4794_v18, 1 }
  0x72   : > { %1229 = vmatmul.mubr.bf16.gmra.mrb[12].mxu0 %v5292_v62  ;;  %4186 = vmatpush3.bf16.msra.mxu1 %v4774_v17  ;;  %v483_v5 = vor.u32 %v482_v61, %v478_v58  ;;  %v4787_v17 = vld [vmem:[%s6254_s1 + $0x210] sm:$0xff]  }
  0x73   : > { %1236 = vmatprep.mubr.bf16.mxu0 %v5373_v45  ;;  %4114 = vmatpush3.bf16.msra.mxu0 %v4768_v2  ;;  %v524_v2 = vrot.slane %v5446_v24, 1 }
  0x74   : > { %1342 = vmatmul.mubr.bf16.gmra.mrb[12].mxu1 %v5361_v39  ;;  %4115 = vmatprep.subr.bf16.mxu0 %v4775_v19  ;;  %v5516_v11 = vsel %vm368_vm0, %v483_v5, %v487_v6  ;;  %v4795_v19 = vld [vmem:[%s5258_s5 + $0x8c] ss:$0 sps:$4 sm:$0x11]  }
  0x75   : > { %1349 = vmatprep.mubr.bf16.mxu1 %v5338_v25  ;;  %4187 = vmatprep.subr.bf16.mxu1 %v4776_v27  ;;  %v5509_v8 = vsel %vm499_vm1, %v524_v2, %v525_v4  ;;  %v583_v28 = vshll.u32 %v4795_v19, 16  ;;  %v589_v35 = vrot.slane %v4795_v19, 1 }
  0x76   : > { %4188 = vmatpush3.bf16.msra.mxu1 %v4779_v31 }
  0x77   : > { %4116 = vmatpush3.bf16.msra.mxu0 %v4778_v30  ;;  %4189 = vmatprep.subr.bf16.mxu1 %v4781_v36  ;;  %v585_v29 = vrot.slane %v583_v28, 1  ;;  %v562_v30 = vrot.slane %v5512_v9, 1  ;;  %v590_v36 = vsel %vm499_vm1, %v588_v34, %v589_v35 }
  0x78   : > { %4543 = vmatprep.subr.bf16.mxu0 %v4785_v51 }
  0x7a   : > { %1237 = vmatmul.mubr.bf16.gmra.mrb[16].mxu0 %v5308_v7  ;;  %4190 = vmatpush3.bf16.msra.mxu1 %v4782_v42 }
  0x7b   : > { %1244 = vmatprep.mubr.bf16.mxu0 %v5406_v0  ;;  %4191 = vmatprep.subr.bf16.mxu1 %v4783_v44 }
  0x7c   : > { %1350 = vmatmul.mubr.bf16.gmra.mrb[16].mxu1 %v5392_v56 }
  0x7d   : > { %1357 = vmatprep.mubr.bf16.mxu1 %v5364_v40 }
  0x7e   : > { %4192 = vmatpush3.bf16.msra.mxu1 %v4784_v49 }
  0x82   : > { %1245 = vmatmul.mubr.bf16.gmra.mrb[20].mxu0 %v5338_v25 }
  0x83   : > { %1252 = vmatprep.mubr.bf16.mxu0 %v5442_v20 }
  0x84   : > { %1358 = vmatmul.mubr.bf16.gmra.mrb[20].mxu1 %v5430_v15 }
  0x85   : > { %1365 = vmatprep.mubr.bf16.mxu1 %v5399_v60 }
  0x8a   : > { %1253 = vmatmul.mubr.bf16.gmra.mrb[24].mxu0 %v5364_v40 }
  0x8b   : > { %1260 = vmatprep.mubr.bf16.mxu0 %v5482_v46 }
  0x8c   : > { %1366 = vmatmul.mubr.bf16.gmra.mrb[24].mxu1 %v5468_v37 }
  0x8d   : > { %1373 = vmatprep.mubr.bf16.mxu1 %v5446_v24 }
  0x92   : > { %1261 = vmatmul.mubr.bf16.gmra.mrb[28].mxu0 %v5399_v60 }
  0x93   : > { %1268 = vmatprep.mubr.bf16.mxu0 %v5502_v59 }
  0x94   : > { %1374 = vmatmul.mubr.bf16.gmra.mrb[28].mxu1 %v5497_v57 }
  0x95   : > { %1381 = vmatprep.mubr.bf16.mxu1 %v5472_v41 }
  0x9a   : > { %1269 = vmatmul.mubr.bf16.gmra.mrb[32].mxu0 %v5446_v24 }
  0x9b   : > { %1276 = vmatprep.mubr.bf16.mxu0 %v5516_v11 }
  0x9c   : > { %1382 = vmatmul.mubr.bf16.gmra.mrb[32].mxu1 %v5509_v8 }
  0x9d   : > { %1389 = vmatprep.mubr.bf16.mxu1 %v5512_v9 }
  0xa2   : > { %1277 = vmatmul.mubr.bf16.gmra.mrb[36].mxu0 %v5472_v41 }
  0xa3   : > { %1430 = vmatprep.mubr.bf16.mxu0 %v5302_v3  ;;  %v4791_v3 = vld [vmem:[%s6254_s1 + $0x230] sm:$0xff]  }
  0xa4   : > { %1390 = vmatmul.mubr.bf16.gmra.mrb[36].mxu1 %v5523_v14 }
  0xa5   : > { %1543 = vmatprep.mubr.bf16.mxu1 %v5314_v10 }
  0xaa   : > { %1431 = vmatmul.mubr.bf16.vlgmr.msra.gmra.mrb[40].mxu0 %v5295_v63  ;;  %v4789_v63 = vld [vmem:[%s6254_s1 + $0x220] sm:$0xff]  }
  0xab   : > { %4544 = vmatpush3.bf16.msra.mxu0 %v4785_v51  ;;  %1438 = vmatprep.mubr.bf16.mxu0 %v5329_v22 }
  0xac   : > { %1544 = vmatmul.mubr.bf16.vlgmr.msra.gmra.mrb[40].mxu1 %v5274_v47  ;;  %4545 = vmatprep.subr.bf16.mxu0 %v4786_v16  ;;  %v4788_v47 = vld [vmem:[%s6254_s1 + $0x218] sm:$0xff]  }
  0xad   : > { %1551 = vmatprep.mubr.bf16.mxu1 %v5342_v26 }
  0xaf   : > { %4546 = vmatpush3.bf16.msra.mxu0 %v4786_v16 }
  0xb0   : > { %4547 = vmatprep.subr.bf16.mxu0 %v4787_v17 }
  0xb2   : > { %1439 = vmatmul.mubr.bf16.gmra.mrb[44].mxu0 %v5314_v10  ;;  %v4792_v10 = vld [vmem:[%s5258_s5 + $0x80] ss:$0 sps:$4 sm:$0x11]  }
  0xb3   : > { %1446 = vmatprep.mubr.bf16.mxu0 %v5361_v39  ;;  %4548 = vmatpush3.bf16.msra.mxu0 %v4787_v17  ;;  %v563_v31 = vrot.slane %v4792_v10, 1 }
  0xb4   : > { %1552 = vmatmul.mubr.bf16.gmra.mrb[44].mxu1 %v5292_v62  ;;  %4549 = vmatprep.subr.bf16.mxu0 %v4788_v47  ;;  %v4790_v62 = vld [vmem:[%s6254_s1 + $0x228] sm:$0xff]  }
  0xb5   : > { %1559 = vmatprep.mubr.bf16.mxu1 %v5373_v45  ;;  %v564_v33 = vsel %vm499_vm1, %v562_v30, %v563_v31 }
  0xb7   : > { %4550 = vmatpush3.bf16.msra.mxu0 %v4788_v47 }
  0xb8   : > { %4551 = vmatprep.subr.bf16.mxu0 %v4789_v63 }
  0xba   : > { %1447 = vmatmul.mubr.bf16.gmra.mrb[48].mxu0 %v5342_v26  ;;  %v550_v26 = vshrl.u32 %v5512_v9, 16 }
  0xbb   : > { %1454 = vmatprep.mubr.bf16.mxu0 %v5392_v56  ;;  %4552 = vmatpush3.bf16.msra.mxu0 %v4789_v63 }
  0xbc   : > { %1560 = vmatmul.mubr.bf16.gmra.mrb[48].mxu1 %v5308_v7  ;;  %4553 = vmatprep.subr.bf16.mxu0 %v4790_v62  ;;  %v4793_v7 = vld [vmem:[%s6254_s1 + $0x238] sm:$0xff]  }
  0xbd   : > { %1567 = vmatprep.mubr.bf16.mxu1 %v5406_v0 }
  0xbf   : > { %4554 = vmatpush3.bf16.msra.mxu0 %v4790_v62 }
  0xc0   : > { %4555 = vmatprep.subr.bf16.mxu0 %v4791_v3 }
  0xc2   : > { %1455 = vmatmul.mubr.bf16.gmra.mrb[52].mxu0 %v5373_v45  ;;  %v557_v45 = vshll.u32 %v4792_v10, 16 }
  0xc3   : > { %1462 = vmatprep.mubr.bf16.mxu0 %v5430_v15  ;;  %4556 = vmatpush3.bf16.msra.mxu0 %v4791_v3 }
  0xc4   : > { %1568 = vmatmul.mubr.bf16.gmra.mrb[52].mxu1 %v5338_v25  ;;  %4557 = vmatprep.subr.bf16.mxu0 %v4793_v7  ;;  %v552_v25 = vshll.u32 %v5512_v9, 16 }
  0xc5   : > { %1575 = vmatprep.mubr.bf16.mxu1 %v5442_v20 }
  0xc7   : > { %4558 = vmatpush3.bf16.msra.mxu0 %v4793_v7 }
  0xca   : > { %1463 = vmatmul.mubr.bf16.gmra.mrb[56].mxu0 %v5406_v0  ;;  %v559_v0 = vrot.slane %v557_v45, 1 }
  0xcb   : > { %1470 = vmatprep.mubr.bf16.mxu0 %v5468_v37 }
  0xcc   : > { %1576 = vmatmul.mubr.bf16.gmra.mrb[56].mxu1 %v5364_v40  ;;  %v554_v40 = vrot.slane %v552_v25, 1 }
  0xcd   : > { %1583 = vmatprep.mubr.bf16.mxu1 %v5482_v46 }
  0xd2   : > { %1471 = vmatmul.mubr.bf16.gmra.mrb[60].mxu0 %v5442_v20  ;;  %v578_v20 = vshll.u32 %v4794_v18, 16 }
  0xd3   : > { %1478 = vmatprep.mubr.bf16.mxu0 %v5497_v57 }
  0xd4   : > { %1584 = vmatmul.mubr.bf16.gmra.mrb[60].mxu1 %v5399_v60  ;;  %v555_v60 = vor.u32 %v554_v40, %v550_v26  ;;  %v580_v27 = vrot.slane %v578_v20, 1 }
  0xd5   : > { %1591 = vmatprep.mubr.bf16.mxu1 %v5502_v59 }
  0xd6   : > { %v560_v21 = vsel %vm368_vm0, %v555_v60, %v559_v0 }
  0xda   : > { %1479 = vmatmul.mubr.bf16.gmra.mrb[64].mxu0 %v5482_v46 }
  0xdb   : > { %1486 = vmatprep.mubr.bf16.mxu0 %v5509_v8 }
  0xdc   : > { %1592 = vmatmul.mubr.bf16.gmra.mrb[64].mxu1 %v5446_v24  ;;  %v581_v24 = vor.u32 %v580_v27, %v576_v23 }
  0xdd   : > { %1599 = vmatprep.mubr.bf16.mxu1 %v5516_v11 }
  0xde   : > { %v586_v32 = vsel %vm368_vm0, %v581_v24, %v585_v29 }
  0xe2   : > { %1487 = vmatmul.mubr.bf16.gmra.mrb[68].mxu0 %v5502_v59 }
  0xe3   : > { %1494 = vmatprep.mubr.bf16.mxu0 %v5523_v14 }
  0xe4   : > { %1600 = vmatmul.mubr.bf16.gmra.mrb[68].mxu1 %v5472_v41 }
  0xe5   : > { %1607 = vmatprep.mubr.bf16.mxu1 %v560_v21 }
  0xea   : > { %1495 = vmatmul.mubr.bf16.gmra.mrb[72].mxu0 %v5516_v11 }
  0xeb   : > { %1502 = vmatprep.mubr.bf16.mxu0 %v564_v33 }
  0xec   : > { %1608 = vmatmul.mubr.bf16.gmra.mrb[72].mxu1 %v5512_v9 }
  0xed   : > { %1615 = vmatprep.mubr.bf16.mxu1 %v586_v32 }
  0xf2   : > { %1503 = vmatmul.mubr.bf16.gmra.mrb[76].mxu0 %v560_v21 }
  0xf3   : > { %4559 = vmatprep.mubr.bf16.mxu0 %v5329_v22  ;;  %v736_v22 = vlaneseq }
  0xf4   : > { %1616 = vmatmul.mubr.bf16.gmra.mrb[76].mxu1 %v4794_v18 }
  0xfa   : > { %4560 = vmatmul.mubr.bf16.vlgmr.msra.gmra.mrb[80].mxu0 %v5361_v39  ;;  %v5601_v39 = vshrl.u32 %v736_v22, 7 }
  0xfb   : > { %4563 = vmatprep.mubr.bf16.mxu0 %v5392_v56 }
  0xfc   : > { %v738_v56 = vsub.s32 0, %v5601_v39 }
 0x102   : > { %4564 = vmatmul.mubr.bf16.gmra.mrb[84].mxu0 %v5430_v15  ;;  %v5607_v15 = vld [vmem:[%s6256_s3] sm:$0x3] }
 0x103   : > { %4567 = vmatprep.mubr.bf16.mxu0 %v5468_v37  ;;  %v5610_v42 = vrot.slane %v5607_v15, %v738_v56 }
 0x10a   : > { %4568 = vmatmul.mubr.bf16.gmra.mrb[88].mxu0 %v5497_v57 }
 0x10b   : > { %4571 = vmatprep.mubr.bf16.mxu0 %v5509_v8 }
 0x112   : > { %4572 = vmatmul.mubr.bf16.gmra.mrb[92].mxu0 %v5523_v14 }
 0x113   : > { %4575 = vmatprep.mubr.bf16.mxu0 %v564_v33 }
 0x11a   : > { %4576 = vmatmul.mubr.bf16.gmra.mrb[96].mxu0 %v590_v36 }
 0x12d   : > { %v3965_v41 = vpop.f32.mrb[0].mxu0 }
 0x12e   : > { %v3966_v46 = vpop.f32.mrb[1].mxu0 }
 0x12f   : > { %v4041_v37 = vpop.f32.mrb[0].mxu1  ;;  %v3967_v49 = vadd.f32 %v3966_v46, %v3965_v41  ;;  %v3968_v50 = vpop.f32.mrb[2].mxu0 }
 0x130   : > { %v4042_v38 = vpop.f32.mrb[1].mxu1  ;;  %v3969_v52 = vpop.f32.mrb[3].mxu0 }
 0x131   : > { %v4043_v43 = vadd.f32 %v4042_v38, %v4041_v37  ;;  %v4044_v44 = vpop.f32.mrb[2].mxu1  ;;  %v1207_v53 = vadd.f32 %v3967_v49, %v5610_v42  ;;  %v3970_v54 = vadd.f32 %v3969_v52, %v3968_v50 }
 0x132   : > { %v4045_v48 = vpop.f32.mrb[3].mxu1 }
 0x133   : > { %v4046_v51 = vadd.f32 %v4045_v48, %v4044_v44  ;;  %v1210_v55 = vadd.f32 %v3970_v54, %v5610_v42  ;;  %v5614_v57 = vadd.f32 %v4043_v43, %v1207_v53 }
 0x135   : > { %v5616_v61 = vadd.f32 %v4046_v51, %v1210_v55  ;;  %v3971_v1 = vpop.f32.mrb[4].mxu0 }
 0x136   : > { %v3972_v5 = vpop.f32.mrb[5].mxu0 }
 0x137   : > { %v4047_v58 = vpop.f32.mrb[4].mxu1  ;;  %v3973_v8 = vadd.f32 %v3972_v5, %v3971_v1  ;;  %v3974_v9 = vpop.f32.mrb[6].mxu0 }
 0x138   : > { %v4048_v59 = vpop.f32.mrb[5].mxu1  ;;  %v3975_v12 = vpop.f32.mrb[7].mxu0 }
 0x139   : > { %v4049_v2 = vadd.f32 %v4048_v59, %v4047_v58  ;;  %v4050_v4 = vpop.f32.mrb[6].mxu1  ;;  %v1215_v13 = vadd.f32 %v3973_v8, %v5610_v42  ;;  %v3976_v14 = vadd.f32 %v3975_v12, %v3974_v9 }
 0x13a   : > { %v4051_v6 = vpop.f32.mrb[7].mxu1 }
 0x13b   : > { %v4052_v11 = vadd.f32 %v4051_v6, %v4050_v4  ;;  %v1218_v16 = vadd.f32 %v3976_v14, %v5610_v42  ;;  %v5620_v17 = vadd.f32 %v4049_v2, %v1215_v13 }
 0x13d   : > { %v5622_v62 = vadd.f32 %v4052_v11, %v1218_v16  ;;  %v3977_v3 = vpop.f32.mrb[8].mxu0 }
 0x13e   : > { %v3978_v25 = vpop.f32.mrb[9].mxu0 }
 0x13f   : > { %v4053_v47 = vpop.f32.mrb[8].mxu1  ;;  %v3979_v40 = vadd.f32 %v3978_v25, %v3977_v3  ;;  %v3980_v45 = vpop.f32.mrb[10].mxu0 }
 0x140   : > { %v4054_v63 = vpop.f32.mrb[9].mxu1  ;;  %v3981_v60 = vpop.f32.mrb[11].mxu0 }
 0x141   : > { %v4055_v7 = vadd.f32 %v4054_v63, %v4053_v47  ;;  %v4056_v10 = vpop.f32.mrb[10].mxu1  ;;  %v1223_v0 = vadd.f32 %v3979_v40, %v5610_v42  ;;  %v3982_v19 = vadd.f32 %v3981_v60, %v3980_v45 }
 0x142   : > { %v4057_v26 = vpop.f32.mrb[11].mxu1 }
 0x143   : > { %v4058_v18 = vadd.f32 %v4057_v26, %v4056_v10  ;;  %v1226_v20 = vadd.f32 %v3982_v19, %v5610_v42  ;;  %v5626_v21 = vadd.f32 %v4055_v7, %v1223_v0 }
 0x145   : > { %v5628_v28 = vadd.f32 %v4058_v18, %v1226_v20  ;;  %v3983_v24 = vpop.f32.mrb[12].mxu0 }
 0x146   : > { %v3984_v31 = vpop.f32.mrb[13].mxu0 }
 0x147   : > { %v4059_v23 = vpop.f32.mrb[12].mxu1  ;;  %v3985_v33 = vadd.f32 %v3984_v31, %v3983_v24  ;;  %v3986_v34 = vpop.f32.mrb[14].mxu0 }
 0x148   : > { %v4060_v27 = vpop.f32.mrb[13].mxu1  ;;  %v3987_v36 = vpop.f32.mrb[15].mxu0 }
 0x149   : > { %v4061_v29 = vadd.f32 %v4060_v27, %v4059_v23  ;;  %v4062_v30 = vpop.f32.mrb[14].mxu1  ;;  %v1231_v22 = vadd.f32 %v3985_v33, %v5610_v42  ;;  %v3988_v56 = vadd.f32 %v3987_v36, %v3986_v34 }
 0x14a   : > { %v4063_v32 = vpop.f32.mrb[15].mxu1 }
 0x14b   : > { %v4064_v35 = vadd.f32 %v4063_v32, %v4062_v30  ;;  %v1234_v37 = vadd.f32 %v3988_v56, %v5610_v42  ;;  %v5632_v38 = vadd.f32 %v4061_v29, %v1231_v22 }
 0x14d   : > { %v5634_v44 = vadd.f32 %v4064_v35, %v1234_v37  ;;  %v3989_v46 = vpop.f32.mrb[16].mxu0 }
 0x14e   : > { %v3990_v50 = vpop.f32.mrb[17].mxu0 }
 0x14f   : > { %v4065_v41 = vpop.f32.mrb[16].mxu1  ;;  %v3991_v52 = vadd.f32 %v3990_v50, %v3989_v46  ;;  %v3992_v53 = vpop.f32.mrb[18].mxu0 }
 0x150   : > { %v4066_v43 = vpop.f32.mrb[17].mxu1  ;;  %v3993_v55 = vpop.f32.mrb[19].mxu0 }
 0x151   : > { %v4067_v48 = vadd.f32 %v4066_v43, %v4065_v41  ;;  %v4068_v49 = vpop.f32.mrb[18].mxu1  ;;  %v1239_v58 = vadd.f32 %v3991_v52, %v5610_v42  ;;  %v3994_v59 = vadd.f32 %v3993_v55, %v3992_v53 }
 0x152   : > { %v4069_v51 = vpop.f32.mrb[19].mxu1 }
 0x153   : > { %v4070_v54 = vadd.f32 %v4069_v51, %v4068_v49  ;;  %v1242_v1 = vadd.f32 %v3994_v59, %v5610_v42  ;;  %v5638_v2 = vadd.f32 %v4067_v48, %v1239_v58 }
 0x155   : > { %v5640_v6 = vadd.f32 %v4070_v54, %v1242_v1  ;;  %v3995_v8 = vpop.f32.mrb[20].mxu0 }
 0x156   : > { %v3996_v12 = vpop.f32.mrb[21].mxu0 }
 0x157   : > { %v4071_v4 = vpop.f32.mrb[20].mxu1  ;;  %v3997_v14 = vadd.f32 %v3996_v12, %v3995_v8  ;;  %v3998_v16 = vpop.f32.mrb[22].mxu0 }
 0x158   : > { %v4072_v5 = vpop.f32.mrb[21].mxu1  ;;  %v3999_v63 = vpop.f32.mrb[23].mxu0 }
 0x159   : > { %v4073_v9 = vadd.f32 %v4072_v5, %v4071_v4  ;;  %v4074_v11 = vpop.f32.mrb[22].mxu1  ;;  %v1247_v3 = vadd.f32 %v3997_v14, %v5610_v42  ;;  %v4000_v7 = vadd.f32 %v3999_v63, %v3998_v16 }
 0x15a   : > { %v4075_v13 = vpop.f32.mrb[23].mxu1 }
 0x15b   : > { %v4076_v47 = vadd.f32 %v4075_v13, %v4074_v11  ;;  %v1250_v10 = vadd.f32 %v4000_v7, %v5610_v42  ;;  %v5644_v25 = vadd.f32 %v4073_v9, %v1247_v3 }
 0x15d   : > { %v5646_v45 = vadd.f32 %v4076_v47, %v1250_v10  ;;  %v4001_v18 = vpop.f32.mrb[24].mxu0 }
 0x15e   : > { %v4002_v19 = vpop.f32.mrb[25].mxu0 }
 0x15f   : > { %v4077_v26 = vpop.f32.mrb[24].mxu1  ;;  %v4003_v23 = vadd.f32 %v4002_v19, %v4001_v18  ;;  %v4004_v27 = vpop.f32.mrb[26].mxu0 }
 0x160   : > { %v4078_v40 = vpop.f32.mrb[25].mxu1  ;;  %v4005_v29 = vpop.f32.mrb[27].mxu0 }
 0x161   : > { %v4079_v60 = vadd.f32 %v4078_v40, %v4077_v26  ;;  %v4080_v0 = vpop.f32.mrb[26].mxu1  ;;  %v1255_v30 = vadd.f32 %v4003_v23, %v5610_v42  ;;  %v4006_v31 = vadd.f32 %v4005_v29, %v4004_v27 }
 0x162   : > { %v4081_v20 = vpop.f32.mrb[27].mxu1 }
 0x163   : > { %v4082_v24 = vadd.f32 %v4081_v20, %v4080_v0  ;;  %v1258_v32 = vadd.f32 %v4006_v31, %v5610_v42  ;;  %v5650_v33 = vadd.f32 %v4079_v60, %v1255_v30 }
 0x165   : > { %v5652_v36 = vadd.f32 %v4082_v24, %v1258_v32  ;;  %v4007_v22 = vpop.f32.mrb[28].mxu0 }
 0x166   : > { %v4008_v41 = vpop.f32.mrb[29].mxu0 }
 0x167   : > { %v4083_v34 = vpop.f32.mrb[28].mxu1  ;;  %v4009_v46 = vadd.f32 %v4008_v41, %v4007_v22  ;;  %v4010_v48 = vpop.f32.mrb[30].mxu0 }
 0x168   : > { %v4084_v35 = vpop.f32.mrb[29].mxu1  ;;  %v4011_v50 = vpop.f32.mrb[31].mxu0 }
 0x169   : > { %v4085_v56 = vadd.f32 %v4084_v35, %v4083_v34  ;;  %v4086_v37 = vpop.f32.mrb[30].mxu1  ;;  %v1263_v51 = vadd.f32 %v4009_v46, %v5610_v42  ;;  %v4012_v52 = vadd.f32 %v4011_v50, %v4010_v48 }
 0x16a   : > { %v4087_v43 = vpop.f32.mrb[31].mxu1 }
 0x16b   : > { %v4088_v49 = vadd.f32 %v4087_v43, %v4086_v37  ;;  %v1266_v53 = vadd.f32 %v4012_v52, %v5610_v42  ;;  %v5656_v54 = vadd.f32 %v4085_v56, %v1263_v51 }
 0x16d   : > { %v5658_v59 = vadd.f32 %v4088_v49, %v1266_v53  ;;  %v4013_v1 = vpop.f32.mrb[32].mxu0 }
 0x16e   : > { %v4014_v8 = vpop.f32.mrb[33].mxu0 }
 0x16f   : > { %v4089_v55 = vpop.f32.mrb[32].mxu1  ;;  %v4015_v11 = vadd.f32 %v4014_v8, %v4013_v1  ;;  %v4016_v12 = vpop.f32.mrb[34].mxu0 }
 0x170   : > { %v4090_v58 = vpop.f32.mrb[33].mxu1  ;;  %v4017_v14 = vpop.f32.mrb[35].mxu0 }
 0x171   : > { %v4091_v4 = vadd.f32 %v4090_v58, %v4089_v55  ;;  %v4092_v5 = vpop.f32.mrb[34].mxu1  ;;  %v1271_v16 = vadd.f32 %v4015_v11, %v5610_v42  ;;  %v4018_v47 = vadd.f32 %v4017_v14, %v4016_v12 }
 0x172   : > { %v4093_v9 = vpop.f32.mrb[35].mxu1 }
 0x173   : > { %v4094_v13 = vadd.f32 %v4093_v9, %v4092_v5  ;;  %v1274_v63 = vadd.f32 %v4018_v47, %v5610_v42  ;;  %v5662_v3 = vadd.f32 %v4091_v4, %v1271_v16 }
 0x175   : > { %v5664_v26 = vadd.f32 %v4094_v13, %v1274_v63  ;;  %v4019_v40 = vpop.f32.mrb[36].mxu0 }
 0x176   : > { %v4020_v0 = vpop.f32.mrb[37].mxu0 }
 0x177   : > { %v4095_v7 = vpop.f32.mrb[36].mxu1  ;;  %v4021_v20 = vadd.f32 %v4020_v0, %v4019_v40  ;;  %v4022_v23 = vpop.f32.mrb[38].mxu0 }
 0x178   : > { %v4096_v10 = vpop.f32.mrb[37].mxu1  ;;  %v4023_v24 = vpop.f32.mrb[39].mxu0 }
 0x179   : > { %v4097_v18 = vadd.f32 %v4096_v10, %v4095_v7  ;;  %v4098_v60 = vpop.f32.mrb[38].mxu1  ;;  %v1279_v29 = vadd.f32 %v4021_v20, %v5610_v42  ;;  %v4024_v30 = vadd.f32 %v4023_v24, %v4022_v23 }
 0x17a   : > { %v4099_v19 = vpop.f32.mrb[39].mxu1 }
 0x17b   : > { %v4100_v27 = vadd.f32 %v4099_v19, %v4098_v60  ;;  %v1282_v31 = vadd.f32 %v4024_v30, %v5610_v42  ;;  %v5668_v32 = vadd.f32 %v4097_v18, %v1279_v29 }
 0x17d   : > { %v5670_v22 = vadd.f32 %v4100_v27, %v1282_v31  ;;  %v4117_v56 = vpop.f32.mrb[40].mxu0 }
 0x17e   : > { %v4118_v43 = vpop.f32.mrb[41].mxu0 }
 0x17f   : > { %v4193_v34 = vpop.f32.mrb[40].mxu1  ;;  %v4119_v48 = vadd.f32 %v4118_v43, %v4117_v56  ;;  %v4120_v49 = vpop.f32.mrb[42].mxu0 }
 0x180   : > { %v4194_v35 = vpop.f32.mrb[41].mxu1  ;;  %v4121_v51 = vpop.f32.mrb[43].mxu0 }
 0x181   : > { %v4195_v37 = vadd.f32 %v4194_v35, %v4193_v34  ;;  %v4196_v41 = vpop.f32.mrb[42].mxu1  ;;  %v1433_v52 = vadd.f32 %v4119_v48, %v5614_v57  ;;  %v4122_v53 = vadd.f32 %v4121_v51, %v4120_v49 }
 0x182   : > { %v4197_v46 = vpop.f32.mrb[43].mxu1 }
 0x183   : > { %v4198_v50 = vadd.f32 %v4197_v46, %v4196_v41  ;;  %v1436_v42 = vadd.f32 %v4122_v53, %v5616_v61  ;;  %v5674_v58 = vadd.f32 %v4195_v37, %v1433_v52 }
 0x185   : > { %v4123_v4 = vpop.f32.mrb[44].mxu0  ;;  %v5676_v9 = vadd.f32 %v4198_v50, %v1436_v42 }
 0x186   : > { %v4124_v11 = vpop.f32.mrb[45].mxu0 }
 0x187   : > { %v4199_v55 = vpop.f32.mrb[44].mxu1  ;;  %v4125_v13 = vadd.f32 %v4124_v11, %v4123_v4  ;;  %v4126_v14 = vpop.f32.mrb[46].mxu0 }
 0x188   : > { %v4200_v1 = vpop.f32.mrb[45].mxu1  ;;  %v4127_v47 = vpop.f32.mrb[47].mxu0 }
 0x189   : > { %v4201_v5 = vadd.f32 %v4200_v1, %v4199_v55  ;;  %v4202_v8 = vpop.f32.mrb[46].mxu1  ;;  %v1441_v57 = vadd.f32 %v4125_v13, %v5620_v17  ;;  %v4128_v63 = vadd.f32 %v4127_v47, %v4126_v14 }
 0x18a   : > { %v4203_v12 = vpop.f32.mrb[47].mxu1 }
 0x18b   : > { %v4204_v16 = vadd.f32 %v4203_v12, %v4202_v8  ;;  %v1444_v61 = vadd.f32 %v4128_v63, %v5622_v62  ;;  %v5680_v10 = vadd.f32 %v4201_v5, %v1441_v57 }
 0x18d   : > { %v4129_v18 = vpop.f32.mrb[48].mxu0  ;;  %v5682_v19 = vadd.f32 %v4204_v16, %v1444_v61 }
 0x18e   : > { %v4130_v20 = vpop.f32.mrb[49].mxu0 }
 0x18f   : > { %v4205_v7 = vpop.f32.mrb[48].mxu1  ;;  %v4131_v27 = vadd.f32 %v4130_v20, %v4129_v18  ;;  %v4132_v24 = vpop.f32.mrb[50].mxu0 }
 0x190   : > { %v4206_v40 = vpop.f32.mrb[49].mxu1  ;;  %v4133_v30 = vpop.f32.mrb[51].mxu0 }
 0x191   : > { %v4207_v60 = vadd.f32 %v4206_v40, %v4205_v7  ;;  %v4208_v0 = vpop.f32.mrb[50].mxu1  ;;  %v1449_v17 = vadd.f32 %v4131_v27, %v5626_v21  ;;  %v4134_v31 = vadd.f32 %v4133_v30, %v4132_v24 }
 0x192   : > { %v4209_v23 = vpop.f32.mrb[51].mxu1 }
 0x193   : > { %v4210_v29 = vadd.f32 %v4209_v23, %v4208_v0  ;;  %v1452_v62 = vadd.f32 %v4134_v31, %v5628_v28  ;;  %v5686_v35 = vadd.f32 %v4207_v60, %v1449_v17 }
 0x195   : > { %v4135_v37 = vpop.f32.mrb[52].mxu0  ;;  %v5688_v46 = vadd.f32 %v4210_v29, %v1452_v62 }
 0x196   : > { %v4136_v48 = vpop.f32.mrb[53].mxu0 }
 0x197   : > { %v4211_v34 = vpop.f32.mrb[52].mxu1  ;;  %v4137_v50 = vadd.f32 %v4136_v48, %v4135_v37  ;;  %v4138_v51 = vpop.f32.mrb[54].mxu0 }
 0x198   : > { %v4212_v56 = vpop.f32.mrb[53].mxu1  ;;  %v4139_v53 = vpop.f32.mrb[55].mxu0 }
 0x199   : > { %v4213_v41 = vadd.f32 %v4212_v56, %v4211_v34  ;;  %v4214_v43 = vpop.f32.mrb[54].mxu1  ;;  %v1457_v21 = vadd.f32 %v4137_v50, %v5632_v38  ;;  %v4140_v42 = vadd.f32 %v4139_v53, %v4138_v51 }
 0x19a   : > { %v4215_v49 = vpop.f32.mrb[55].mxu1 }
 0x19b   : > { %v4216_v52 = vadd.f32 %v4215_v49, %v4214_v43  ;;  %v1460_v28 = vadd.f32 %v4140_v42, %v5634_v44  ;;  %v5692_v1 = vadd.f32 %v4213_v41, %v1457_v21 }
 0x19d   : > { %v4141_v5 = vpop.f32.mrb[56].mxu0  ;;  %v5694_v12 = vadd.f32 %v4216_v52, %v1460_v28 }
 0x19e   : > { %v4142_v13 = vpop.f32.mrb[57].mxu0 }
 0x19f   : > { %v4217_v55 = vpop.f32.mrb[56].mxu1  ;;  %v4143_v16 = vadd.f32 %v4142_v13, %v4141_v5  ;;  %v4144_v47 = vpop.f32.mrb[58].mxu0 }
 0x1a0   : > { %v4218_v4 = vpop.f32.mrb[57].mxu1  ;;  %v4145_v63 = vpop.f32.mrb[59].mxu0 }
 0x1a1   : > { %v4219_v8 = vadd.f32 %v4218_v4, %v4217_v55  ;;  %v4220_v11 = vpop.f32.mrb[58].mxu1  ;;  %v1465_v38 = vadd.f32 %v4143_v16, %v5638_v2  ;;  %v4146_v61 = vadd.f32 %v4145_v63, %v4144_v47 }
 0x1a2   : > { %v4221_v14 = vpop.f32.mrb[59].mxu1 }
 0x1a3   : > { %v4222_v57 = vadd.f32 %v4221_v14, %v4220_v11  ;;  %v1468_v44 = vadd.f32 %v4146_v61, %v5640_v6  ;;  %v5698_v40 = vadd.f32 %v4219_v8, %v1465_v38 }
 0x1a5   : > { %v4147_v60 = vpop.f32.mrb[60].mxu0  ;;  %v5700_v23 = vadd.f32 %v4222_v57, %v1468_v44 }
 0x1a6   : > { %v4148_v27 = vpop.f32.mrb[61].mxu0 }
 0x1a7   : > { %v4223_v7 = vpop.f32.mrb[60].mxu1  ;;  %v4149_v29 = vadd.f32 %v4148_v27, %v4147_v60  ;;  %v4150_v30 = vpop.f32.mrb[62].mxu0 }
 0x1a8   : > { %v4224_v18 = vpop.f32.mrb[61].mxu1  ;;  %v4151_v31 = vpop.f32.mrb[63].mxu0 }
 0x1a9   : > { %v4225_v0 = vadd.f32 %v4224_v18, %v4223_v7  ;;  %v4226_v20 = vpop.f32.mrb[62].mxu1  ;;  %v1473_v2 = vadd.f32 %v4149_v29, %v5644_v25  ;;  %v4152_v62 = vadd.f32 %v4151_v31, %v4150_v30 }
 0x1aa   : > { %v4227_v24 = vpop.f32.mrb[63].mxu1 }
 0x1ab   : > { %v4228_v17 = vadd.f32 %v4227_v24, %v4226_v20  ;;  %v1476_v6 = vadd.f32 %v4152_v62, %v5646_v45  ;;  %v5704_v56 = vadd.f32 %v4225_v0, %v1473_v2 }
 0x1ad   : > { %v4153_v41 = vpop.f32.mrb[64].mxu0  ;;  %v5706_v49 = vadd.f32 %v4228_v17, %v1476_v6 }
 0x1ae   : > { %v4154_v50 = vpop.f32.mrb[65].mxu0 }
 0x1af   : > { %v4229_v34 = vpop.f32.mrb[64].mxu1  ;;  %v4155_v52 = vadd.f32 %v4154_v50, %v4153_v41  ;;  %v4156_v53 = vpop.f32.mrb[66].mxu0 }
 0x1b0   : > { %v4230_v37 = vpop.f32.mrb[65].mxu1  ;;  %v4157_v42 = vpop.f32.mrb[67].mxu0 }
 0x1b1   : > { %v4231_v43 = vadd.f32 %v4230_v37, %v4229_v34  ;;  %v4232_v48 = vpop.f32.mrb[66].mxu1  ;;  %v1481_v25 = vadd.f32 %v4155_v52, %v5650_v33  ;;  %v4158_v28 = vadd.f32 %v4157_v42, %v4156_v53 }
 0x1b2   : > { %v4233_v51 = vpop.f32.mrb[67].mxu1 }
 0x1b3   : > { %v4234_v21 = vadd.f32 %v4233_v51, %v4232_v48  ;;  %v1484_v45 = vadd.f32 %v4158_v28, %v5652_v36  ;;  %v5710_v4 = vadd.f32 %v4231_v43, %v1481_v25 }
 0x1b5   : > { %v4159_v8 = vpop.f32.mrb[68].mxu0  ;;  %v5712_v14 = vadd.f32 %v4234_v21, %v1484_v45 }
 0x1b6   : > { %v4160_v16 = vpop.f32.mrb[69].mxu0 }
 0x1b7   : > { %v4235_v55 = vpop.f32.mrb[68].mxu1  ;;  %v4161_v57 = vadd.f32 %v4160_v16, %v4159_v8  ;;  %v4162_v63 = vpop.f32.mrb[70].mxu0 }
 0x1b8   : > { %v4236_v5 = vpop.f32.mrb[69].mxu1  ;;  %v4163_v61 = vpop.f32.mrb[71].mxu0 }
 0x1b9   : > { %v4237_v11 = vadd.f32 %v4236_v5, %v4235_v55  ;;  %v4238_v13 = vpop.f32.mrb[70].mxu1  ;;  %v1489_v33 = vadd.f32 %v4161_v57, %v5656_v54  ;;  %v4164_v44 = vadd.f32 %v4163_v61, %v4162_v63 }
 0x1ba   : > { %v4239_v47 = vpop.f32.mrb[71].mxu1 }
 0x1bb   : > { %v4240_v38 = vadd.f32 %v4239_v47, %v4238_v13  ;;  %v1492_v36 = vadd.f32 %v4164_v44, %v5658_v59  ;;  %v5716_v18 = vadd.f32 %v4237_v11, %v1489_v33 }
 0x1bd   : > { %v4165_v0 = vpop.f32.mrb[72].mxu0  ;;  %v5718_v24 = vadd.f32 %v4240_v38, %v1492_v36 }
 0x1be   : > { %v4166_v29 = vpop.f32.mrb[73].mxu0 }
 0x1bf   : > { %v4241_v7 = vpop.f32.mrb[72].mxu1  ;;  %v4167_v17 = vadd.f32 %v4166_v29, %v4165_v0  ;;  %v4168_v31 = vpop.f32.mrb[74].mxu0 }
 0x1c0   : > { %v4242_v60 = vpop.f32.mrb[73].mxu1  ;;  %v4169_v62 = vpop.f32.mrb[75].mxu0 }
 0x1c1   : > { %v4243_v20 = vadd.f32 %v4242_v60, %v4241_v7  ;;  %v4244_v27 = vpop.f32.mrb[74].mxu1  ;;  %v1497_v54 = vadd.f32 %v4167_v17, %v5662_v3  ;;  %v4170_v6 = vadd.f32 %v4169_v62, %v4168_v31 }
 0x1c2   : > { %v4245_v30 = vpop.f32.mrb[75].mxu1 }
 0x1c3   : > { %v4246_v2 = vadd.f32 %v4245_v30, %v4244_v27  ;;  %v1500_v59 = vadd.f32 %v4170_v6, %v5664_v26  ;;  %v5722_v37 = vadd.f32 %v4243_v20, %v1497_v54  ;;  %v2052_v30 = vld [vmem:[#allocation2 + $0xc] sm:$0xf] }
 0x1c5   : > { %v4171_v43 = vpop.f32.mrb[76].mxu0  ;;  %v5724_v51 = vadd.f32 %v4246_v2, %v1500_v59 }
 0x1c6   : > { %v4172_v52 = vpop.f32.mrb[77].mxu0 }
 0x1c7   : > { %v4247_v34 = vpop.f32.mrb[76].mxu1  ;;  %v4173_v21 = vadd.f32 %v4172_v52, %v4171_v43  ;;  %v4174_v42 = vpop.f32.mrb[78].mxu0 }
 0x1c8   : > { %v4248_v41 = vpop.f32.mrb[77].mxu1  ;;  %v4175_v28 = vpop.f32.mrb[79].mxu0 }
 0x1c9   : > { %v4249_v48 = vadd.f32 %v4248_v41, %v4247_v34  ;;  %v4250_v50 = vpop.f32.mrb[78].mxu1  ;;  %v1505_v3 = vadd.f32 %v4173_v21, %v5668_v32  ;;  %v4176_v45 = vadd.f32 %v4175_v28, %v4174_v42 }
 0x1ca   : > { %v4251_v53 = vpop.f32.mrb[79].mxu1 }
 0x1cb   : > { %v4252_v25 = vadd.f32 %v4251_v53, %v4250_v50  ;;  %v1508_v26 = vadd.f32 %v4176_v45, %v5670_v22  ;;  %v5728_v55 = vadd.f32 %v4249_v48, %v1505_v3 }
 0x1cd   : > { %v4561_v5 = vpop.f32.mrb[80].mxu0  ;;  %v5730_v8 = vadd.f32 %v4252_v25, %v1508_v26  ;;  %v2043_v25 = vld [vmem:[#allocation2] sm:$0xf] }
 0x1ce   : > { %v1667_v11 = vadd.f32 %v4561_v5, %v5680_v10  ;;  %v1658_v13 = vpop.f32.mrb[81].mxu0 }
 0x1cf   : > { %v1659_v16 = vadd.f32 %v1658_v13, %v5674_v58  ;;  %v4562_v47 = vpop.f32.mrb[82].mxu0 }
 0x1d0   : > { %v1739_v57 = vmul.f32 0.2, %v1667_v11  ;;  %v1670_v63 = vadd.f32 %v4562_v47, %v5682_v19  ;;  %v1661_v38 = vpop.f32.mrb[83].mxu0 }
 0x1d1   : > { %v1737_v61 = vmul.f32 0.2, %v1659_v16  ;;  %v1662_v32 = vadd.f32 %v1661_v38, %v5676_v9  ;;  %v2049_v38 = vld [vmem:[#allocation2 + $0x8] sm:$0x1] }
 0x1d2   : > { %v1759_v33 = vmax.f32 %v1667_v11, %v1739_v57  ;;  %v1740_v22 = vmul.f32 0.2, %v1670_v63  ;;  %v2056_v11 = vld [vmem:[#allocation2 + $0x14] sm:$0x1] }
 0x1d3   : > { %v1757_v44 = vmax.f32 %v1659_v16, %v1737_v61  ;;  %v1738_v36 = vmul.f32 0.2, %v1662_v32 }
 0x1d4   : > { %v3930_v7 = vpack.c.bf16 %v1759_v33, %v1759_v33  ;;  %v1760_v10 = vmax.f32 %v1670_v63, %v1740_v22 }
 0x1d5   : > { %v3928_v60 = vpack.c.bf16 %v1757_v44, %v1757_v44  ;;  %v1758_v58 = vmax.f32 %v1662_v32, %v1738_v36  ;;  %v4565_v0 = vpop.f32.mrb[84].mxu0 }
 0x1d6   : > { %v1858_v20 = vshrl.u32 %v3930_v7, 16  ;;  %v1861_v19 = vshll.u32 %v3930_v7, 16  ;;  %v3931_v27 = vpack.c.bf16 %v1760_v10, %v1760_v10  ;;  %v1683_v29 = vadd.f32 %v4565_v0, %v5692_v1  ;;  %v1674_v9 = vpop.f32.mrb[85].mxu0 }
 0x1d7   : > { %v1841_v17 = vshrl.u32 %v3928_v60, 16  ;;  %v1844_v31 = vshll.u32 %v3928_v60, 16  ;;  %v3929_v2 = vpack.c.bf16 %v1758_v58, %v1758_v58  ;;  %v1675_v62 = vadd.f32 %v1674_v9, %v5686_v35  ;;  %v4566_v54 = vpop.f32.mrb[86].mxu0 }
 0x1d8   : > { %v1860_v6 = vrot.slane %v1858_v20, 7  ;;  %v1866_v59 = vshrl.u32 %v3931_v27, 16  ;;  %v1869_v34 = vshll.u32 %v3931_v27, 16  ;;  %v1743_v41 = vmul.f32 0.2, %v1683_v29  ;;  %v1677_v43 = vpop.f32.mrb[87].mxu0 }
 0x1d9   : > { %v1843_v1 = vrot.slane %v1841_v17, 7  ;;  %v1849_v50 = vshrl.u32 %v3929_v2, 16  ;;  %v1852_v52 = vshll.u32 %v3929_v2, 16  ;;  %v1741_v53 = vmul.f32 0.2, %v1675_v62 }
 0x1da   : > { %v1863_v21 = vor.u32 %v1861_v19, %v1860_v6  ;;  %v1864_v42 = vrot.slane %v1860_v6, 4  ;;  %v1868_v28 = vrot.slane %v1866_v59, 7  ;;  %v1763_v3 = vmax.f32 %v1683_v29, %v1743_v41  ;;  %v2066_v6 = vld [vmem:[#allocation2 + $0x24] sm:$0xf] }
 0x1db   : > { %v1846_v45 = vor.u32 %v1844_v31, %v1843_v1  ;;  %v1847_v26 = vrot.slane %v1843_v1, 4  ;;  %v1851_v13 = vrot.slane %v1849_v50, 7  ;;  %v1761_v16 = vmax.f32 %v1675_v62, %v1741_v53 }
 0x1dc   : > { %v2053_v47 = vsel %vm5740_vm7, %v1863_v21, %v2052_v30  ;;  %v1871_v57 = vor.u32 %v1869_v34, %v1868_v28  ;;  %v1873_v63 = vrot.slane %v1868_v28, 4  ;;  %v3934_v61 = vpack.c.bf16 %v1763_v3, %v1763_v3  ;;  %v2059_v34 = vld [vmem:[#allocation2 + $0x18] sm:$0xf] }
 0x1dd   : > { %2054 = vst [vmem:[#allocation2 + $0xc] sm:$0xf] %v2053_v47  ;;  %v2044_v32 = vsel %vm5740_vm7, %v1846_v45, %v2043_v25  ;;  %v1854_v33 = vor.u32 %v1852_v52, %v1851_v13  ;;  %v1856_v22 = vrot.slane %v1851_v13, 4  ;;  %v3932_v44 = vpack.c.bf16 %v1761_v16, %v1761_v16  ;;  %v4569_v36 = vpop.f32.mrb[88].mxu0 }
 0x1de   : > { %2045 = vst [vmem:[#allocation2] sm:$0xf] %v2044_v32  ;;  %v1872_v7 = vsel %vm5752_vm9, %v1864_v42, %v1871_v57  ;;  %v2057_v10 = vsel %vm5746_vm8, %v1873_v63, %v2056_v11  ;;  %v1892_v60 = vshrl.u32 %v3934_v61, 16  ;;  %v1895_v58 = vshll.u32 %v3934_v61, 16  ;;  %v1690_v0 = vpop.f32.mrb[89].mxu0 }
 0x1df   : > { %2055 = vst [vmem:[#allocation2 + $0x10] sm:$0xf] %v1872_v7  ;;  %2058 = vst [vmem:[#allocation2 + $0x14] sm:$0x1] %v2057_v10  ;;  %v1855_v20 = vsel %vm5752_vm9, %v1847_v26, %v1854_v33  ;;  %v2050_v19 = vsel %vm5746_vm8, %v1856_v22, %v2049_v38  ;;  %v1875_v27 = vshrl.u32 %v3932_v44, 16  ;;  %v1878_v29 = vshll.u32 %v3932_v44, 16 }
 0x1e0   : > { %v4570_v9 = vpop.f32.mrb[90].mxu0  ;;  %2046 = vst [vmem:[#allocation2 + $0x4] sm:$0xf] %v1855_v20  ;;  %2051 = vst [vmem:[#allocation2 + $0x8] sm:$0x1] %v2050_v19  ;;  %v5768_v30 = vrot.slane %v1892_v60, 7  ;;  %v1686_v17 = vadd.f32 %v4566_v54, %v5694_v12  ;;  %v1678_v31 = vadd.f32 %v1677_v43, %v5688_v46  ;;  %v1699_v2 = vadd.f32 %v4569_v36, %v5704_v56 }
 0x1e1   : > { %v1693_v62 = vpop.f32.mrb[91].mxu0  ;;  %v5773_v59 = vrot.slane %v1875_v27, 7  ;;  %v1691_v41 = vadd.f32 %v1690_v0, %v5698_v40  ;;  %v1702_v1 = vadd.f32 %v4570_v9, %v5706_v49 }
 0x1e2   : > { %v1694_v50 = vadd.f32 %v1693_v62, %v5700_v23  ;;  %v1897_v52 = vor.u32 %v1895_v58, %v5768_v30  ;;  %v1898_v53 = vrot.slane %v5768_v30, 4  ;;  %v1744_v12 = vmul.f32 0.2, %v1686_v17 }
 0x1e3   : > { %v1742_v54 = vmul.f32 0.2, %v1678_v31  ;;  %v1880_v46 = vor.u32 %v1878_v29, %v5773_v59  ;;  %v1881_v56 = vrot.slane %v5773_v59, 4  ;;  %v1747_v43 = vmul.f32 0.2, %v1699_v2 }
 0x1e4   : > { %v1745_v21 = vmul.f32 0.2, %v1691_v41  ;;  %v2118_v42 = vld [vmem:[#allocation2 + $0xc] sm:$0x1]  ;;  %v2067_v23 = vsel %vm5740_vm7, %v1897_v52, %v2066_v6  ;;  %v1764_v49 = vmax.f32 %v1686_v17, %v1744_v12  ;;  %v1748_v28 = vmul.f32 0.2, %v1702_v1 }
 0x1e5   : > { %v1762_v25 = vmax.f32 %v1678_v31, %v1742_v54  ;;  %v2119_v3 = vsel %vm5746_vm8, 0, %v2118_v42  ;;  %v2115_v45 = vld [vmem:[#allocation2] sm:$0x1]  ;;  %2068 = vst [vmem:[#allocation2 + $0x24] sm:$0xf] %v2067_v23  ;;  %v2060_v26 = vsel %vm5740_vm7, %v1880_v46, %v2059_v34  ;;  %v1767_v11 = vmax.f32 %v1699_v2, %v1747_v43  ;;  %v4573_v16 = vpop.f32.mrb[92].mxu0 }
 0x1e6   : > { %v1765_v13 = vmax.f32 %v1691_v41, %v1745_v21  ;;  %2120 = vst [vmem:[#allocation2 + $0xc] sm:$0x1] %v2119_v3  ;;  %v2116_v47 = vsel %vm5746_vm8, 0, %v2115_v45  ;;  %v2149_v57 = vld [vmem:[#allocation2 + $0x14] sm:$0x1]  ;;  %v3935_v63 = vpack.c.bf16 %v1764_v49, %v1764_v49  ;;  %v1768_v61 = vmax.f32 %v1702_v1, %v1748_v28  ;;  %v5796_v32 = vpop.f32.mrb[93].mxu0 }
 0x1e7   : > { %2061 = vst [vmem:[#allocation2 + $0x18] sm:$0xf] %v2060_v26  ;;  %v3933_v38 = vpack.c.bf16 %v1762_v25, %v1762_v25  ;;  %2117 = vst [vmem:[#allocation2] sm:$0x1] %v2116_v47  ;;  %v2150_v33 = vsel %vm5784_vm10, 0, %v2149_v57  ;;  %v3938_v44 = vpack.c.bf16 %v1767_v11, %v1767_v11  ;;  %v4574_v10 = vpop.f32.mrb[94].mxu0  ;;  %v1715_v46 = vadd.f32 %v4573_v16, %v5716_v18 }
 0x1e8   : > { %v2146_v22 = vld [vmem:[#allocation2 + $0x8] sm:$0x1]  ;;  %v3936_v36 = vpack.c.bf16 %v1765_v13, %v1765_v13  ;;  %v1746_v7 = vmul.f32 0.2, %v1694_v50  ;;  %2151 = vst [vmem:[#allocation2 + $0x14] sm:$0x1] %v2150_v33  ;;  %v3939_v34 = vpack.c.bf16 %v1768_v61, %v1768_v61 }
 0x1e9   : > { %v2147_v60 = vsel %vm5784_vm10, 0, %v2146_v22  ;;  %v1900_v58 = vshrl.u32 %v3935_v63, 16  ;;  %v1903_v0 = vshll.u32 %v3935_v63, 16  ;;  %v1883_v20 = vshrl.u32 %v3933_v38, 16  ;;  %v1709_v19 = vpop.f32.mrb[95].mxu0 }
 0x1ea   : > { %2148 = vst [vmem:[#allocation2 + $0x8] sm:$0x1] %v2147_v60  ;;  %v1886_v27 = vshll.u32 %v3933_v38, 16  ;;  %v1926_v29 = vshrl.u32 %v3938_v44, 16  ;;  %v1929_v9 = vshll.u32 %v3938_v44, 16  ;;  %v1909_v17 = vshrl.u32 %v3936_v36, 16 }
 0x1eb   : > { %v1902_v31 = vrot.slane %v1900_v58, 7  ;;  %v2070_v2 = vld [vmem:[#allocation2 + $0x2c] sm:$0x1]  ;;  %v1885_v62 = vrot.slane %v1883_v20, 7  ;;  %v1912_v6 = vshll.u32 %v3936_v36, 16  ;;  %v1766_v54 = vmax.f32 %v1694_v50, %v1746_v7 }
 0x1ec   : > { %v2063_v41 = vld [vmem:[#allocation2 + $0x20] sm:$0x1]  ;;  %v5802_v1 = vrot.slane %v1926_v29, 7  ;;  %v2080_v52 = vld [vmem:[#allocation2 + $0x3c] sm:$0xf]  ;;  %v5804_v12 = vrot.slane %v1909_v17, 7  ;;  %v1707_v36 = vadd.f32 %v5796_v32, %v5710_v4  ;;  %v1718_v7 = vadd.f32 %v4574_v10, %v5718_v24 }
 0x1ed   : > { %v2124_v43 = vld [vmem:[#allocation2 + $0x24] sm:$0x1]  ;;  %v1905_v21 = vor.u32 %v1903_v0, %v1902_v31  ;;  %v1907_v42 = vrot.slane %v1902_v31, 4  ;;  %v1888_v23 = vor.u32 %v1886_v27, %v1885_v62  ;;  %v1890_v49 = vrot.slane %v1885_v62, 4  ;;  %v2073_v25 = vld [vmem:[#allocation2 + $0x30] sm:$0xf] }
 0x1ee   : > { %v2125_v28 = vsel %vm5746_vm8, 0, %v2124_v43  ;;  %v2121_v3 = vld [vmem:[#allocation2 + $0x18] sm:$0x1]  ;;  %v1931_v45 = vor.u32 %v1929_v9, %v5802_v1  ;;  %v1932_v26 = vrot.slane %v5802_v1, 4  ;;  %v1914_v11 = vor.u32 %v1912_v6, %v5804_v12  ;;  %v4577_v13 = vpop.f32.mrb[96].mxu0 }
 0x1ef   : > { %2126 = vst [vmem:[#allocation2 + $0x24] sm:$0x1] %v2125_v28  ;;  %v2122_v18 = vsel %vm5746_vm8, 0, %v2121_v3  ;;  %v1906_v50 = vsel %vm5752_vm9, %v1898_v53, %v1905_v21  ;;  %v2071_v16 = vsel %vm5746_vm8, %v1907_v42, %v2070_v2  ;;  %v1889_v47 = vsel %vm5752_vm9, %v1881_v56, %v1888_v23  ;;  %v1722_v57 = vpop.f32.mrb[97].mxu0  ;;  %v2084_v20 = vld [vmem:[#allocation2 + $0x44] sm:$0x1] }
 0x1f0   : > { %2123 = vst [vmem:[#allocation2 + $0x18] sm:$0x1] %v2122_v18  ;;  %2069 = vst [vmem:[#allocation2 + $0x28] sm:$0xf] %v1906_v50  ;;  %v2064_v63 = vsel %vm5746_vm8, %v1890_v49, %v2063_v41  ;;  %v2081_v30 = vsel %vm5740_vm7, %v1931_v45, %v2080_v52  ;;  %v1915_v53 = vrot.slane %v5804_v12, 4  ;;  %v2074_v38 = vsel %vm5740_vm7, %v1914_v11, %v2073_v25  ;;  %v5831_v59 = vpop.f32.mrb[98].mxu0 }
 0x1f1   : > { %2072 = vst [vmem:[#allocation2 + $0x2c] sm:$0x1] %v2071_v16  ;;  %2062 = vst [vmem:[#allocation2 + $0x1c] sm:$0xf] %v1889_v47  ;;  %v1934_v56 = vshrl.u32 %v3939_v34, 16  ;;  %v1937_v61 = vshll.u32 %v3939_v34, 16  ;;  %v3937_v33 = vpack.c.bf16 %v1766_v54, %v1766_v54  ;;  %v1710_v60 = vadd.f32 %v1709_v19, %v5712_v14 }
 0x1f2   : > { %2065 = vst [vmem:[#allocation2 + $0x20] sm:$0x1] %v2064_v63  ;;  %2082 = vst [vmem:[#allocation2 + $0x3c] sm:$0xf] %v2081_v30  ;;  %v1751_v22 = vmul.f32 0.2, %v1715_v46  ;;  %v1731_v58 = vadd.f32 %v4577_v13, %v5728_v55  ;;  %v1723_v62 = vadd.f32 %v1722_v57, %v5722_v37 }
 0x1f3   : > { %2075 = vst [vmem:[#allocation2 + $0x30] sm:$0xf] %v2074_v38  ;;  %v5833_v44 = vpop.f32.mrb[99].mxu0  ;;  %v1936_v0 = vrot.slane %v1934_v56, 7  ;;  %v1917_v27 = vshrl.u32 %v3937_v33, 16  ;;  %v1920_v29 = vshll.u32 %v3937_v33, 16 }
 0x1f4   : > { %v1771_v9 = vmax.f32 %v1715_v46, %v1751_v22  ;;  %v1749_v17 = vmul.f32 0.2, %v1707_v36  ;;  %v1752_v31 = vmul.f32 0.2, %v1718_v7  ;;  %v1750_v2 = vmul.f32 0.2, %v1710_v60 }
 0x1f5   : > { %v1939_v6 = vor.u32 %v1937_v61, %v1936_v0  ;;  %v1941_v34 = vrot.slane %v1936_v0, 4  ;;  %v1919_v41 = vrot.slane %v1917_v27, 7  ;;  %v2077_v32 = vld [vmem:[#allocation2 + $0x38] sm:$0x1]  ;;  %v1755_v19 = vmul.f32 0.2, %v1731_v58 }
 0x1f6   : > { %v3942_v4 = vpack.c.bf16 %v1771_v9, %v1771_v9  ;;  %v1769_v24 = vmax.f32 %v1707_v36, %v1749_v17  ;;  %v1772_v10 = vmax.f32 %v1718_v7, %v1752_v31  ;;  %v1770_v14 = vmax.f32 %v1710_v60, %v1750_v2  ;;  %v2094_v50 = vld [vmem:[#allocation2 + $0x54] sm:$0xf]  ;;  %v2087_v56 = vld [vmem:[#allocation2 + $0x48] sm:$0xf]  ;;  %v2098_v27 = vld [vmem:[#allocation2 + $0x5c] sm:$0x1] }
 0x1f7   : > { %v1940_v1 = vsel %vm5752_vm9, %v1932_v26, %v1939_v6  ;;  %v2085_v52 = vsel %vm5746_vm8, %v1941_v34, %v2084_v20  ;;  %v1922_v12 = vor.u32 %v1920_v29, %v1919_v41  ;;  %v1924_v54 = vrot.slane %v1919_v41, 4  ;;  %v2091_v41 = vld [vmem:[#allocation2 + $0x50] sm:$0x1] }
 0x1f8   : > { %v2155_v55 = vld [vmem:[#allocation2 + $0x2c] sm:$0x1]  ;;  %2083 = vst [vmem:[#allocation2 + $0x40] sm:$0xf] %v1940_v1  ;;  %2086 = vst [vmem:[#allocation2 + $0x44] sm:$0x1] %v2085_v52  ;;  %v3940_v42 = vpack.c.bf16 %v1769_v24, %v1769_v24  ;;  %v3943_v23 = vpack.c.bf16 %v1772_v10, %v1772_v10  ;;  %v3941_v63 = vpack.c.bf16 %v1770_v14, %v1770_v14 }
 0x1f9   : > { %v2156_v37 = vsel %vm5784_vm10, 0, %v2155_v55  ;;  %v2152_v46 = vld [vmem:[#allocation2 + $0x20] sm:$0x1]  ;;  %v2130_v43 = vld [vmem:[#allocation2 + $0x3c] sm:$0x1]  ;;  %v1960_v21 = vshrl.u32 %v3942_v4, 16  ;;  %v1923_v3 = vsel %vm5752_vm9, %v1915_v53, %v1922_v12  ;;  %v2078_v45 = vsel %vm5746_vm8, %v1924_v54, %v2077_v32 }
 0x1fa   : > { %2157 = vst [vmem:[#allocation2 + $0x2c] sm:$0x1] %v2156_v37  ;;  %v2153_v49 = vsel %vm5784_vm10, 0, %v2152_v46  ;;  %v2131_v25 = vsel %vm5746_vm8, 0, %v2130_v43  ;;  %v2127_v28 = vld [vmem:[#allocation2 + $0x30] sm:$0x1]  ;;  %v1775_v61 = vmax.f32 %v1731_v58, %v1755_v19  ;;  %v1734_v12 = vadd.f32 %v5831_v59, %v5730_v8 }
 0x1fb   : > { %2154 = vst [vmem:[#allocation2 + $0x20] sm:$0x1] %v2153_v49  ;;  %2132 = vst [vmem:[#allocation2 + $0x3c] sm:$0x1] %v2131_v25  ;;  %v2128_v26 = vsel %vm5746_vm8, 0, %v2127_v28  ;;  %v1962_v11 = vrot.slane %v1960_v21, 7  ;;  %v1726_v43 = vadd.f32 %v5833_v44, %v5724_v51 }
 0x1fc   : > { %2076 = vst [vmem:[#allocation2 + $0x34] sm:$0xf] %v1923_v3  ;;  %2079 = vst [vmem:[#allocation2 + $0x38] sm:$0x1] %v2078_v45  ;;  %v1963_v13 = vshll.u32 %v3942_v4, 16  ;;  %v1943_v18 = vshrl.u32 %v3940_v42, 16  ;;  %v3946_v29 = vpack.c.bf16 %v1775_v61, %v1775_v61 }
 0x1fd   : > { %2129 = vst [vmem:[#allocation2 + $0x30] sm:$0x1] %v2128_v26  ;;  %v1946_v16 = vshll.u32 %v3940_v42, 16  ;;  %v1968_v47 = vshrl.u32 %v3943_v23, 16  ;;  %v1971_v57 = vshll.u32 %v3943_v23, 16  ;;  %v1966_v53 = vrot.slane %v1962_v11, 4 }
 0x1fe   : > { %v1965_v30 = vor.u32 %v1963_v13, %v1962_v11  ;;  %v1945_v38 = vrot.slane %v1943_v18, 7  ;;  %v1951_v22 = vshrl.u32 %v3941_v63, 16  ;;  %v1954_v36 = vshll.u32 %v3941_v63, 16  ;;  %v2108_v46 = vld [vmem:[#allocation2 + $0x6c] sm:$0xf] }
 0x1ff   : > { %v1970_v33 = vrot.slane %v1968_v47, 7  ;;  %v1753_v7 = vmul.f32 0.2, %v1723_v62  ;;  %v2161_v9 = vld [vmem:[#allocation2 + $0x44] sm:$0x1]  ;;  %v1994_v4 = vshrl.u32 %v3946_v29, 16 }
 0x200   : > { %v2095_v60 = vsel %vm5740_vm7, %v1965_v30, %v2094_v50  ;;  %v1948_v0 = vor.u32 %v1946_v16, %v1945_v38  ;;  %v1949_v20 = vrot.slane %v1945_v38, 4  ;;  %v1953_v2 = vrot.slane %v1951_v22, 7  ;;  %v2101_v45 = vld [vmem:[#allocation2 + $0x60] sm:$0xf] }
 0x201   : > { %2096 = vst [vmem:[#allocation2 + $0x54] sm:$0xf] %v2095_v60  ;;  %v1973_v17 = vor.u32 %v1971_v57, %v1970_v33  ;;  %v1975_v31 = vrot.slane %v1970_v33, 4  ;;  %v1773_v6 = vmax.f32 %v1723_v62, %v1753_v7  ;;  %v2162_v58 = vsel %vm5784_vm10, 0, %v2161_v9  ;;  %v2105_v9 = vld [vmem:[#allocation2 + $0x68] sm:$0x1] }
 0x202   : > { %v2088_v34 = vsel %vm5740_vm7, %v1948_v0, %v2087_v56  ;;  %v1997_v32 = vshll.u32 %v3946_v29, 16  ;;  %2163 = vst [vmem:[#allocation2 + $0x44] sm:$0x1] %v2162_v58  ;;  %v1956_v19 = vor.u32 %v1954_v36, %v1953_v2  ;;  %v1958_v62 = vrot.slane %v1953_v2, 4  ;;  %v2112_v0 = vld [vmem:[#allocation2 + $0x74] sm:$0x1] }
 0x203   : > { %v2158_v24 = vld [vmem:[#allocation2 + $0x38] sm:$0x1]  ;;  %2089 = vst [vmem:[#allocation2 + $0x48] sm:$0xf] %v2088_v34  ;;  %v1974_v10 = vsel %vm5752_vm9, %v1966_v53, %v1973_v17  ;;  %v2099_v14 = vsel %vm5746_vm8, %v1975_v31, %v2098_v27  ;;  %v1996_v1 = vrot.slane %v1994_v4, 7  ;;  %v3944_v52 = vpack.c.bf16 %v1773_v6, %v1773_v6 }
 0x204   : > { %v2159_v55 = vsel %vm5784_vm10, 0, %v2158_v24  ;;  %2097 = vst [vmem:[#allocation2 + $0x58] sm:$0xf] %v1974_v10  ;;  %2100 = vst [vmem:[#allocation2 + $0x5c] sm:$0x1] %v2099_v14  ;;  %v1957_v54 = vsel %vm5752_vm9, %v1949_v20, %v1956_v19  ;;  %v2092_v37 = vsel %vm5746_vm8, %v1958_v62, %v2091_v41  ;;  %v5019_v10 = vmov (!%p3827_p8), 0  }
 0x205   : > { %2160 = vst [vmem:[#allocation2 + $0x38] sm:$0x1] %v2159_v55  ;;  %2090 = vst [vmem:[#allocation2 + $0x4c] sm:$0xf] %v1957_v54  ;;  %v1999_v21 = vor.u32 %v1997_v32, %v1996_v1  ;;  %v1977_v42 = vshrl.u32 %v3944_v52, 16  ;;  %v1980_v28 = vshll.u32 %v3944_v52, 16 }
 0x206   : > { %2093 = vst [vmem:[#allocation2 + $0x50] sm:$0x1] %v2092_v37  ;;  %v1756_v23 = vmul.f32 0.2, %v1734_v12  ;;  %v1754_v49 = vmul.f32 0.2, %v1726_v43 }
 0x207   : > { %v2109_v8 = vsel %vm5740_vm7, %v1999_v21, %v2108_v46  ;;  %v1979_v59 = vrot.slane %v1977_v42, 7  ;;  %v2000_v36 = vrot.slane %v1996_v1, 4  ;;  %2180 = vst [vmem:[#allocation2] sm:$0xf] (!%p3827_p8), %v5019_v10  ;;  %2181 = vst [vmem:[#allocation2 + $0x4] sm:$0xf] (!%p3827_p8), %v5019_v10 }
 0x208   : > { %v2136_v25 = vld [vmem:[#allocation2 + $0x54] sm:$0x1]  ;;  %2110 = vst [vmem:[#allocation2 + $0x6c] sm:$0xf] %v2109_v8  ;;  %v1776_v26 = vmax.f32 %v1734_v12, %v1756_v23  ;;  %v1774_v11 = vmax.f32 %v1726_v43, %v1754_v49  ;;  %2182 = vst [vmem:[#allocation2 + $0x8] sm:$0x1] (!%p3827_p8), %v5019_v10 }
 0x209   : > { %v2137_v3 = vsel %vm5746_vm8, 0, %v2136_v25  ;;  %v1982_v44 = vor.u32 %v1980_v28, %v1979_v59  ;;  %v1983_v60 = vrot.slane %v1979_v59, 4 }
 0x20a   : > { %2138 = vst [vmem:[#allocation2 + $0x54] sm:$0x1] %v2137_v3  ;;  %v2133_v51 = vld [vmem:[#allocation2 + $0x48] sm:$0x1]  ;;  %v3947_v50 = vpack.c.bf16 %v1776_v26, %v1776_v26  ;;  %v3945_v16 = vpack.c.bf16 %v1774_v11, %v1774_v11 }
 0x20b   : > { %v2134_v13 = vsel %vm5746_vm8, 0, %v2133_v51  ;;  %v2167_v18 = vld [vmem:[#allocation2 + $0x5c] sm:$0x1]  ;;  %v2102_v57 = vsel %vm5740_vm7, %v1982_v44, %v2101_v45 }
 0x20c   : > { %2135 = vst [vmem:[#allocation2 + $0x48] sm:$0x1] %v2134_v13  ;;  %v2168_v47 = vsel %vm5784_vm10, 0, %v2167_v18  ;;  %2103 = vst [vmem:[#allocation2 + $0x60] sm:$0xf] %v2102_v57  ;;  %v2002_v30 = vshrl.u32 %v3947_v50, 16 }
 0x20d   : > { %2169 = vst [vmem:[#allocation2 + $0x5c] sm:$0x1] %v2168_v47  ;;  %v2164_v63 = vld [vmem:[#allocation2 + $0x50] sm:$0x1]  ;;  %v1985_v53 = vshrl.u32 %v3945_v16, 16  ;;  %v2005_v61 = vshll.u32 %v3947_v50, 16 }
 0x20e   : > { %v2165_v38 = vsel %vm5784_vm10, 0, %v2164_v63  ;;  %v2004_v56 = vrot.slane %v2002_v30, 7  ;;  %v1988_v22 = vshll.u32 %v3945_v16, 16 }
 0x20f   : > { %2166 = vst [vmem:[#allocation2 + $0x50] sm:$0x1] %v2165_v38  ;;  %v1987_v33 = vrot.slane %v1985_v53, 7  ;;  %v2142_v7 = vld [vmem:[#allocation2 + $0x6c] sm:$0x1] }
 0x210   : > { %v2143_v48 = vsel %vm5746_vm8, 0, %v2142_v7  ;;  %v2007_v20 = vor.u32 %v2005_v61, %v2004_v56  ;;  %v2009_v27 = vrot.slane %v2004_v56, 4 }
 0x211   : > { %v1990_v29 = vor.u32 %v1988_v22, %v1987_v33  ;;  %2144 = vst [vmem:[#allocation2 + $0x6c] sm:$0x1] %v2143_v48  ;;  %v1992_v17 = vrot.slane %v1987_v33, 4 }
 0x212   : > { %v2008_v31 = vsel %vm5752_vm9, %v2000_v36, %v2007_v20  ;;  %v2113_v2 = vsel %vm5746_vm8, %v2009_v27, %v2112_v0 }
 0x213   : > { %v1991_v6 = vsel %vm5752_vm9, %v1983_v60, %v1990_v29  ;;  %v2139_v58 = vld [vmem:[#allocation2 + $0x60] sm:$0x1]  ;;  %2111 = vst [vmem:[#allocation2 + $0x70] sm:$0xf] %v2008_v31  ;;  %2114 = vst [vmem:[#allocation2 + $0x74] sm:$0x1] %v2113_v2  ;;  %v2106_v34 = vsel %vm5746_vm8, %v1992_v17, %v2105_v9 }
 0x214   : > { %2104 = vst [vmem:[#allocation2 + $0x64] sm:$0xf] %v1991_v6  ;;  %v2140_v41 = vsel %vm5746_vm8, 0, %v2139_v58  ;;  %2107 = vst [vmem:[#allocation2 + $0x68] sm:$0x1] %v2106_v34 }
 0x215   : > { %2141 = vst [vmem:[#allocation2 + $0x60] sm:$0x1] %v2140_v41 }
 0x217   : > { %2179 = sbr.rel (%p3827_p8) target bundleno = 542 (0x21e), region = 44 }
 0x21a   : > { %v2173_v4 = vld [vmem:[#allocation2 + $0x74] sm:$0x1] }
 0x21b   : > { %v2174_v32 = vsel %vm5784_vm10, 0, %v2173_v4  ;;  %v2170_v24 = vld [vmem:[#allocation2 + $0x68] sm:$0x1] }
 0x21c   : > { %2175 = vst [vmem:[#allocation2 + $0x74] sm:$0x1] %v2174_v32  ;;  %v2171_v5 = vsel %vm5784_vm10, 0, %v2170_v24 }
 0x21d   : > { %2172 = vst [vmem:[#allocation2 + $0x68] sm:$0x1] %v2171_v5 }
 0x21e PF: > { %p3828_p10 = scmp.ne.s32.totalorder %s4998_s18, 1 }
 0x21f   : > { %v5020_v35 = vmov (!%p3828_p10), 0  }
 0x220   : > { %2186 = sbr.rel (%p3828_p10) target bundleno = 551 (0x227), region = 48  ;;  %2188 = vst [vmem:[#allocation2 + $0x6c] sm:$0xf] (!%p3828_p10), %v5020_v35  ;;  %2189 = vst [vmem:[#allocation2 + $0x70] sm:$0xf] (!%p3828_p10), %v5020_v35 }
 0x221   : > { %2190 = vst [vmem:[#allocation2 + $0x74] sm:$0x1] (!%p3828_p10), %v5020_v35 }
 0x227 PF: > { %v4796_v40 = vld [vmem:[#allocation3 + $0x40] sm:$0xff]   ;;  %v4800_v55 = vld [vmem:[#allocation3 + $0x48] sm:$0xff]   ;;  %v4804_v54 = vld [vmem:[#allocation3 + $0x50] sm:$0xff]   ;;  %s3948_s28 = sshll.u32 %s4998_s18, 4  ;;  %s3924_s13 = sshll.u32 %s5002_s19, 5 }
 0x228   : > { %v4797_v14 = vld [vmem:[#allocation3] sm:$0xff]   ;;  %4271 = vmatprep.subr.bf16.mxu1 %v4796_v40  ;;  %v4801_v1 = vld [vmem:[#allocation3 + $0x8] sm:$0xff]   ;;  %v4805_v37 = vld [vmem:[#allocation3 + $0x10] sm:$0xff]   ;;  %s3608_s24 = sadd.s32 %s3948_s28, %s3924_s13  ;;  %s3611_s19 = sshll.u32 %s5906_s11, 4  ;;  %s6194_s19 = int_to_ptr.vmem [resolvable:$true] %s3611_s19 }
 0x229   : > { %v4798_v19 = vld [vmem:[#allocation3 + $0xc0] sm:$0xff]   ;;  %4272 = vmatpush3.bf16.msra.mxu1 %v4797_v14  ;;  %v4802_v52 = vld [vmem:[#allocation3 + $0xc8] sm:$0xff]   ;;  %v4806_v46 = vld [vmem:[#allocation3 + $0xd0] sm:$0xff]   ;;  %s3925_s18 = sshll.u32 %s3608_s24, 7  ;;  %s6201_s6 = scalar_lea.sflag [#allocation5], %s227_s23 }
 0x22a   : > { %v4799_v62 = vld [vmem:[#allocation3 + $0x80] sm:$0xff]   ;;  %4335 = vmatprep.subr.bf16.mxu0 %v4798_v19  ;;  %4273 = vmatprep.subr.bf16.mxu1 %v4800_v55  ;;  %v4803_v12 = vld [vmem:[#allocation3 + $0x88] sm:$0xff]   ;;  %v4807_v43 = vld [vmem:[#allocation3 + $0x90] sm:$0xff]   ;;  %s6192_s7 = scalar_lea.hbm %s6257_s4, %s3925_s18  ;;  %s4916_s8 = scalar_lea.vmem %s6194_s19, 2048 }
 0x22b   : > { %4336 = vmatpush3.bf16.msra.mxu0 %v4799_v62  ;;  %v4808_v21 = vld [vmem:[#allocation3 + $0x58] sm:$0xff]   ;;  %v4812_v25 = vld [vmem:[#allocation3 + $0x60] sm:$0xff]   ;;  %v4816_v3 = vld [vmem:[#allocation3 + $0x68] sm:$0xff]   ;;  %p4917_p12 = scmp.ne.s32.totalorder %s6194_s19, %s4916_s8  ;;  %p6277_p0 = scmp.ne.s32.totalorder %s6262_s29, 0 }
 0x22c   : > { %4337 = vmatprep.subr.bf16.mxu0 %v4802_v52  ;;  %v4809_v42 = vld [vmem:[#allocation3 + $0x18] sm:$0xff]   ;;  %v4813_v8 = vld [vmem:[#allocation3 + $0x20] sm:$0xff]   ;;  %v4817_v45 = vld [vmem:[#allocation3 + $0x28] sm:$0xff]   ;;  %s5021_s10 = smov [#allocation6]  }
 0x22d   : > { %4274 = vmatpush3.bf16.msra.mxu1 %v4801_v1  ;;  %v4810_v23 = vld [vmem:[#allocation3 + $0xd8] sm:$0xff]   ;;  %v4814_v59 = vld [vmem:[#allocation3 + $0xe0] sm:$0xff]   ;;  %v4818_v26 = vld [vmem:[#allocation3 + $0xe8] sm:$0xff]   ;;  %p4918_p2 = pnand %p4917_p12, %p6277_p0  ;;  %s4920_s5 = sshll.u32 %s5021_s10, 4  ;;  %s4921_s5 = int_to_ptr.vmem [resolvable:$false] %s4920_s5 }
 0x22e   : > { %4275 = vmatprep.subr.bf16.mxu1 %v4804_v54  ;;  %v4811_v49 = vld [vmem:[#allocation3 + $0x98] sm:$0xff]   ;;  %v4815_v28 = vld [vmem:[#allocation3 + $0xa0] sm:$0xff]   ;;  %v4819_v11 = vld [vmem:[#allocation3 + $0xa8] sm:$0xff]   ;;  %s4922_s27 = scalar_lea.vmem %s4921_s5, 4096  ;;  %p4923_p6 = scmp.lt.s32.totalorder %s6194_s19, %s4921_s5 }
 0x22f   : > { %4338 = vmatpush3.bf16.msra.mxu0 %v4803_v12  ;;  %v4820_v51 = vld [vmem:[#allocation3 + $0x70] sm:$0xff]   ;;  %v4824_v50 = vld [vmem:[#allocation3 + $0x78] sm:$0xff]   ;;  %v4827_v57 = vld [vmem:[#allocation2] sm:$0xff]   ;;  %p4919_p5 = pneg %p4918_p2  ;;  %p4924_p7 = scmp.lt.s32.totalorder %s4922_s27, %s4916_s8 }
 0x230   : > { %4339 = vmatprep.subr.bf16.mxu0 %v4806_v46  ;;  %v4821_v44 = vld [vmem:[#allocation3 + $0x30] sm:$0xff]   ;;  %v4825_v16 = vld [vmem:[#allocation3 + $0x38] sm:$0xff]   ;;  %v2294_v53 = vshrl.u32 %v4827_v57, 16  ;;  %v2296_v38 = vshll.u32 %v4827_v57, 16  ;;  %v4830_v61 = vld [vmem:[#allocation3 + $0x140] sm:$0xff]   ;;  %v2397_v22 = vrot.slane %v4827_v57, 1 }
 0x231   : > { %4276 = vmatpush3.bf16.msra.mxu1 %v4805_v37  ;;  %v4822_v13 = vld [vmem:[#allocation3 + $0xf0] sm:$0xff]   ;;  %v4826_v47 = vld [vmem:[#allocation3 + $0xf8] sm:$0xff]   ;;  %v4832_v27 = vld [vmem:[#allocation3 + $0x100] sm:$0xff]   ;;  %p4925_p9 = por %p4924_p7, %p4923_p6 }
 0x232   : > { %4277 = vmatprep.subr.bf16.mxu1 %v4808_v21  ;;  %v4823_v18 = vld [vmem:[#allocation3 + $0xb0] sm:$0xff]   ;;  %v4829_v30 = vld [vmem:[#allocation3 + $0xb8] sm:$0xff]   ;;  %v2298_v36 = vrot.slane %v2296_v38, 1  ;;  %v5911_v31 = vld [vmem:[#allocation2 + $0x18] sm:$0xff]  }
 0x233   : > { %4340 = vmatpush3.bf16.msra.mxu0 %v4807_v43  ;;  %v4828_v63 = vld [vmem:[#allocation2 + $0x8] ss:$0 sps:$4 sm:$0x11]   ;;  %v4831_v33 = vld [vmem:[#allocation2 + $0xc] sm:$0xff]   ;;  %v4834_v58 = vld [vmem:[#allocation3 + $0x148] sm:$0xff]   ;;  %v2318_v10 = vshrl.u32 %v5911_v31, 16  ;;  %p4926_p11 = pnand %p4925_p9, %p4919_p5 }
 0x234   : > { %4341 = vmatprep.subr.bf16.mxu0 %v4810_v23  ;;  %v2301_v56 = vshll.u32 %v4828_v63, 16  ;;  %3190 = vmatprep.mubr.bf16.mxu0 %v4831_v33  ;;  %v2398_v60 = vrot.slane %v4828_v63, 1  ;;  %v2306_v0 = vshrl.u32 %v4831_v33, 16  ;;  %v2308_v48 = vshll.u32 %v4831_v33, 16  ;;  %v4836_v41 = vld [vmem:[#allocation3 + $0x108] sm:$0xff]   ;;  %v4838_v40 = vld [vmem:[#allocation3 + $0x150] sm:$0xff]  }
 0x235   : > { %4278 = vmatpush3.bf16.msra.mxu1 %v4809_v42  ;;  %v2299_v20 = vor.u32 %v2298_v36, %v2294_v53  ;;  %v4833_v29 = vld [vmem:[#allocation2 + $0x14] ss:$0 sps:$4 sm:$0x11]   ;;  %v2400_v4 = vrot.slane %v4831_v33, 1  ;;  %v2320_v35 = vshll.u32 %v5911_v31, 16  ;;  %v5924_v1 = vld [vmem:[#allocation2 + $0x24] sm:$0xff]  }
 0x236   : > { %4279 = vmatprep.subr.bf16.mxu1 %v4812_v25  ;;  %v2303_v7 = vrot.slane %v2301_v56, 1  ;;  %v2399_v9 = vsel %vm499_vm1, %v2397_v22, %v2398_v60  ;;  %v2310_v17 = vrot.slane %v2308_v48, 1  ;;  %v2313_v6 = vshll.u32 %v4833_v29, 16  ;;  %v4837_v5 = vld [vmem:[#allocation2 + $0x20] ss:$0 sps:$4 sm:$0x11]  }
 0x237   : > { %4342 = vmatpush3.bf16.msra.mxu0 %v4811_v49  ;;  %v2401_v32 = vrot.slane %v4833_v29, 1  ;;  %v2322_v19 = vrot.slane %v2320_v35, 1  ;;  %v2325_v62 = vshll.u32 %v4837_v5, 16  ;;  %v2403_v52 = vrot.slane %v5911_v31, 1  ;;  %v4840_v37 = vld [vmem:[#allocation3 + $0x110] sm:$0xff]   ;;  %v4842_v42 = vld [vmem:[#allocation3 + $0x158] sm:$0xff]  }
 0x238   : > { %4343 = vmatprep.subr.bf16.mxu0 %v4814_v59  ;;  %v2304_v2 = vsel %vm368_vm0, %v2299_v20, %v2303_v7  ;;  %v2311_v34 = vor.u32 %v2310_v17, %v2306_v0  ;;  %v2315_v24 = vrot.slane %v2313_v6, 1  ;;  %v4841_v46 = vld [vmem:[#allocation2 + $0x2c] ss:$0 sps:$4 sm:$0x11]   ;;  %v2330_v43 = vshrl.u32 %v5924_v1, 16  ;;  %v5934_v59 = vld [vmem:[#allocation2 + $0x30] sm:$0xff]  }
 0x239   : > { %4280 = vmatpush3.bf16.msra.mxu1 %v4813_v8  ;;  %3093 = vmatprep.mubr.bf16.mxu1 %v2304_v2  ;;  %v5922_v55 = vsel %vm499_vm1, %v2400_v4, %v2401_v32  ;;  %v2323_v12 = vor.u32 %v2322_v19, %v2318_v10  ;;  %v2327_v54 = vrot.slane %v2325_v62, 1  ;;  %v2332_v21 = vshll.u32 %v5924_v1, 16  ;;  %v4850_v63 = vld [vmem:[#allocation3 + $0x120] sm:$0xff]   ;;  %v4851_v38 = vld [vmem:[#allocation3 + $0x1c8] sm:$0xff]   ;;  %v5958_v29 = vld [vmem:[#allocation2 + $0x48] sm:$0xff]  }
 0x23a   : > { %4281 = vmatprep.subr.bf16.mxu1 %v4816_v3  ;;  %v5918_v14 = vsel %vm368_vm0, %v2311_v34, %v2315_v24  ;;  %v2404_v49 = vrot.slane %v4837_v5, 1  ;;  %v2337_v8 = vshll.u32 %v4841_v46, 16  ;;  %v4845_v3 = vld [vmem:[#allocation3 + $0x1c0] sm:$0xff]   ;;  %v2407_v56 = vrot.slane %v4841_v46, 1  ;;  %v4854_v7 = vld [vmem:[#allocation3 + $0x168] sm:$0xff]   ;;  %v4857_v17 = vld [vmem:[#allocation3 + $0x1d0] sm:$0xff]  }
 0x23b   : > { %4344 = vmatpush3.bf16.msra.mxu0 %v4815_v28  ;;  %v5931_v23 = vsel %vm368_vm0, %v2323_v12, %v2327_v54  ;;  %v2334_v25 = vrot.slane %v2332_v21, 1  ;;  %v4844_v28 = vld [vmem:[#allocation3 + $0x118] sm:$0xff]   ;;  %v4853_v22 = vld [vmem:[#allocation2 + $0x44] ss:$0 sps:$4 sm:$0x11]   ;;  %v2409_v48 = vrot.slane %v5934_v59, 1 }
 0x23c   : > { %4345 = vmatprep.subr.bf16.mxu0 %v4818_v26  ;;  %v2339_v26 = vrot.slane %v2337_v8, 1  ;;  %v4856_v20 = vld [vmem:[#allocation3 + $0x128] sm:$0xff]   ;;  %v2361_v6 = vshll.u32 %v4853_v22, 16  ;;  %v5966_v4 = vld [vmem:[#allocation2 + $0x50] ss:$0 sps:$4 sm:$0x11]  }
 0x23d   : > { %4282 = vmatpush3.bf16.msra.mxu1 %v4817_v45  ;;  %v2335_v45 = vor.u32 %v2334_v25, %v2330_v43  ;;  %v4861_v32 = vld [vmem:[#allocation3 + $0x198] sm:$0xff]   ;;  %v2368_v24 = vshll.u32 %v5958_v29, 16  ;;  %v4862_v5 = vld [vmem:[#allocation3 + $0x170] sm:$0xff]   ;;  %v2366_v62 = vshrl.u32 %v5958_v29, 16  ;;  %v2373_v43 = vshll.u32 %v5966_v4, 16  ;;  %v4866_v21 = vld [vmem:[#allocation3 + $0x1a0] sm:$0xff]  }
 0x23e   : > { %4283 = vmatprep.subr.bf16.mxu1 %v4820_v51  ;;  %v5938_v51 = vsel %vm499_vm1, %v2403_v52, %v2404_v49  ;;  %v2363_v35 = vrot.slane %v2361_v6, 1  ;;  %v5975_v52 = vld [vmem:[#allocation2 + $0x54] sm:$0xff]   ;;  %v4864_v12 = vld [vmem:[#allocation3 + $0x130] sm:$0xff]   ;;  %v4867_v49 = vld [vmem:[#allocation3 + $0x1e8] sm:$0xff]  }
 0x23f   : > { %4346 = vmatpush3.bf16.msra.mxu0 %v4819_v11  ;;  %v4846_v11 = vld [vmem:[#allocation3 + $0x180] sm:$0xff]   ;;  %v2370_v54 = vrot.slane %v2368_v24, 1  ;;  %v2380_v8 = vshll.u32 %v5975_v52, 16  ;;  %v4879_v6 = vld [vmem:[#allocation3 + $0x210] sm:$0xff]  }
 0x240   : > { %4347 = vmatprep.subr.bf16.mxu0 %v4822_v13  ;;  %v2344_v13 = vshll.u32 %v5934_v59, 16  ;;  %v4868_v25 = vld [vmem:[#allocation2 + $0x5c] ss:$0 sps:$4 sm:$0x11]  }
 0x241   : > { %4284 = vmatpush3.bf16.msra.mxu1 %v4821_v44  ;;  %v4847_v44 = vld [vmem:[#allocation2 + $0x38] ss:$0 sps:$4 sm:$0x11]  }
 0x242   : > { %4285 = vmatprep.subr.bf16.mxu1 %v4824_v50  ;;  %v4848_v50 = vld [vmem:[#allocation3 + $0x160] sm:$0xff]   ;;  %v2346_v53 = vrot.slane %v2344_v13, 1  ;;  %v2410_v34 = vrot.slane %v4847_v44, 1  ;;  %v2378_v13 = vshrl.u32 %v5975_v52, 16 }
 0x243   : > { %4348 = vmatpush3.bf16.msra.mxu0 %v4823_v18  ;;  %v2406_v18 = vrot.slane %v5924_v1, 1 }
 0x244   : > { %4349 = vmatprep.subr.bf16.mxu0 %v4826_v47  ;;  %v2349_v47 = vshll.u32 %v4847_v44, 16  ;;  %v2415_v44 = vrot.slane %v5958_v29, 1 }
 0x245   : > { %4286 = vmatpush3.bf16.msra.mxu1 %v4825_v16  ;;  %v2342_v16 = vshrl.u32 %v5934_v59, 16  ;;  %v5954_v0 = vsel %vm499_vm1, %v2406_v18, %v2407_v56  ;;  %v4872_v18 = vld [vmem:[#allocation3 + $0x138] sm:$0xff]  }
 0x246   : > { %4399 = vmatprep.subr.bf16.mxu1 %v4830_v61  ;;  %v4852_v61 = vld [vmem:[#allocation3 + $0x188] sm:$0xff]   ;;  %v4875_v56 = vld [vmem:[#allocation3 + $0x1f8] sm:$0xff]  }
 0x247   : > { %4350 = vmatpush3.bf16.msra.mxu0 %v4829_v30  ;;  %v5947_v30 = vsel %vm368_vm0, %v2335_v45, %v2339_v26  ;;  %v2347_v60 = vor.u32 %v2346_v53, %v2342_v16  ;;  %v2375_v45 = vrot.slane %v2373_v43, 1  ;;  %v4870_v26 = vld [vmem:[#allocation3 + $0x178] sm:$0xff]   ;;  %v4873_v16 = vld [vmem:[#allocation3 + $0x1f0] sm:$0xff]  }
 0x248   : > { %3094 = vmatmul.mubr.bf16.vlgmr.msra.gmra.mrb[80].mxu1 %v4827_v57  ;;  %4463 = vmatprep.subr.bf16.mxu0 %v4845_v3  ;;  %v5943_v57 = vld [vmem:[#allocation2 + $0x3c] sm:$0xff]   ;;  %v2371_v3 = vor.u32 %v2370_v54, %v2366_v62  ;;  %v4874_v53 = vld [vmem:[#allocation3 + $0x1b0] sm:$0xff]  }
 0x249   : > { %4400 = vmatpush3.bf16.msra.mxu1 %v4832_v27  ;;  %3101 = vmatprep.mubr.bf16.mxu1 %v5918_v14  ;;  %v2356_v36 = vshll.u32 %v5943_v57, 16  ;;  %v2354_v27 = vshrl.u32 %v5943_v57, 16  ;;  %v2412_v19 = vrot.slane %v5943_v57, 1 }
 0x24a   : > { %3191 = vmatmul.mubr.bf16.vlgmr.msra.gmra.mrb[100].mxu0 %v2399_v9  ;;  %4401 = vmatprep.subr.bf16.mxu1 %v4834_v58  ;;  %v4858_v58 = vld [vmem:[#allocation3 + $0x190] sm:$0xff]  }
 0x24b   : > { %3198 = vmatprep.mubr.bf16.mxu0 %v5911_v31  ;;  %4464 = vmatpush3.bf16.msra.mxu0 %v4846_v11  ;;  %v2358_v9 = vrot.slane %v2356_v36, 1 }
 0x24c   : > { %4465 = vmatprep.subr.bf16.mxu0 %v4851_v38  ;;  %v2416_v38 = vrot.slane %v5966_v4, 1  ;;  %v4886_v4 = vld [vmem:[#allocation2 + $0x6c] sm:$0xff]  }
 0x24d   : > { %4402 = vmatpush3.bf16.msra.mxu1 %v4836_v41  ;;  %v4859_v41 = vld [vmem:[#allocation3 + $0x1d8] sm:$0xff]   ;;  %v2359_v10 = vor.u32 %v2358_v9, %v2354_v27  ;;  %v2419_v27 = vrot.slane %v4868_v25, 1  ;;  %v2467_v24 = vshll.u32 %v4886_v4, 16 }
 0x24e   : > { %4403 = vmatprep.subr.bf16.mxu1 %v4838_v40  ;;  %v5971_v40 = vsel %vm499_vm1, %v2409_v48, %v2410_v34 }
 0x24f   : > { %4466 = vmatpush3.bf16.msra.mxu0 %v4852_v61  ;;  %v5979_v46 = vsel %vm368_vm0, %v2359_v10, %v2363_v35  ;;  %v4876_v61 = vld [vmem:[#allocation3 + $0x1b8] sm:$0xff]   ;;  %v2465_v10 = vshrl.u32 %v4886_v4, 16  ;;  %v2469_v35 = vrot.slane %v2467_v24, 1 }
 0x250   : > { %3102 = vmatmul.mubr.bf16.gmra.mrb[84].mxu1 %v4831_v33  ;;  %v2351_v33 = vrot.slane %v2349_v47, 1  ;;  %4467 = vmatprep.subr.bf16.mxu0 %v4857_v17  ;;  %v5993_v47 = vsel %vm368_vm0, %v2371_v3, %v2375_v45  ;;  %v4878_v17 = vld [vmem:[#allocation3 + $0x208] sm:$0xff]  }
 0x251   : > { %3109 = vmatprep.mubr.bf16.mxu1 %v5931_v23  ;;  %4404 = vmatpush3.bf16.msra.mxu1 %v4840_v37  ;;  %v4865_v37 = vld [vmem:[#allocation3 + $0x1e0] sm:$0xff]  }
 0x252   : > { %3199 = vmatmul.mubr.bf16.gmra.mrb[104].mxu0 %v5922_v55  ;;  %4405 = vmatprep.subr.bf16.mxu1 %v4842_v42  ;;  %v5962_v2 = vsel %vm368_vm0, %v2347_v60, %v2351_v33  ;;  %v2413_v42 = vrot.slane %v4853_v22, 1  ;;  %v4877_v33 = vld [vmem:[#allocation3 + $0x200] sm:$0xff]   ;;  %v6002_v60 = vld [vmem:[#allocation2 + $0x60] sm:$0xff]  }
 0x253   : > { %3206 = vmatprep.mubr.bf16.mxu0 %v5924_v1  ;;  %4468 = vmatpush3.bf16.msra.mxu0 %v4858_v58  ;;  %v4880_v58 = vld [vmem:[#allocation3 + $0x218] sm:$0xff]  }
 0x254   : > { %4469 = vmatprep.subr.bf16.mxu0 %v4859_v41  ;;  %v5987_v11 = vsel %vm499_vm1, %v2412_v19, %v2413_v42  ;;  %v2627_v42 = vsub.s32 1, %v5601_v39 }
 0x255   : > { %4406 = vmatpush3.bf16.msra.mxu1 %v4844_v28  ;;  %v4869_v28 = vld [vmem:[#allocation3 + $0x1a8] sm:$0xff]  }
 0x256   : > { %4407 = vmatprep.subr.bf16.mxu1 %v4848_v50  ;;  %v2382_v50 = vrot.slane %v2380_v8, 1 }
 0x257   : > { %4470 = vmatpush3.bf16.msra.mxu0 %v4861_v32  ;;  %v4887_v32 = vld [vmem:[#allocation2 + $0x74] ss:$0 sps:$4 sm:$0x11]  }
 0x258   : > { %3110 = vmatmul.mubr.bf16.gmra.mrb[88].mxu1 %v5911_v31  ;;  %4471 = vmatprep.subr.bf16.mxu0 %v4865_v37  ;;  %v2383_v22 = vor.u32 %v2382_v50, %v2378_v13  ;;  %v2472_v19 = vshll.u32 %v4887_v32, 16  ;;  %v2478_v43 = vrot.slane %v4887_v32, 1 }
 0x259   : > { %3117 = vmatprep.mubr.bf16.mxu1 %v5947_v30  ;;  %4408 = vmatpush3.bf16.msra.mxu1 %v4850_v63  ;;  %v2385_v63 = vshll.u32 %v4868_v25, 16 }
 0x25a   : > { %3207 = vmatmul.mubr.bf16.gmra.mrb[108].mxu0 %v5938_v51  ;;  %4409 = vmatprep.subr.bf16.mxu1 %v4854_v7  ;;  %v6000_v7 = vsel %vm499_vm1, %v2415_v44, %v2416_v38  ;;  %v2474_v62 = vrot.slane %v2472_v19, 1 }
 0x25b   : > { %3214 = vmatprep.mubr.bf16.mxu0 %v5934_v59  ;;  %4472 = vmatpush3.bf16.msra.mxu0 %v4866_v21  ;;  %v2387_v36 = vrot.slane %v2385_v63, 1 }
 0x25c   : > { %4473 = vmatprep.subr.bf16.mxu0 %v4867_v49 }
 0x25d   : > { %4410 = vmatpush3.bf16.msra.mxu1 %v4856_v20  ;;  %v6006_v48 = vsel %vm368_vm0, %v2383_v22, %v2387_v36  ;;  %v2418_v20 = vrot.slane %v5975_v52, 1 }
 0x25e   : > { %4411 = vmatprep.subr.bf16.mxu1 %v4862_v5 }
 0x25f   : > { %4474 = vmatpush3.bf16.msra.mxu0 %v4869_v28  ;;  %v6013_v9 = vsel %vm499_vm1, %v2418_v20, %v2419_v27 }
 0x260   : > { %3118 = vmatmul.mubr.bf16.gmra.mrb[92].mxu1 %v5924_v1  ;;  %4475 = vmatprep.subr.bf16.mxu0 %v4873_v16 }
 0x261   : > { %3125 = vmatprep.mubr.bf16.mxu1 %v5962_v2  ;;  %4412 = vmatpush3.bf16.msra.mxu1 %v4864_v12  ;;  %v2451_v12 = vrot.slane %v6002_v60, 1 }
 0x262   : > { %3215 = vmatmul.mubr.bf16.gmra.mrb[112].mxu0 %v5954_v0  ;;  %4413 = vmatprep.subr.bf16.mxu1 %v4870_v26 }
 0x263   : > { %3222 = vmatprep.mubr.bf16.mxu0 %v5943_v57  ;;  %4476 = vmatpush3.bf16.msra.mxu0 %v4874_v53 }
 0x264   : > { %4477 = vmatprep.subr.bf16.mxu0 %v4875_v56 }
 0x265   : > { %4414 = vmatpush3.bf16.msra.mxu1 %v4872_v18 }
 0x266   : > { %4579 = vmatprep.subr.bf16.mxu1 %v4877_v33 }
 0x267   : > { %4478 = vmatpush3.bf16.msra.mxu0 %v4876_v61 }
 0x268   : > { %3126 = vmatmul.mubr.bf16.gmra.mrb[96].mxu1 %v5934_v59 }
 0x269   : > { %3133 = vmatprep.mubr.bf16.mxu1 %v5979_v46 }
 0x26a   : > { %3223 = vmatmul.mubr.bf16.gmra.mrb[116].mxu0 %v5971_v40 }
 0x26b   : > { %3230 = vmatprep.mubr.bf16.mxu0 %v5958_v29 }
 0x270   : > { %3134 = vmatmul.mubr.bf16.gmra.mrb[100].mxu1 %v5943_v57 }
 0x271   : > { %3141 = vmatprep.mubr.bf16.mxu1 %v5993_v47 }
 0x272   : > { %3231 = vmatmul.mubr.bf16.gmra.mrb[120].mxu0 %v5987_v11 }
 0x273   : > { %3238 = vmatprep.mubr.bf16.mxu0 %v5975_v52 }
 0x278   : > { %3142 = vmatmul.mubr.bf16.gmra.mrb[104].mxu1 %v5958_v29 }
 0x279   : > { %3149 = vmatprep.mubr.bf16.mxu1 %v6006_v48 }
 0x27a   : > { %3239 = vmatmul.mubr.bf16.gmra.mrb[124].mxu0 %v6000_v7 }
 0x27b   : > { %3246 = vmatprep.mubr.bf16.mxu0 %v6002_v60 }
 0x280   : > { %3150 = vmatmul.mubr.bf16.gmra.mrb[108].mxu1 %v5975_v52 }
 0x281   : > { %3287 = vmatprep.mubr.bf16.mxu1 %v5922_v55  ;;  %v4883_v55 = vld [vmem:[#allocation3 + $0x230] sm:$0xff]  }
 0x282   : > { %3247 = vmatmul.mubr.bf16.gmra.mrb[128].mxu0 %v6013_v9 }
 0x283   : > { %3384 = vmatprep.mubr.bf16.mxu0 %v5931_v23 }
 0x288   : > { %3288 = vmatmul.mubr.bf16.vlgmr.msra.gmra.mrb[112].mxu1 %v5918_v14  ;;  %v4882_v14 = vld [vmem:[#allocation3 + $0x228] sm:$0xff]  }
 0x289   : > { %4580 = vmatpush3.bf16.msra.mxu1 %v4877_v33  ;;  %3295 = vmatprep.mubr.bf16.mxu1 %v5938_v51 }
 0x28a   : > { %3385 = vmatmul.mubr.bf16.vlgmr.msra.gmra.mrb[132].mxu0 %v5911_v31  ;;  %4581 = vmatprep.subr.bf16.mxu1 %v4878_v17  ;;  %v4881_v31 = vld [vmem:[#allocation3 + $0x220] sm:$0xff]  }
 0x28b   : > { %3392 = vmatprep.mubr.bf16.mxu0 %v5947_v30 }
 0x28d   : > { %4582 = vmatpush3.bf16.msra.mxu1 %v4878_v17 }
 0x28e   : > { %4583 = vmatprep.subr.bf16.mxu1 %v4879_v6 }
 0x290   : > { %3296 = vmatmul.mubr.bf16.gmra.mrb[116].mxu1 %v5931_v23  ;;  %v4884_v23 = vld [vmem:[#allocation2 + $0x68] ss:$0 sps:$4 sm:$0x11]  }
 0x291   : > { %3303 = vmatprep.mubr.bf16.mxu1 %v5954_v0  ;;  %4584 = vmatpush3.bf16.msra.mxu1 %v4879_v6  ;;  %v2446_v41 = vshll.u32 %v4884_v23, 16  ;;  %v2452_v54 = vrot.slane %v4884_v23, 1 }
 0x292   : > { %3393 = vmatmul.mubr.bf16.gmra.mrb[136].mxu0 %v5924_v1  ;;  %4585 = vmatprep.subr.bf16.mxu1 %v4880_v58  ;;  %v4885_v1 = vld [vmem:[#allocation3 + $0x238] sm:$0xff]  }
 0x293   : > { %3400 = vmatprep.mubr.bf16.mxu0 %v5962_v2 }
 0x295   : > { %4586 = vmatpush3.bf16.msra.mxu1 %v4880_v58 }
 0x296   : > { %4587 = vmatprep.subr.bf16.mxu1 %v4881_v31 }
 0x298   : > { %3304 = vmatmul.mubr.bf16.gmra.mrb[120].mxu1 %v5947_v30  ;;  %v2439_v30 = vshrl.u32 %v6002_v60, 16 }
 0x299   : > { %3311 = vmatprep.mubr.bf16.mxu1 %v5971_v40  ;;  %4588 = vmatpush3.bf16.msra.mxu1 %v4881_v31 }
 0x29a   : > { %3401 = vmatmul.mubr.bf16.gmra.mrb[140].mxu0 %v5934_v59  ;;  %4589 = vmatprep.subr.bf16.mxu1 %v4882_v14  ;;  %v2441_v59 = vshll.u32 %v6002_v60, 16 }
 0x29b   : > { %3408 = vmatprep.mubr.bf16.mxu0 %v5979_v46 }
 0x29c   : > { %v2443_v34 = vrot.slane %v2441_v59, 1 }
 0x29d   : > { %4590 = vmatpush3.bf16.msra.mxu1 %v4882_v14 }
 0x29e   : > { %4591 = vmatprep.subr.bf16.mxu1 %v4883_v55 }
 0x2a0   : > { %3312 = vmatmul.mubr.bf16.gmra.mrb[124].mxu1 %v5962_v2  ;;  %v2448_v2 = vrot.slane %v2446_v41, 1 }
 0x2a1   : > { %3319 = vmatprep.mubr.bf16.mxu1 %v5987_v11  ;;  %4592 = vmatpush3.bf16.msra.mxu1 %v4883_v55 }
 0x2a2   : > { %3409 = vmatmul.mubr.bf16.gmra.mrb[144].mxu0 %v5943_v57  ;;  %4593 = vmatprep.subr.bf16.mxu1 %v4885_v1  ;;  %v2444_v57 = vor.u32 %v2443_v34, %v2439_v30 }
 0x2a3   : > { %3416 = vmatprep.mubr.bf16.mxu0 %v5993_v47 }
 0x2a4   : > { %v2449_v5 = vsel %vm368_vm0, %v2444_v57, %v2448_v2 }
 0x2a5   : > { %4594 = vmatpush3.bf16.msra.mxu1 %v4885_v1 }
 0x2a8   : > { %3320 = vmatmul.mubr.bf16.gmra.mrb[128].mxu1 %v5979_v46  ;;  %v2453_v46 = vsel %vm499_vm1, %v2451_v12, %v2452_v54 }
 0x2a9   : > { %3327 = vmatprep.mubr.bf16.mxu1 %v6000_v7 }
 0x2aa   : > { %3417 = vmatmul.mubr.bf16.gmra.mrb[148].mxu0 %v5958_v29  ;;  %v2470_v29 = vor.u32 %v2469_v35, %v2465_v10 }
 0x2ab   : > { %3424 = vmatprep.mubr.bf16.mxu0 %v6006_v48 }
 0x2ac   : > { %v2475_v37 = vsel %vm368_vm0, %v2470_v29, %v2474_v62 }
 0x2b0   : > { %3328 = vmatmul.mubr.bf16.gmra.mrb[132].mxu1 %v5993_v47 }
 0x2b1   : > { %3335 = vmatprep.mubr.bf16.mxu1 %v6013_v9 }
 0x2b2   : > { %3425 = vmatmul.mubr.bf16.gmra.mrb[152].mxu0 %v5975_v52  ;;  %v2477_v52 = vrot.slane %v4886_v4, 1 }
 0x2b3   : > { %3432 = vmatprep.mubr.bf16.mxu0 %v2449_v5 }
 0x2b4   : > { %v2479_v21 = vsel %vm499_vm1, %v2477_v52, %v2478_v43 }
 0x2b8   : > { %3336 = vmatmul.mubr.bf16.gmra.mrb[136].mxu1 %v6006_v48 }
 0x2b9   : > { %3343 = vmatprep.mubr.bf16.mxu1 %v2453_v46 }
 0x2ba   : > { %3433 = vmatmul.mubr.bf16.gmra.mrb[156].mxu0 %v6002_v60 }
 0x2bb   : > { %3440 = vmatprep.mubr.bf16.mxu0 %v2475_v37 }
 0x2c0   : > { %3344 = vmatmul.mubr.bf16.gmra.mrb[140].mxu1 %v2449_v5 }
 0x2c1   : > { %4595 = vmatprep.mubr.bf16.mxu1 %v5938_v51 }
 0x2c2   : > { %3441 = vmatmul.mubr.bf16.gmra.mrb[160].mxu0 %v4886_v4 }
 0x2c8   : > { %4596 = vmatmul.mubr.bf16.vlgmr.msra.gmra.mrb[144].mxu1 %v5954_v0  ;;  %v6059_v0 = vrot.slane %v5607_v15, %v2627_v42 }
 0x2c9   : > { %4599 = vmatprep.mubr.bf16.mxu1 %v5971_v40 }
 0x2d0   : > { %4600 = vmatmul.mubr.bf16.gmra.mrb[148].mxu1 %v5987_v11 }
 0x2d1   : > { %4603 = vmatprep.mubr.bf16.mxu1 %v6000_v7 }
 0x2d8   : > { %4604 = vmatmul.mubr.bf16.gmra.mrb[152].mxu1 %v6013_v9 }
 0x2d9   : > { %4607 = vmatprep.mubr.bf16.mxu1 %v2453_v46 }
 0x2e0   : > { %4608 = vmatmul.mubr.bf16.gmra.mrb[156].mxu1 %v2479_v21 }
 0x31b   : > { %v4287_v25 = vpop.f32.mrb[80].mxu1 }
 0x31c   : > { %v4288_v28 = vpop.f32.mrb[81].mxu1 }
 0x31d   : > { %v4351_v49 = vpop.f32.mrb[100].mxu0  ;;  %v4289_v45 = vadd.f32 %v4288_v28, %v4287_v25  ;;  %v4290_v26 = vpop.f32.mrb[82].mxu1 }
 0x31e   : > { %v4352_v51 = vpop.f32.mrb[101].mxu0  ;;  %v4291_v44 = vpop.f32.mrb[83].mxu1 }
 0x31f   : > { %v4353_v40 = vadd.f32 %v4352_v51, %v4351_v49  ;;  %v4354_v8 = vpop.f32.mrb[102].mxu0  ;;  %v3096_v13 = vadd.f32 %v4289_v45, %v6059_v0  ;;  %v4292_v18 = vadd.f32 %v4291_v44, %v4290_v26 }
 0x320   : > { %v4355_v3 = vpop.f32.mrb[103].mxu0 }
 0x321   : > { %v4356_v11 = vadd.f32 %v4355_v3, %v4354_v8  ;;  %v3099_v50 = vadd.f32 %v4292_v18, %v6059_v0  ;;  %v6063_v39 = vadd.f32 %v4353_v40, %v3096_v13 }
 0x323   : > { %v6065_v63 = vadd.f32 %v4356_v11, %v3099_v50  ;;  %v4293_v15 = vpop.f32.mrb[84].mxu1 }
 0x324   : > { %v4294_v56 = vpop.f32.mrb[85].mxu1 }
 0x325   : > { %v4357_v16 = vpop.f32.mrb[104].mxu0  ;;  %v4295_v33 = vadd.f32 %v4294_v56, %v4293_v15  ;;  %v4296_v22 = vpop.f32.mrb[86].mxu1 }
 0x326   : > { %v4358_v47 = vpop.f32.mrb[105].mxu0  ;;  %v4297_v7 = vpop.f32.mrb[87].mxu1 }
 0x327   : > { %v4359_v53 = vadd.f32 %v4358_v47, %v4357_v16  ;;  %v4360_v38 = vpop.f32.mrb[106].mxu0  ;;  %v3104_v60 = vadd.f32 %v4295_v33, %v6059_v0  ;;  %v4298_v48 = vadd.f32 %v4297_v7, %v4296_v22 }
 0x328   : > { %v4361_v61 = vpop.f32.mrb[107].mxu0 }
 0x329   : > { %v4362_v36 = vadd.f32 %v4361_v61, %v4360_v38  ;;  %v3107_v20 = vadd.f32 %v4298_v48, %v6059_v0  ;;  %v6069_v27 = vadd.f32 %v4359_v53, %v3104_v60 }
 0x32b   : > { %v6071_v6 = vadd.f32 %v4362_v36, %v3107_v20  ;;  %v4299_v58 = vpop.f32.mrb[88].mxu1 }
 0x32c   : > { %v4300_v55 = vpop.f32.mrb[89].mxu1 }
 0x32d   : > { %v4363_v9 = vpop.f32.mrb[108].mxu0  ;;  %v4301_v23 = vadd.f32 %v4300_v55, %v4299_v58  ;;  %v4302_v59 = vpop.f32.mrb[90].mxu1 }
 0x32e   : > { %v4364_v17 = vpop.f32.mrb[109].mxu0  ;;  %v4303_v34 = vpop.f32.mrb[91].mxu1 }
 0x32f   : > { %v4365_v31 = vadd.f32 %v4364_v17, %v4363_v9  ;;  %v4366_v14 = vpop.f32.mrb[110].mxu0  ;;  %v3112_v41 = vadd.f32 %v4301_v23, %v6059_v0  ;;  %v4304_v4 = vadd.f32 %v4303_v34, %v4302_v59 }
 0x330   : > { %v4367_v1 = vpop.f32.mrb[111].mxu0 }
 0x331   : > { %v4368_v30 = vadd.f32 %v4367_v1, %v4366_v14  ;;  %v3115_v57 = vadd.f32 %v4304_v4, %v6059_v0  ;;  %v6075_v2 = vadd.f32 %v4365_v31, %v3112_v41 }
 0x333   : > { %v6077_v5 = vadd.f32 %v4368_v30, %v3115_v57  ;;  %v4305_v10 = vpop.f32.mrb[92].mxu1 }
 0x334   : > { %v4306_v29 = vpop.f32.mrb[93].mxu1 }
 0x335   : > { %v4369_v32 = vpop.f32.mrb[112].mxu0  ;;  %v4307_v12 = vadd.f32 %v4306_v29, %v4305_v10  ;;  %v4308_v54 = vpop.f32.mrb[94].mxu1 }
 0x336   : > { %v4370_v24 = vpop.f32.mrb[113].mxu0  ;;  %v4309_v46 = vpop.f32.mrb[95].mxu1 }
 0x337   : > { %v4371_v35 = vadd.f32 %v4370_v24, %v4369_v32  ;;  %v4372_v19 = vpop.f32.mrb[114].mxu0  ;;  %v3120_v52 = vadd.f32 %v4307_v12, %v6059_v0  ;;  %v4310_v43 = vadd.f32 %v4309_v46, %v4308_v54 }
 0x338   : > { %v4373_v62 = vpop.f32.mrb[115].mxu0 }
 0x339   : > { %v4374_v37 = vadd.f32 %v4373_v62, %v4372_v19  ;;  %v3123_v21 = vadd.f32 %v4310_v43, %v6059_v0  ;;  %v6081_v42 = vadd.f32 %v4371_v35, %v3120_v52 }
 0x33b   : > { %v6083_v25 = vadd.f32 %v4374_v37, %v3123_v21  ;;  %v4311_v40 = vpop.f32.mrb[96].mxu1 }
 0x33c   : > { %v4312_v3 = vpop.f32.mrb[97].mxu1 }
 0x33d   : > { %v4375_v49 = vpop.f32.mrb[116].mxu0  ;;  %v4313_v26 = vadd.f32 %v4312_v3, %v4311_v40  ;;  %v4314_v11 = vpop.f32.mrb[98].mxu1 }
 0x33e   : > { %v4376_v51 = vpop.f32.mrb[117].mxu0  ;;  %v4315_v13 = vpop.f32.mrb[99].mxu1 }
 0x33f   : > { %v4377_v8 = vadd.f32 %v4376_v51, %v4375_v49  ;;  %v4378_v28 = vpop.f32.mrb[118].mxu0  ;;  %v3128_v18 = vadd.f32 %v4313_v26, %v6059_v0  ;;  %v4316_v50 = vadd.f32 %v4315_v13, %v4314_v11 }
 0x340   : > { %v4379_v45 = vpop.f32.mrb[119].mxu0 }
 0x341   : > { %v4380_v44 = vadd.f32 %v4379_v45, %v4378_v28  ;;  %v3131_v16 = vadd.f32 %v4316_v50, %v6059_v0  ;;  %v6087_v47 = vadd.f32 %v4377_v8, %v3128_v18 }
 0x343   : > { %v6089_v38 = vadd.f32 %v4380_v44, %v3131_v16  ;;  %v4317_v56 = vpop.f32.mrb[100].mxu1 }
 0x344   : > { %v4318_v22 = vpop.f32.mrb[101].mxu1 }
 0x345   : > { %v4381_v15 = vpop.f32.mrb[120].mxu0  ;;  %v4319_v7 = vadd.f32 %v4318_v22, %v4317_v56  ;;  %v4320_v60 = vpop.f32.mrb[102].mxu1 }
 0x346   : > { %v4382_v53 = vpop.f32.mrb[121].mxu0  ;;  %v4321_v20 = vpop.f32.mrb[103].mxu1 }
 0x347   : > { %v4383_v61 = vadd.f32 %v4382_v53, %v4381_v15  ;;  %v4384_v33 = vpop.f32.mrb[122].mxu0  ;;  %v3136_v9 = vadd.f32 %v4319_v7, %v6059_v0  ;;  %v4322_v17 = vadd.f32 %v4321_v20, %v4320_v60 }
 0x348   : > { %v4385_v36 = vpop.f32.mrb[123].mxu0 }
 0x349   : > { %v4386_v48 = vadd.f32 %v4385_v36, %v4384_v33  ;;  %v3139_v58 = vadd.f32 %v4322_v17, %v6059_v0  ;;  %v6093_v31 = vadd.f32 %v4383_v61, %v3136_v9 }
 0x34b   : > { %v6095_v1 = vadd.f32 %v4386_v48, %v3139_v58  ;;  %v4323_v23 = vpop.f32.mrb[104].mxu1 }
 0x34c   : > { %v4324_v34 = vpop.f32.mrb[105].mxu1 }
 0x34d   : > { %v4387_v14 = vpop.f32.mrb[124].mxu0  ;;  %v4325_v4 = vadd.f32 %v4324_v34, %v4323_v23  ;;  %v4326_v57 = vpop.f32.mrb[106].mxu1 }
 0x34e   : > { %v4388_v55 = vpop.f32.mrb[125].mxu0  ;;  %v4327_v24 = vpop.f32.mrb[107].mxu1 }
 0x34f   : > { %v4389_v59 = vadd.f32 %v4388_v55, %v4387_v14  ;;  %v4390_v30 = vpop.f32.mrb[126].mxu0  ;;  %v3144_v10 = vadd.f32 %v4325_v4, %v6059_v0  ;;  %v4328_v35 = vadd.f32 %v4327_v24, %v4326_v57 }
 0x350   : > { %v4391_v41 = vpop.f32.mrb[127].mxu0 }
 0x351   : > { %v4392_v32 = vadd.f32 %v4391_v41, %v4390_v30  ;;  %v3147_v19 = vadd.f32 %v4328_v35, %v6059_v0  ;;  %v6099_v29 = vadd.f32 %v4389_v59, %v3144_v10 }
 0x353   : > { %v6101_v54 = vadd.f32 %v4392_v32, %v3147_v19  ;;  %v4329_v37 = vpop.f32.mrb[108].mxu1 }
 0x354   : > { %v4330_v43 = vpop.f32.mrb[109].mxu1 }
 0x355   : > { %v4393_v62 = vpop.f32.mrb[128].mxu0  ;;  %v4331_v49 = vadd.f32 %v4330_v43, %v4329_v37  ;;  %v4332_v51 = vpop.f32.mrb[110].mxu1 }
 0x356   : > { %v4394_v12 = vpop.f32.mrb[129].mxu0  ;;  %v4333_v8 = vpop.f32.mrb[111].mxu1 }
 0x357   : > { %v4395_v46 = vadd.f32 %v4394_v12, %v4393_v62  ;;  %v4396_v52 = vpop.f32.mrb[130].mxu0  ;;  %v3152_v28 = vadd.f32 %v4331_v49, %v6059_v0  ;;  %v4334_v3 = vadd.f32 %v4333_v8, %v4332_v51 }
 0x358   : > { %v4397_v21 = vpop.f32.mrb[131].mxu0 }
 0x359   : > { %v4398_v40 = vadd.f32 %v4397_v21, %v4396_v52  ;;  %v3155_v45 = vadd.f32 %v4334_v3, %v6059_v0  ;;  %v6105_v26 = vadd.f32 %v4395_v46, %v3152_v28 }
 0x35b   : > { %v6107_v13 = vadd.f32 %v4398_v40, %v3155_v45  ;;  %v4415_v18 = vpop.f32.mrb[112].mxu1 }
 0x35c   : > { %v4416_v15 = vpop.f32.mrb[113].mxu1 }
 0x35d   : > { %v4479_v11 = vpop.f32.mrb[132].mxu0  ;;  %v4417_v56 = vadd.f32 %v4416_v15, %v4415_v18  ;;  %v4418_v61 = vpop.f32.mrb[114].mxu1 }
 0x35e   : > { %v4480_v44 = vpop.f32.mrb[133].mxu0  ;;  %v4419_v22 = vpop.f32.mrb[115].mxu1 }
 0x35f   : > { %v4481_v50 = vadd.f32 %v4480_v44, %v4479_v11  ;;  %v4482_v16 = vpop.f32.mrb[134].mxu0  ;;  %v3290_v36 = vadd.f32 %v4417_v56, %v6063_v39  ;;  %v4420_v7 = vadd.f32 %v4419_v22, %v4418_v61 }
 0x360   : > { %v4483_v53 = vpop.f32.mrb[135].mxu0 }
 0x361   : > { %v4484_v33 = vadd.f32 %v4483_v53, %v4482_v16  ;;  %v3293_v0 = vadd.f32 %v4420_v7, %v6065_v63  ;;  %v6111_v48 = vadd.f32 %v4481_v50, %v3290_v36 }
 0x363   : > { %v4421_v9 = vpop.f32.mrb[116].mxu1  ;;  %v6113_v14 = vadd.f32 %v4484_v33, %v3293_v0 }
 0x364   : > { %v4422_v55 = vpop.f32.mrb[117].mxu1 }
 0x365   : > { %v4485_v60 = vpop.f32.mrb[136].mxu0  ;;  %v4423_v59 = vadd.f32 %v4422_v55, %v4421_v9  ;;  %v4424_v30 = vpop.f32.mrb[118].mxu1 }
 0x366   : > { %v4486_v20 = vpop.f32.mrb[137].mxu0  ;;  %v4425_v41 = vpop.f32.mrb[119].mxu1 }
 0x367   : > { %v4487_v17 = vadd.f32 %v4486_v20, %v4485_v60  ;;  %v4488_v58 = vpop.f32.mrb[138].mxu0  ;;  %v3298_v39 = vadd.f32 %v4423_v59, %v6069_v27  ;;  %v4426_v4 = vadd.f32 %v4425_v41, %v4424_v30 }
 0x368   : > { %v4489_v23 = vpop.f32.mrb[139].mxu0 }
 0x369   : > { %v4490_v34 = vadd.f32 %v4489_v23, %v4488_v58  ;;  %v3301_v63 = vadd.f32 %v4426_v4, %v6071_v6  ;;  %v6117_v32 = vadd.f32 %v4487_v17, %v3298_v39 }
 0x36b   : > { %v4427_v10 = vpop.f32.mrb[120].mxu1  ;;  %v6119_v62 = vadd.f32 %v4490_v34, %v3301_v63 }
 0x36c   : > { %v4428_v12 = vpop.f32.mrb[121].mxu1 }
 0x36d   : > { %v4491_v57 = vpop.f32.mrb[140].mxu0  ;;  %v4429_v46 = vadd.f32 %v4428_v12, %v4427_v10  ;;  %v4430_v52 = vpop.f32.mrb[122].mxu1 }
 0x36e   : > { %v4492_v24 = vpop.f32.mrb[141].mxu0  ;;  %v4431_v21 = vpop.f32.mrb[123].mxu1 }
 0x36f   : > { %v4493_v35 = vadd.f32 %v4492_v24, %v4491_v57  ;;  %v4494_v19 = vpop.f32.mrb[142].mxu0  ;;  %v3306_v27 = vadd.f32 %v4429_v46, %v6075_v2  ;;  %v4432_v49 = vadd.f32 %v4431_v21, %v4430_v52 }
 0x370   : > { %v4495_v37 = vpop.f32.mrb[143].mxu0 }
 0x371   : > { %v4496_v43 = vadd.f32 %v4495_v37, %v4494_v19  ;;  %v3309_v6 = vadd.f32 %v4432_v49, %v6077_v5  ;;  %v6123_v40 = vadd.f32 %v4493_v35, %v3306_v27 }
 0x373   : > { %v4433_v28 = vpop.f32.mrb[124].mxu1  ;;  %v6125_v11 = vadd.f32 %v4496_v43, %v3309_v6 }
 0x374   : > { %v4434_v44 = vpop.f32.mrb[125].mxu1 }
 0x375   : > { %v4497_v51 = vpop.f32.mrb[144].mxu0  ;;  %v4435_v50 = vadd.f32 %v4434_v44, %v4433_v28  ;;  %v4436_v16 = vpop.f32.mrb[126].mxu1 }
 0x376   : > { %v4498_v8 = vpop.f32.mrb[145].mxu0  ;;  %v4437_v53 = vpop.f32.mrb[127].mxu1 }
 0x377   : > { %v4499_v3 = vadd.f32 %v4498_v8, %v4497_v51  ;;  %v4500_v45 = vpop.f32.mrb[146].mxu0  ;;  %v3314_v2 = vadd.f32 %v4435_v50, %v6081_v42  ;;  %v4438_v56 = vadd.f32 %v4437_v53, %v4436_v16 }
 0x378   : > { %v4501_v18 = vpop.f32.mrb[147].mxu0 }
 0x379   : > { %v4502_v15 = vadd.f32 %v4501_v18, %v4500_v45  ;;  %v3317_v5 = vadd.f32 %v4438_v56, %v6083_v25  ;;  %v6129_v33 = vadd.f32 %v4499_v3, %v3314_v2 }
 0x37b   : > { %v4439_v36 = vpop.f32.mrb[128].mxu1  ;;  %v6131_v60 = vadd.f32 %v4502_v15, %v3317_v5 }
 0x37c   : > { %v4440_v20 = vpop.f32.mrb[129].mxu1 }
 0x37d   : > { %v4503_v61 = vpop.f32.mrb[148].mxu0  ;;  %v4441_v17 = vadd.f32 %v4440_v20, %v4439_v36  ;;  %v4442_v58 = vpop.f32.mrb[130].mxu1 }
 0x37e   : > { %v4504_v22 = vpop.f32.mrb[149].mxu0  ;;  %v4443_v23 = vpop.f32.mrb[131].mxu1 }
 0x37f   : > { %v4505_v7 = vadd.f32 %v4504_v22, %v4503_v61  ;;  %v4506_v0 = vpop.f32.mrb[150].mxu0  ;;  %v3322_v42 = vadd.f32 %v4441_v17, %v6087_v47  ;;  %v4444_v59 = vadd.f32 %v4443_v23, %v4442_v58 }
 0x380   : > { %v4507_v9 = vpop.f32.mrb[151].mxu0 }
 0x381   : > { %v4508_v55 = vadd.f32 %v4507_v9, %v4506_v0  ;;  %v3325_v25 = vadd.f32 %v4444_v59, %v6089_v38  ;;  %v6135_v34 = vadd.f32 %v4505_v7, %v3322_v42 }
 0x383   : > { %v4445_v39 = vpop.f32.mrb[132].mxu1  ;;  %v6137_v57 = vadd.f32 %v4508_v55, %v3325_v25 }
 0x384   : > { %v4446_v24 = vpop.f32.mrb[133].mxu1 }
 0x385   : > { %v4509_v30 = vpop.f32.mrb[152].mxu0  ;;  %v4447_v35 = vadd.f32 %v4446_v24, %v4445_v39  ;;  %v4448_v19 = vpop.f32.mrb[134].mxu1 }
 0x386   : > { %v4510_v41 = vpop.f32.mrb[153].mxu0  ;;  %v4449_v37 = vpop.f32.mrb[135].mxu1 }
 0x387   : > { %v4511_v4 = vadd.f32 %v4510_v41, %v4509_v30  ;;  %v4512_v63 = vpop.f32.mrb[154].mxu0  ;;  %v3330_v47 = vadd.f32 %v4447_v35, %v6093_v31  ;;  %v4450_v46 = vadd.f32 %v4449_v37, %v4448_v19 }
 0x388   : > { %v4513_v10 = vpop.f32.mrb[155].mxu0 }
 0x389   : > { %v4514_v12 = vadd.f32 %v4513_v10, %v4512_v63  ;;  %v3333_v38 = vadd.f32 %v4450_v46, %v6095_v1  ;;  %v6141_v43 = vadd.f32 %v4511_v4, %v3330_v47 }
 0x38b   : > { %v4451_v27 = vpop.f32.mrb[136].mxu1  ;;  %v6143_v51 = vadd.f32 %v4514_v12, %v3333_v38 }
 0x38c   : > { %v4452_v8 = vpop.f32.mrb[137].mxu1 }
 0x38d   : > { %v4515_v52 = vpop.f32.mrb[156].mxu0  ;;  %v4453_v3 = vadd.f32 %v4452_v8, %v4451_v27  ;;  %v4454_v45 = vpop.f32.mrb[138].mxu1 }
 0x38e   : > { %v4516_v21 = vpop.f32.mrb[157].mxu0  ;;  %v4455_v18 = vpop.f32.mrb[139].mxu1 }
 0x38f   : > { %v4517_v49 = vadd.f32 %v4516_v21, %v4515_v52  ;;  %v4518_v6 = vpop.f32.mrb[158].mxu0  ;;  %v3338_v31 = vadd.f32 %v4453_v3, %v6099_v29  ;;  %v4456_v50 = vadd.f32 %v4455_v18, %v4454_v45 }
 0x390   : > { %v4519_v28 = vpop.f32.mrb[159].mxu0 }
 0x391   : > { %v4520_v44 = vadd.f32 %v4519_v28, %v4518_v6  ;;  %v3341_v1 = vadd.f32 %v4456_v50, %v6101_v54  ;;  %v6147_v15 = vadd.f32 %v4517_v49, %v3338_v31 }
 0x393   : > { %v4457_v2 = vpop.f32.mrb[140].mxu1  ;;  %v6149_v61 = vadd.f32 %v4520_v44, %v3341_v1 }
 0x394   : > { %v4458_v22 = vpop.f32.mrb[141].mxu1 }
 0x395   : > { %v4521_v16 = vpop.f32.mrb[160].mxu0  ;;  %v4459_v7 = vadd.f32 %v4458_v22, %v4457_v2  ;;  %v4460_v0 = vpop.f32.mrb[142].mxu1 }
 0x396   : > { %v4522_v53 = vpop.f32.mrb[161].mxu0  ;;  %v4461_v9 = vpop.f32.mrb[143].mxu1 }
 0x397   : > { %v4523_v56 = vadd.f32 %v4522_v53, %v4521_v16  ;;  %v4524_v5 = vpop.f32.mrb[162].mxu0  ;;  %v3346_v29 = vadd.f32 %v4459_v7, %v6105_v26  ;;  %v4462_v17 = vadd.f32 %v4461_v9, %v4460_v0 }
 0x398   : > { %v4525_v36 = vpop.f32.mrb[163].mxu0 }
 0x399   : > { %v4526_v20 = vadd.f32 %v4525_v36, %v4524_v5  ;;  %v3349_v54 = vadd.f32 %v4462_v17, %v6107_v13  ;;  %v6153_v58 = vadd.f32 %v4523_v56, %v3346_v29 }
 0x39b   : > { %v4597_v55 = vpop.f32.mrb[144].mxu1  ;;  %v6155_v23 = vadd.f32 %v4526_v20, %v3349_v54 }
 0x39c   : > { %v3492_v42 = vadd.f32 %v4597_v55, %v6117_v32  ;;  %v3483_v59 = vpop.f32.mrb[145].mxu1 }
 0x39d   : > { %v3484_v25 = vadd.f32 %v3483_v59, %v6111_v48  ;;  %v4598_v30 = vpop.f32.mrb[146].mxu1 }
 0x39e   : > { %v3548_v41 = vmul.f32 0.2, %v3492_v42  ;;  %v3495_v26 = vadd.f32 %v4598_v30, %v6119_v62  ;;  %v3486_v39 = vpop.f32.mrb[147].mxu1 }
 0x39f   : > { %v3546_v13 = vmul.f32 0.2, %v3484_v25  ;;  %v3487_v4 = vadd.f32 %v3486_v39, %v6113_v14 }
 0x3a0   : > { %v3564_v63 = vmax.f32 %v3492_v42, %v3548_v41  ;;  %v3549_v24 = vmul.f32 0.2, %v3495_v26 }
 0x3a1   : > { %v3562_v10 = vmax.f32 %v3484_v25, %v3546_v13  ;;  %v3547_v35 = vmul.f32 0.2, %v3487_v4 }
 0x3a2   : > { %3580 = vst [vmem:[%s5906_s11 + $0x10] sm:$0xff] %v3564_v63  ;;  %v3565_v19 = vmax.f32 %v3495_v26, %v3549_v24 }
 0x3a3   : > { %3578 = vst [vmem:[%s5906_s11] sm:$0xff] %v3562_v10  ;;  %v3563_v32 = vmax.f32 %v3487_v4, %v3547_v35  ;;  %v4601_v12 = vpop.f32.mrb[148].mxu1 }
 0x3a4   : > { %3581 = vst [vmem:[%s5906_s11 + $0x18] sm:$0xff] %v3565_v19  ;;  %v3508_v48 = vadd.f32 %v4601_v12, %v6129_v33  ;;  %v3499_v62 = vpop.f32.mrb[149].mxu1 }
 0x3a5   : > { %3579 = vst [vmem:[%s5906_s11 + $0x8] sm:$0xff] %v3563_v32  ;;  %v3500_v37 = vadd.f32 %v3499_v62, %v6123_v40  ;;  %v4602_v14 = vpop.f32.mrb[150].mxu1 }
 0x3a6   : > { %v3552_v47 = vmul.f32 0.2, %v3508_v48  ;;  %v3511_v46 = vadd.f32 %v4602_v14, %v6131_v60  ;;  %v3502_v38 = vpop.f32.mrb[151].mxu1 }
 0x3a7   : > { %v3550_v52 = vmul.f32 0.2, %v3500_v37  ;;  %v3503_v21 = vadd.f32 %v3502_v38, %v6125_v11 }
 0x3a8   : > { %v3568_v27 = vmax.f32 %v3508_v48, %v3552_v47  ;;  %v3553_v49 = vmul.f32 0.2, %v3511_v46 }
 0x3a9   : > { %v3566_v6 = vmax.f32 %v3500_v37, %v3550_v52  ;;  %v3551_v8 = vmul.f32 0.2, %v3503_v21 }
 0x3aa   : > { %3584 = vst [vmem:[%s5906_s11 + $0x30] sm:$0xff] %v3568_v27  ;;  %v3569_v33 = vmax.f32 %v3511_v46, %v3553_v49 }
 0x3ab   : > { %3582 = vst [vmem:[%s5906_s11 + $0x20] sm:$0xff] %v3566_v6  ;;  %v3567_v28 = vmax.f32 %v3503_v21, %v3551_v8  ;;  %v4605_v3 = vpop.f32.mrb[152].mxu1 }
 0x3ac   : > { %3585 = vst [vmem:[%s5906_s11 + $0x38] sm:$0xff] %v3569_v33  ;;  %v3524_v40 = vadd.f32 %v4605_v3, %v6141_v43  ;;  %v3515_v60 = vpop.f32.mrb[153].mxu1 }
 0x3ad   : > { %3583 = vst [vmem:[%s5906_s11 + $0x28] sm:$0xff] %v3567_v28  ;;  %v3516_v11 = vadd.f32 %v3515_v60, %v6135_v34  ;;  %v4606_v45 = vpop.f32.mrb[154].mxu1 }
 0x3ae   : > { %v3556_v44 = vmul.f32 0.2, %v3524_v40  ;;  %v3527_v18 = vadd.f32 %v4606_v45, %v6143_v51  ;;  %v3518_v31 = vpop.f32.mrb[155].mxu1 }
 0x3af   : > { %v3554_v50 = vmul.f32 0.2, %v3516_v11  ;;  %v3519_v1 = vadd.f32 %v3518_v31, %v6137_v57 }
 0x3b0   : > { %v3572_v16 = vmax.f32 %v3524_v40, %v3556_v44  ;;  %v3557_v53 = vmul.f32 0.2, %v3527_v18 }
 0x3b1   : > { %v3570_v2 = vmax.f32 %v3516_v11, %v3554_v50  ;;  %v3555_v43 = vmul.f32 0.2, %v3519_v1 }
 0x3b2   : > { %3588 = vst [vmem:[%s5906_s11 + $0x50] sm:$0xff] %v3572_v16  ;;  %v3573_v56 = vmax.f32 %v3527_v18, %v3557_v53 }
 0x3b3   : > { %3586 = vst [vmem:[%s5906_s11 + $0x40] sm:$0xff] %v3570_v2  ;;  %v3571_v34 = vmax.f32 %v3519_v1, %v3555_v43  ;;  %v4609_v5 = vpop.f32.mrb[156].mxu1 }
 0x3b4   : > { %3589 = vst [vmem:[%s5906_s11 + $0x58] sm:$0xff] %v3573_v56  ;;  %v3540_v51 = vadd.f32 %v4609_v5, %v6153_v58  ;;  %v3531_v22 = vpop.f32.mrb[157].mxu1 }
 0x3b5   : > { %3587 = vst [vmem:[%s5906_s11 + $0x48] sm:$0xff] %v3571_v34  ;;  %v3532_v57 = vadd.f32 %v3531_v22, %v6147_v15  ;;  %v4610_v36 = vpop.f32.mrb[158].mxu1 }
 0x3b6   : > { %v3560_v7 = vmul.f32 0.2, %v3540_v51  ;;  %v3543_v0 = vadd.f32 %v4610_v36, %v6155_v23  ;;  %v3534_v20 = vpop.f32.mrb[159].mxu1 }
 0x3b7   : > { %v3558_v9 = vmul.f32 0.2, %v3532_v57  ;;  %v3535_v29 = vadd.f32 %v3534_v20, %v6149_v61 }
 0x3b8   : > { %v3576_v17 = vmax.f32 %v3540_v51, %v3560_v7  ;;  %v3561_v54 = vmul.f32 0.2, %v3543_v0 }
 0x3b9   : > { %v3574_v58 = vmax.f32 %v3532_v57, %v3558_v9  ;;  %v3559_v55 = vmul.f32 0.2, %v3535_v29 }
 0x3ba   : > { %3592 = vst [vmem:[%s5906_s11 + $0x70] sm:$0xff] %v3576_v17  ;;  %v3577_v15 = vmax.f32 %v3543_v0, %v3561_v54 }
 0x3bb   : > { %3590 = vst [vmem:[%s5906_s11 + $0x60] sm:$0xff] %v3574_v58  ;;  %v3575_v61 = vmax.f32 %v3535_v29, %v3559_v55 }
 0x3bc   : > { %3593 = vst [vmem:[%s5906_s11 + $0x78] sm:$0xff] %v3577_v15 }
 0x3bd   : > { %3591 = vst [vmem:[%s5906_s11 + $0x68] sm:$0xff] %v3575_v61 }
 0x3be   : > { %4929 = shalt.err (!%p4926_p11)
}
 0x3bf   : > { %s4930_s23 = scalar_lea.hbm %s6192_s7, 2048  ;;  %s4934_s13 = scalar_lea.hbm %s6257_s4, 8192 }
 0x3c0   : > { %p4931_p13 = scmp.ne.s32.totalorder %s6192_s7, %s4930_s23  ;;  %p4935_p3 = scmp.lt.u32.totalorder %s6192_s7, %s6257_s4 }
 0x3c1   : > { %p4936_p8 = scmp.lt.u32.totalorder %s4934_s13, %s4930_s23  ;;  %p4938_p12 = scmp.lt.u32.totalorder %s4930_s23, %s6192_s7 }
 0x3c2   : > { %p4932_p1 = pnand %p4931_p13, %p6277_p0 }
 0x3c3   : > { %p4937_p10 = por %p4936_p8, %p4935_p3 }
 0x3c4   : > { %p4933_p4 = pneg %p4932_p1 }
 0x3c5   : > { %p4939_p2 = por %p4938_p12, %p4937_p10 }
 0x3c7   : > { %p4940_p5 = pnand %p4939_p2, %p4933_p4 }
 0x3c9   : > { %4943 = shalt.err (!%p4940_p5)
}
 0x3ca   : > { %s5022_s14 = smov 128   ;;  %s5023_s12 = smov 8  }
 0x3cb   : > { %4616 = dma.vmem_to_hbm [thread:$0]  (%p6277_p0), %s6194_s19, 2048, %s6192_s7, %s6201_s6, %s5022_s14, %s5022_s14, %s5023_s12  }
 0x3cc PF: > { %p4628_p6 = scmp.ge.s32.totalorder %s5014_s22, 2  ;;  %s3626_s8 = sand.u32 1, %s4986_s15  }
 0x3cd   : > { %p6278_p7 = scmp.ne.s32.totalorder %s6263_s30, 0  ;;  %s3627_s10 = scalar_lea.sflag [#allocation5], %s3626_s8 }
 0x3cf   : > { %p4623_p9 = pnand %p4628_p6, %p6278_p7 }
 0x3d1   : > { %4981 = dma.done.wait (!%p4623_p9), %s3627_s10, 2048  }
 0x3d2   : > { %4983 = vsyncadd (!%p4623_p9), %s3627_s10, 4294965248  ;;  %s18_s22 = sadd.s32 1, %s5014_s22   ;;  %s6279_s15 = smov %s4990_s16 }
 0x3d3   : > { %p15_p11 = scmp.ge.s32.totalorder %s18_s22, 6   ;;  %s6280_s16 = smov %s4994_s17 }
 0x3d4   : > { %s6281_s17 = smov %s5128_s9  ;;  %s6282_s18 = smov %s5006_s20 }
 0x3d5   : > { %s6283_s19 = smov %s5010_s21  ;;  %s6284_s20 = smov %s6287_s25 }
 0x3d6   : > { %s6285_s21 = smov %s6291_s26  ;;  %17 = sbr.rel (!%p15_p11) target bundleno = 6 (0x6), region = 85 }
 0x3dd   :  { %3632 = vsyncpa [#allocation4], 1 }
 0x3de   :  { %3634 = vsyncpa [#allocation4 + $0x1], 1 }
 0x3df   :  { %3635 = vsyncpa [#allocation5], 1 }
 0x3e0   :  { %3637 = vsyncpa [#allocation5 + $0x1], 1 }

</bundles_post_ra>
